<compile_context>
chip_gen: v7x
topology: tpu7x:2x2x1
jax: 0.10.0
libtpu: 0.0.40
codegen_flags: <defaults>
</compile_context>

<pallas_src>
import jax
import jax.numpy as jnp
import numpy as np
from jax import lax
from jax.experimental import pallas as pl
from jax.experimental.pallas import tpu as pltpu


B_PAD = 8  # sublane-aligned batch (single live batch element in row 0)


# ----------------------------------------------------------------------------
# Fused Pallas kernel: wavefront GRU (all layers) + final Linear
# ----------------------------------------------------------------------------
def _make_fused_gru_kernel(num_layers, T, HP):
    """Refs: [x_flat, (w_ih, w_hh, bias_comb, bhh_n) * num_layers, lin_w, lin_b, out].
       All weights are pre-padded so each gate owns a full HP(=128)-lane block."""

    def kernel(*refs):
        x_ref = refs[0]                                  # (T*B_PAD, F)
        layer_refs = refs[1:1 + 4 * num_layers]
        lin_w_ref = refs[1 + 4 * num_layers]             # (HP, O)
        lin_b_ref = refs[2 + 4 * num_layers]             # (1, O)
        out_ref = refs[3 + 4 * num_layers]               # (T, O)

        # Load weights once; pre-broadcast biases ONCE (outside the unrolled chain).
        wih, whh, gate_bias, bhhn_b = [], [], [], []
        for l in range(num_layers):
            wih.append(layer_refs[4 * l + 0][...])       # (F or HP, 3*HP)
            whh.append(layer_refs[4 * l + 1][...])       # (HP, 3*HP)
            bshape = (T * B_PAD, 3 * HP) if l == 0 else (B_PAD, 3 * HP)
            gate_bias.append(jnp.broadcast_to(layer_refs[4 * l + 2][...], bshape))
            bhhn_b.append(jnp.broadcast_to(layer_refs[4 * l + 3][...], (B_PAD, HP)))

        # Layer-0 input projection batched over all T timesteps (off the serial chain).
        gi0_all = (
            jnp.dot(x_ref[...], wih[0], preferred_element_type=jnp.float32)
            + gate_bias[0]
        )                                                # (T*B_PAD, 3*HP)

        h = [jnp.zeros((B_PAD, HP), jnp.float32) for _ in range(num_layers)]
        top_hs = []

        for t in range(T):                               # fully unrolled wavefront
            for l in range(num_layers):
                if l == 0:
                    gi = gi0_all[t * B_PAD:(t + 1) * B_PAD]          # tile-aligned static slice
                else:
                    # Per-step input projection: depends only on layer l-1's h at step t.
                    gi = (
                        jnp.dot(h[l - 1], wih[l], preferred_element_type=jnp.float32)
                        + gate_bias[l]
                    )
                gh = jnp.dot(h[l], whh[l], preferred_element_type=jnp.float32)

                # Fused r|z sigmoid over the contiguous 2*HP-lane slab (one EUP transaction).
                rz = jax.nn.sigmoid(gi[:, :2 * HP] + gh[:, :2 * HP])
                r = rz[:, :HP]
                z = rz[:, HP:]
                # PyTorch GRU: n = tanh(W_in x + b_in + r * (W_hn h + b_hn)).
                n = jnp.tanh(gi[:, 2 * HP:] + r * (gh[:, 2 * HP:] + bhhn_b[l]))
                h[l] = (1.0 - z) * n + z * h[l]
            top_hs.append(h[num_layers - 1])

        # Final layer's hidden over time; batch row 0 is the single live batch element.
        seq = jnp.stack(top_hs, axis=0)                  # (T, B_PAD, HP)
        last = seq[:, 0, :]                              # (T, HP) — one-time sublane gather
        out_ref[...] = (
            jnp.dot(last, lin_w_ref[...], preferred_element_type=jnp.float32)
            + lin_b_ref[...]
        )                                                # single store of (T, O)

    return kernel


# ----------------------------------------------------------------------------
# Wrapper: weight padding / bias folding + pallas_call
# ----------------------------------------------------------------------------
def _pad_gate_cols(w, H, HP):
    """w: (..., 3H) with gate blocks [r|z|n] -> (..., 3*HP), each gate zero-padded to HP lanes."""
    r, z, n = jnp.split(w, 3, axis=-1)
    pad = [(0, 0)] * (w.ndim - 1) + [(0, HP - H)]
    return jnp.concatenate([jnp.pad(r, pad), jnp.pad(z, pad), jnp.pad(n, pad)], axis=-1)


def lstm_forward(x, params):
    """Full module forward. x: (T, B, input_size) float32 -> (T, output_dim)."""
    T, B, F = x.shape
    layers = params["gru_layers"]
    num_layers = len(layers)
    H = layers[0][1].shape[0]                  # hidden_dim from w_hh_t (H, 3H)
    O = params["lin_w_t"].shape[1]
    HP = max(128, ((H + 127) // 128) * 128)    # lane-aligned per-gate width

    # Only batch element B-1 reaches output[:, -1, :]; GRU batches are independent,
    # so slice to it and pad to a full 8-sublane batch (real data in sublane row 0).
    x_sel = x[:, B - 1, :]                                        # (T, F)
    x_pad = jnp.zeros((T, B_PAD, F), jnp.float32).at[:, 0, :].set(x_sel)
    x_flat = x_pad.reshape(T * B_PAD, F)                          # (T*B_PAD, F)

    flat_inputs = [x_flat]
    for l, (w_ih_t, w_hh_t, b_ih, b_hh) in enumerate(layers):
        in_f = w_ih_t.shape[0]
        # Lane-align each gate to its own HP block.
        w_ih_p = _pad_gate_cols(w_ih_t, H, HP)                    # (in_f, 3*HP)
        if l > 0:
            # Layers > 0 consume the HP-padded hidden state: zero-pad contraction rows.
            w_ih_p = jnp.pad(w_ih_p, ((0, HP - in_f), (0, 0)))    # (HP, 3*HP)
        w_hh_p = jnp.pad(_pad_gate_cols(w_hh_t, H, HP), ((0, HP - H), (0, 0)))  # (HP, 3*HP)
        # Fold b_hh_r / b_hh_z into the input-projection bias; keep b_hh_n separate.
        bias_comb = b_ih + jnp.concatenate(
            [b_hh[:, :2 * H], jnp.zeros((1, H), jnp.float32)], axis=-1)
        bias_comb_p = _pad_gate_cols(bias_comb, H, HP)            # (1, 3*HP)
        bhh_n_p = jnp.pad(b_hh[:, 2 * H:], ((0, 0), (0, HP - H)))  # (1, HP)
        flat_inputs += [w_ih_p, w_hh_p, bias_comb_p, bhh_n_p]

    lin_w_p = jnp.pad(params["lin_w_t"], ((0, HP - H), (0, 0)))   # (HP, O)
    flat_inputs += [lin_w_p, params["lin_b"]]

    kernel = _make_fused_gru_kernel(num_layers, T, HP)
    vmem = pltpu.MemorySpace.VMEM
    return pl.pallas_call(
        kernel,
        out_shape=jax.ShapeDtypeStruct((T, O), jnp.float32),
        in_specs=[pl.BlockSpec(memory_space=vmem)] * len(flat_inputs),
        out_specs=pl.BlockSpec(memory_space=vmem),
    )(*flat_inputs)


lstm_forward_jit = jax.jit(lstm_forward)


# ----------------------------------------------------------------------------
# Pure-JAX reference (for correctness check only)
# ----------------------------------------------------------------------------
def gru_layer_ref(x, w_ih_t, w_hh_t, b_ih, b_hh):
    T, B, _ = x.shape
    H = w_hh_t.shape[0]

    def step(h, x_t):
        gi = x_t @ w_ih_t + b_ih
        gh = h @ w_hh_t + b_hh
        i_r, i_z, i_n = gi[:, :H], gi[:, H:2 * H], gi[:, 2 * H:]
        h_r, h_z, h_n = gh[:, :H], gh[:, H:2 * H], gh[:, 2 * H:]
        r = jax.nn.sigmoid(i_r + h_r)
        z = jax.nn.sigmoid(i_z + h_z)
        n = jnp.tanh(i_n + r * h_n)
        h_new = (1.0 - z) * n + z * h
        return h_new, h_new

    h0 = jnp.zeros((B, H), jnp.float32)
    _, ys = lax.scan(step, h0, x)
    return ys


def lstm_forward_ref(x, params):
    h = x
    for (w_ih_t, w_hh_t, b_ih, b_hh) in params["gru_layers"]:
        h = gru_layer_ref(h, w_ih_t, w_hh_t, b_ih, b_hh)
    last = h[:, -1, :]
    return last @ params["lin_w_t"] + params["lin_b"]


# ----------------------------------------------------------------------------
# Deterministic parameter init (PyTorch-style uniform(-1/sqrt(H), 1/sqrt(H)))
# ----------------------------------------------------------------------------
def init_params(key, input_size, hidden_dim, num_layers, output_dim):
    bound = 1.0 / np.sqrt(hidden_dim)
    layers = []
    for l in range(num_layers):
        in_f = input_size if l == 0 else hidden_dim
        key, k1, k2, k3, k4 = jax.random.split(key, 5)
        # PyTorch stores (3H, in) / (3H, H); store transposed for x @ W^T.
        w_ih_t = jax.random.uniform(k1, (in_f, 3 * hidden_dim), jnp.float32, -bound, bound)
        w_hh_t = jax.random.uniform(k2, (hidden_dim, 3 * hidden_dim), jnp.float32, -bound, bound)
        b_ih = jax.random.uniform(k3, (1, 3 * hidden_dim), jnp.float32, -bound, bound)
        b_hh = jax.random.uniform(k4, (1, 3 * hidden_dim), jnp.float32, -bound, bound)
        layers.append((w_ih_t, w_hh_t, b_ih, b_hh))
    key, k5, k6 = jax.random.split(key, 3)
    lb = 1.0 / np.sqrt(hidden_dim)
    lin_w_t = jax.random.uniform(k5, (hidden_dim, output_dim), jnp.float32, -lb, lb)
    lin_b = jax.random.uniform(k6, (1, output_dim), jnp.float32, -lb, lb)
    return {"gru_layers": layers, "lin_w_t": lin_w_t, "lin_b": lin_b}


# ----------------------------------------------------------------------------
if __name__ == "__main__":
    # Small shapes consistent with the module's forward (seq-major, PyTorch GRU default).
    T, B = 8, 2
    input_size, hidden_dim, num_layers, output_dim = 16, 32, 2, 8

    key = jax.random.PRNGKey(0)
    key, kx = jax.random.split(key)
    x = jax.random.normal(kx, (T, B, input_size), jnp.float32)

    params = init_params(key, input_size, hidden_dim, num_layers, output_dim)

    out = lstm_forward_jit(x, params)
    out = jax.block_until_ready(out)

    ref = lstm_forward_ref(x, params)
    np.testing.assert_allclose(np.asarray(out), np.asarray(ref), rtol=1e-5, atol=1e-5)
    assert out.shape == (T, output_dim)

    print("KERNEL_OK")
</pallas_src>

<mosaic_0001>
module attributes {stable_mosaic.version = 11 : i64} {
  func.func @kernel(%arg0: memref<64x16xf32, #tpu.memory_space<vmem>>, %arg1: memref<16x384xf32, #tpu.memory_space<vmem>>, %arg2: memref<128x384xf32, #tpu.memory_space<vmem>>, %arg3: memref<1x384xf32, #tpu.memory_space<vmem>>, %arg4: memref<1x128xf32, #tpu.memory_space<vmem>>, %arg5: memref<128x384xf32, #tpu.memory_space<vmem>>, %arg6: memref<128x384xf32, #tpu.memory_space<vmem>>, %arg7: memref<1x384xf32, #tpu.memory_space<vmem>>, %arg8: memref<1x128xf32, #tpu.memory_space<vmem>>, %arg9: memref<128x8xf32, #tpu.memory_space<vmem>>, %arg10: memref<1x8xf32, #tpu.memory_space<vmem>>, %arg11: memref<8x8xf32, #tpu.memory_space<vmem>>) attributes {dimension_semantics = [], scalar_prefetch = 0 : i64, scratch_operands = 0 : i64, tpu.core_type = #tpu.core_type<tc>} {
    %c0 = arith.constant 0 : index
    %c0_0 = arith.constant 0 : index
    %0 = vector.load %arg1[%c0, %c0_0] : memref<16x384xf32, #tpu.memory_space<vmem>>, vector<16x384xf32>
    %c0_1 = arith.constant 0 : index
    %c0_2 = arith.constant 0 : index
    %1 = vector.load %arg2[%c0_1, %c0_2] : memref<128x384xf32, #tpu.memory_space<vmem>>, vector<128x384xf32>
    %c0_3 = arith.constant 0 : index
    %c0_4 = arith.constant 0 : index
    %2 = vector.load %arg3[%c0_3, %c0_4] : memref<1x384xf32, #tpu.memory_space<vmem>>, vector<1x384xf32>
    %3 = vector.shape_cast %2 : vector<1x384xf32> to vector<1x384xf32>
    %4 = vector.broadcast %3 : vector<1x384xf32> to vector<64x384xf32>
    %c0_5 = arith.constant 0 : index
    %c0_6 = arith.constant 0 : index
    %5 = vector.load %arg4[%c0_5, %c0_6] : memref<1x128xf32, #tpu.memory_space<vmem>>, vector<1x128xf32>
    %6 = vector.shape_cast %5 : vector<1x128xf32> to vector<1x128xf32>
    %7 = vector.broadcast %6 : vector<1x128xf32> to vector<8x128xf32>
    %c0_7 = arith.constant 0 : index
    %c0_8 = arith.constant 0 : index
    %8 = vector.load %arg5[%c0_7, %c0_8] : memref<128x384xf32, #tpu.memory_space<vmem>>, vector<128x384xf32>
    %c0_9 = arith.constant 0 : index
    %c0_10 = arith.constant 0 : index
    %9 = vector.load %arg6[%c0_9, %c0_10] : memref<128x384xf32, #tpu.memory_space<vmem>>, vector<128x384xf32>
    %c0_11 = arith.constant 0 : index
    %c0_12 = arith.constant 0 : index
    %10 = vector.load %arg7[%c0_11, %c0_12] : memref<1x384xf32, #tpu.memory_space<vmem>>, vector<1x384xf32>
    %11 = vector.shape_cast %10 : vector<1x384xf32> to vector<1x384xf32>
    %12 = vector.broadcast %11 : vector<1x384xf32> to vector<8x384xf32>
    %c0_13 = arith.constant 0 : index
    %c0_14 = arith.constant 0 : index
    %13 = vector.load %arg8[%c0_13, %c0_14] : memref<1x128xf32, #tpu.memory_space<vmem>>, vector<1x128xf32>
    %14 = vector.shape_cast %13 : vector<1x128xf32> to vector<1x128xf32>
    %15 = vector.broadcast %14 : vector<1x128xf32> to vector<8x128xf32>
    %c0_15 = arith.constant 0 : index
    %c0_16 = arith.constant 0 : index
    %16 = vector.load %arg0[%c0_15, %c0_16] : memref<64x16xf32, #tpu.memory_space<vmem>>, vector<64x16xf32>
    %cst = arith.constant dense<0.000000e+00> : vector<64x384xf32>
    %17 = tpu.matmul %16, %0, %cst {dimension_numbers = #tpu.dot_dimension_numbers<[1], [0], [0], [1], [0, 0, 1, 1], [], []>} : vector<64x16xf32>, vector<16x384xf32>, vector<64x384xf32> -> vector<64x384xf32>
    %18 = arith.addf %17, %4 : vector<64x384xf32>
    %cst_17 = arith.constant 0.000000e+00 : f32
    %19 = vector.broadcast %cst_17 : f32 to vector<8x128xf32>
    %cst_18 = arith.constant 0.000000e+00 : f32
    %20 = vector.broadcast %cst_18 : f32 to vector<8x128xf32>
    %21 = vector.extract_strided_slice %18 {offsets = [0, 0], sizes = [8, 384], strides = [1, 1]} : vector<64x384xf32> to vector<8x384xf32>
    %cst_19 = arith.constant dense<0.000000e+00> : vector<8x384xf32>
    %22 = tpu.matmul %19, %1, %cst_19 {dimension_numbers = #tpu.dot_dimension_numbers<[1], [0], [0], [1], [0, 0, 1, 1], [], []>} : vector<8x128xf32>, vector<128x384xf32>, vector<8x384xf32> -> vector<8x384xf32>
    %23 = vector.extract_strided_slice %21 {offsets = [0, 0], sizes = [8, 256], strides = [1, 1]} : vector<8x384xf32> to vector<8x256xf32>
    %24 = vector.extract_strided_slice %22 {offsets = [0, 0], sizes = [8, 256], strides = [1, 1]} : vector<8x384xf32> to vector<8x256xf32>
    %25 = arith.addf %23, %24 : vector<8x256xf32>
    %26 = arith.negf %25 : vector<8x256xf32>
    %27 = math.exp %26 : vector<8x256xf32>
    %cst_20 = arith.constant 1.000000e+00 : f32
    %28 = vector.broadcast %cst_20 : f32 to vector<8x256xf32>
    %29 = arith.addf %28, %27 : vector<8x256xf32>
    %30 = arith.divf %28, %29 : vector<8x256xf32>
    %31 = vector.extract_strided_slice %30 {offsets = [0, 0], sizes = [8, 128], strides = [1, 1]} : vector<8x256xf32> to vector<8x128xf32>
    %32 = vector.extract_strided_slice %30 {offsets = [0, 128], sizes = [8, 128], strides = [1, 1]} : vector<8x256xf32> to vector<8x128xf32>
    %33 = vector.extract_strided_slice %21 {offsets = [0, 256], sizes = [8, 128], strides = [1, 1]} : vector<8x384xf32> to vector<8x128xf32>
    %34 = vector.extract_strided_slice %22 {offsets = [0, 256], sizes = [8, 128], strides = [1, 1]} : vector<8x384xf32> to vector<8x128xf32>
    %35 = arith.addf %34, %7 : vector<8x128xf32>
    %36 = arith.mulf %31, %35 : vector<8x128xf32>
    %37 = arith.addf %33, %36 : vector<8x128xf32>
    %38 = math.tanh %37 : vector<8x128xf32>
    %cst_21 = arith.constant 1.000000e+00 : f32
    %39 = vector.broadcast %cst_21 : f32 to vector<8x128xf32>
    %40 = arith.subf %39, %32 : vector<8x128xf32>
    %41 = arith.mulf %40, %38 : vector<8x128xf32>
    %42 = arith.mulf %32, %19 : vector<8x128xf32>
    %43 = arith.addf %41, %42 : vector<8x128xf32>
    %cst_22 = arith.constant dense<0.000000e+00> : vector<8x384xf32>
    %44 = tpu.matmul %43, %8, %cst_22 {dimension_numbers = #tpu.dot_dimension_numbers<[1], [0], [0], [1], [0, 0, 1, 1], [], []>} : vector<8x128xf32>, vector<128x384xf32>, vector<8x384xf32> -> vector<8x384xf32>
    %45 = arith.addf %44, %12 : vector<8x384xf32>
    %cst_23 = arith.constant dense<0.000000e+00> : vector<8x384xf32>
    %46 = tpu.matmul %20, %9, %cst_23 {dimension_numbers = #tpu.dot_dimension_numbers<[1], [0], [0], [1], [0, 0, 1, 1], [], []>} : vector<8x128xf32>, vector<128x384xf32>, vector<8x384xf32> -> vector<8x384xf32>
    %47 = vector.extract_strided_slice %45 {offsets = [0, 0], sizes = [8, 256], strides = [1, 1]} : vector<8x384xf32> to vector<8x256xf32>
    %48 = vector.extract_strided_slice %46 {offsets = [0, 0], sizes = [8, 256], strides = [1, 1]} : vector<8x384xf32> to vector<8x256xf32>
    %49 = arith.addf %47, %48 : vector<8x256xf32>
    %50 = arith.negf %49 : vector<8x256xf32>
    %51 = math.exp %50 : vector<8x256xf32>
    %cst_24 = arith.constant 1.000000e+00 : f32
    %52 = vector.broadcast %cst_24 : f32 to vector<8x256xf32>
    %53 = arith.addf %52, %51 : vector<8x256xf32>
    %54 = arith.divf %52, %53 : vector<8x256xf32>
    %55 = vector.extract_strided_slice %54 {offsets = [0, 0], sizes = [8, 128], strides = [1, 1]} : vector<8x256xf32> to vector<8x128xf32>
    %56 = vector.extract_strided_slice %54 {offsets = [0, 128], sizes = [8, 128], strides = [1, 1]} : vector<8x256xf32> to vector<8x128xf32>
    %57 = vector.extract_strided_slice %45 {offsets = [0, 256], sizes = [8, 128], strides = [1, 1]} : vector<8x384xf32> to vector<8x128xf32>
    %58 = vector.extract_strided_slice %46 {offsets = [0, 256], sizes = [8, 128], strides = [1, 1]} : vector<8x384xf32> to vector<8x128xf32>
    %59 = arith.addf %58, %15 : vector<8x128xf32>
    %60 = arith.mulf %55, %59 : vector<8x128xf32>
    %61 = arith.addf %57, %60 : vector<8x128xf32>
    %62 = math.tanh %61 : vector<8x128xf32>
    %cst_25 = arith.constant 1.000000e+00 : f32
    %63 = vector.broadcast %cst_25 : f32 to vector<8x128xf32>
    %64 = arith.subf %63, %56 : vector<8x128xf32>
    %65 = arith.mulf %64, %62 : vector<8x128xf32>
    %66 = arith.mulf %56, %20 : vector<8x128xf32>
    %67 = arith.addf %65, %66 : vector<8x128xf32>
    %68 = vector.extract_strided_slice %18 {offsets = [8, 0], sizes = [8, 384], strides = [1, 1]} : vector<64x384xf32> to vector<8x384xf32>
    %cst_26 = arith.constant dense<0.000000e+00> : vector<8x384xf32>
    %69 = tpu.matmul %43, %1, %cst_26 {dimension_numbers = #tpu.dot_dimension_numbers<[1], [0], [0], [1], [0, 0, 1, 1], [], []>} : vector<8x128xf32>, vector<128x384xf32>, vector<8x384xf32> -> vector<8x384xf32>
    %70 = vector.extract_strided_slice %68 {offsets = [0, 0], sizes = [8, 256], strides = [1, 1]} : vector<8x384xf32> to vector<8x256xf32>
    %71 = vector.extract_strided_slice %69 {offsets = [0, 0], sizes = [8, 256], strides = [1, 1]} : vector<8x384xf32> to vector<8x256xf32>
    %72 = arith.addf %70, %71 : vector<8x256xf32>
    %73 = arith.negf %72 : vector<8x256xf32>
    %74 = math.exp %73 : vector<8x256xf32>
    %cst_27 = arith.constant 1.000000e+00 : f32
    %75 = vector.broadcast %cst_27 : f32 to vector<8x256xf32>
    %76 = arith.addf %75, %74 : vector<8x256xf32>
    %77 = arith.divf %75, %76 : vector<8x256xf32>
    %78 = vector.extract_strided_slice %77 {offsets = [0, 0], sizes = [8, 128], strides = [1, 1]} : vector<8x256xf32> to vector<8x128xf32>
    %79 = vector.extract_strided_slice %77 {offsets = [0, 128], sizes = [8, 128], strides = [1, 1]} : vector<8x256xf32> to vector<8x128xf32>
    %80 = vector.extract_strided_slice %68 {offsets = [0, 256], sizes = [8, 128], strides = [1, 1]} : vector<8x384xf32> to vector<8x128xf32>
    %81 = vector.extract_strided_slice %69 {offsets = [0, 256], sizes = [8, 128], strides = [1, 1]} : vector<8x384xf32> to vector<8x128xf32>
    %82 = arith.addf %81, %7 : vector<8x128xf32>
    %83 = arith.mulf %78, %82 : vector<8x128xf32>
    %84 = arith.addf %80, %83 : vector<8x128xf32>
    %85 = math.tanh %84 : vector<8x128xf32>
    %cst_28 = arith.constant 1.000000e+00 : f32
    %86 = vector.broadcast %cst_28 : f32 to vector<8x128xf32>
    %87 = arith.subf %86, %79 : vector<8x128xf32>
    %88 = arith.mulf %87, %85 : vector<8x128xf32>
    %89 = arith.mulf %79, %43 : vector<8x128xf32>
    %90 = arith.addf %88, %89 : vector<8x128xf32>
    %cst_29 = arith.constant dense<0.000000e+00> : vector<8x384xf32>
    %91 = tpu.matmul %90, %8, %cst_29 {dimension_numbers = #tpu.dot_dimension_numbers<[1], [0], [0], [1], [0, 0, 1, 1], [], []>} : vector<8x128xf32>, vector<128x384xf32>, vector<8x384xf32> -> vector<8x384xf32>
    %92 = arith.addf %91, %12 : vector<8x384xf32>
    %cst_30 = arith.constant dense<0.000000e+00> : vector<8x384xf32>
    %93 = tpu.matmul %67, %9, %cst_30 {dimension_numbers = #tpu.dot_dimension_numbers<[1], [0], [0], [1], [0, 0, 1, 1], [], []>} : vector<8x128xf32>, vector<128x384xf32>, vector<8x384xf32> -> vector<8x384xf32>
    %94 = vector.extract_strided_slice %92 {offsets = [0, 0], sizes = [8, 256], strides = [1, 1]} : vector<8x384xf32> to vector<8x256xf32>
    %95 = vector.extract_strided_slice %93 {offsets = [0, 0], sizes = [8, 256], strides = [1, 1]} : vector<8x384xf32> to vector<8x256xf32>
    %96 = arith.addf %94, %95 : vector<8x256xf32>
    %97 = arith.negf %96 : vector<8x256xf32>
    %98 = math.exp %97 : vector<8x256xf32>
    %cst_31 = arith.constant 1.000000e+00 : f32
    %99 = vector.broadcast %cst_31 : f32 to vector<8x256xf32>
    %100 = arith.addf %99, %98 : vector<8x256xf32>
    %101 = arith.divf %99, %100 : vector<8x256xf32>
    %102 = vector.extract_strided_slice %101 {offsets = [0, 0], sizes = [8, 128], strides = [1, 1]} : vector<8x256xf32> to vector<8x128xf32>
    %103 = vector.extract_strided_slice %101 {offsets = [0, 128], sizes = [8, 128], strides = [1, 1]} : vector<8x256xf32> to vector<8x128xf32>
    %104 = vector.extract_strided_slice %92 {offsets = [0, 256], sizes = [8, 128], strides = [1, 1]} : vector<8x384xf32> to vector<8x128xf32>
    %105 = vector.extract_strided_slice %93 {offsets = [0, 256], sizes = [8, 128], strides = [1, 1]} : vector<8x384xf32> to vector<8x128xf32>
    %106 = arith.addf %105, %15 : vector<8x128xf32>
    %107 = arith.mulf %102, %106 : vector<8x128xf32>
    %108 = arith.addf %104, %107 : vector<8x128xf32>
    %109 = math.tanh %108 : vector<8x128xf32>
    %cst_32 = arith.constant 1.000000e+00 : f32
    %110 = vector.broadcast %cst_32 : f32 to vector<8x128xf32>
    %111 = arith.subf %110, %103 : vector<8x128xf32>
    %112 = arith.mulf %111, %109 : vector<8x128xf32>
    %113 = arith.mulf %103, %67 : vector<8x128xf32>
    %114 = arith.addf %112, %113 : vector<8x128xf32>
    %115 = vector.extract_strided_slice %18 {offsets = [16, 0], sizes = [8, 384], strides = [1, 1]} : vector<64x384xf32> to vector<8x384xf32>
    %cst_33 = arith.constant dense<0.000000e+00> : vector<8x384xf32>
    %116 = tpu.matmul %90, %1, %cst_33 {dimension_numbers = #tpu.dot_dimension_numbers<[1], [0], [0], [1], [0, 0, 1, 1], [], []>} : vector<8x128xf32>, vector<128x384xf32>, vector<8x384xf32> -> vector<8x384xf32>
    %117 = vector.extract_strided_slice %115 {offsets = [0, 0], sizes = [8, 256], strides = [1, 1]} : vector<8x384xf32> to vector<8x256xf32>
    %118 = vector.extract_strided_slice %116 {offsets = [0, 0], sizes = [8, 256], strides = [1, 1]} : vector<8x384xf32> to vector<8x256xf32>
    %119 = arith.addf %117, %118 : vector<8x256xf32>
    %120 = arith.negf %119 : vector<8x256xf32>
    %121 = math.exp %120 : vector<8x256xf32>
    %cst_34 = arith.constant 1.000000e+00 : f32
    %122 = vector.broadcast %cst_34 : f32 to vector<8x256xf32>
    %123 = arith.addf %122, %121 : vector<8x256xf32>
    %124 = arith.divf %122, %123 : vector<8x256xf32>
    %125 = vector.extract_strided_slice %124 {offsets = [0, 0], sizes = [8, 128], strides = [1, 1]} : vector<8x256xf32> to vector<8x128xf32>
    %126 = vector.extract_strided_slice %124 {offsets = [0, 128], sizes = [8, 128], strides = [1, 1]} : vector<8x256xf32> to vector<8x128xf32>
    %127 = vector.extract_strided_slice %115 {offsets = [0, 256], sizes = [8, 128], strides = [1, 1]} : vector<8x384xf32> to vector<8x128xf32>
    %128 = vector.extract_strided_slice %116 {offsets = [0, 256], sizes = [8, 128], strides = [1, 1]} : vector<8x384xf32> to vector<8x128xf32>
    %129 = arith.addf %128, %7 : vector<8x128xf32>
    %130 = arith.mulf %125, %129 : vector<8x128xf32>
    %131 = arith.addf %127, %130 : vector<8x128xf32>
    %132 = math.tanh %131 : vector<8x128xf32>
    %cst_35 = arith.constant 1.000000e+00 : f32
    %133 = vector.broadcast %cst_35 : f32 to vector<8x128xf32>
    %134 = arith.subf %133, %126 : vector<8x128xf32>
    %135 = arith.mulf %134, %132 : vector<8x128xf32>
    %136 = arith.mulf %126, %90 : vector<8x128xf32>
    %137 = arith.addf %135, %136 : vector<8x128xf32>
    %cst_36 = arith.constant dense<0.000000e+00> : vector<8x384xf32>
    %138 = tpu.matmul %137, %8, %cst_36 {dimension_numbers = #tpu.dot_dimension_numbers<[1], [0], [0], [1], [0, 0, 1, 1], [], []>} : vector<8x128xf32>, vector<128x384xf32>, vector<8x384xf32> -> vector<8x384xf32>
    %139 = arith.addf %138, %12 : vector<8x384xf32>
    %cst_37 = arith.constant dense<0.000000e+00> : vector<8x384xf32>
    %140 = tpu.matmul %114, %9, %cst_37 {dimension_numbers = #tpu.dot_dimension_numbers<[1], [0], [0], [1], [0, 0, 1, 1], [], []>} : vector<8x128xf32>, vector<128x384xf32>, vector<8x384xf32> -> vector<8x384xf32>
    %141 = vector.extract_strided_slice %139 {offsets = [0, 0], sizes = [8, 256], strides = [1, 1]} : vector<8x384xf32> to vector<8x256xf32>
    %142 = vector.extract_strided_slice %140 {offsets = [0, 0], sizes = [8, 256], strides = [1, 1]} : vector<8x384xf32> to vector<8x256xf32>
    %143 = arith.addf %141, %142 : vector<8x256xf32>
    %144 = arith.negf %143 : vector<8x256xf32>
    %145 = math.exp %144 : vector<8x256xf32>
    %cst_38 = arith.constant 1.000000e+00 : f32
    %146 = vector.broadcast %cst_38 : f32 to vector<8x256xf32>
    %147 = arith.addf %146, %145 : vector<8x256xf32>
    %148 = arith.divf %146, %147 : vector<8x256xf32>
    %149 = vector.extract_strided_slice %148 {offsets = [0, 0], sizes = [8, 128], strides = [1, 1]} : vector<8x256xf32> to vector<8x128xf32>
    %150 = vector.extract_strided_slice %148 {offsets = [0, 128], sizes = [8, 128], strides = [1, 1]} : vector<8x256xf32> to vector<8x128xf32>
    %151 = vector.extract_strided_slice %139 {offsets = [0, 256], sizes = [8, 128], strides = [1, 1]} : vector<8x384xf32> to vector<8x128xf32>
    %152 = vector.extract_strided_slice %140 {offsets = [0, 256], sizes = [8, 128], strides = [1, 1]} : vector<8x384xf32> to vector<8x128xf32>
    %153 = arith.addf %152, %15 : vector<8x128xf32>
    %154 = arith.mulf %149, %153 : vector<8x128xf32>
    %155 = arith.addf %151, %154 : vector<8x128xf32>
    %156 = math.tanh %155 : vector<8x128xf32>
    %cst_39 = arith.constant 1.000000e+00 : f32
    %157 = vector.broadcast %cst_39 : f32 to vector<8x128xf32>
    %158 = arith.subf %157, %150 : vector<8x128xf32>
    %159 = arith.mulf %158, %156 : vector<8x128xf32>
    %160 = arith.mulf %150, %114 : vector<8x128xf32>
    %161 = arith.addf %159, %160 : vector<8x128xf32>
    %162 = vector.extract_strided_slice %18 {offsets = [24, 0], sizes = [8, 384], strides = [1, 1]} : vector<64x384xf32> to vector<8x384xf32>
    %cst_40 = arith.constant dense<0.000000e+00> : vector<8x384xf32>
    %163 = tpu.matmul %137, %1, %cst_40 {dimension_numbers = #tpu.dot_dimension_numbers<[1], [0], [0], [1], [0, 0, 1, 1], [], []>} : vector<8x128xf32>, vector<128x384xf32>, vector<8x384xf32> -> vector<8x384xf32>
    %164 = vector.extract_strided_slice %162 {offsets = [0, 0], sizes = [8, 256], strides = [1, 1]} : vector<8x384xf32> to vector<8x256xf32>
    %165 = vector.extract_strided_slice %163 {offsets = [0, 0], sizes = [8, 256], strides = [1, 1]} : vector<8x384xf32> to vector<8x256xf32>
    %166 = arith.addf %164, %165 : vector<8x256xf32>
    %167 = arith.negf %166 : vector<8x256xf32>
    %168 = math.exp %167 : vector<8x256xf32>
    %cst_41 = arith.constant 1.000000e+00 : f32
    %169 = vector.broadcast %cst_41 : f32 to vector<8x256xf32>
    %170 = arith.addf %169, %168 : vector<8x256xf32>
    %171 = arith.divf %169, %170 : vector<8x256xf32>
    %172 = vector.extract_strided_slice %171 {offsets = [0, 0], sizes = [8, 128], strides = [1, 1]} : vector<8x256xf32> to vector<8x128xf32>
    %173 = vector.extract_strided_slice %171 {offsets = [0, 128], sizes = [8, 128], strides = [1, 1]} : vector<8x256xf32> to vector<8x128xf32>
    %174 = vector.extract_strided_slice %162 {offsets = [0, 256], sizes = [8, 128], strides = [1, 1]} : vector<8x384xf32> to vector<8x128xf32>
    %175 = vector.extract_strided_slice %163 {offsets = [0, 256], sizes = [8, 128], strides = [1, 1]} : vector<8x384xf32> to vector<8x128xf32>
    %176 = arith.addf %175, %7 : vector<8x128xf32>
    %177 = arith.mulf %172, %176 : vector<8x128xf32>
    %178 = arith.addf %174, %177 : vector<8x128xf32>
    %179 = math.tanh %178 : vector<8x128xf32>
    %cst_42 = arith.constant 1.000000e+00 : f32
    %180 = vector.broadcast %cst_42 : f32 to vector<8x128xf32>
    %181 = arith.subf %180, %173 : vector<8x128xf32>
    %182 = arith.mulf %181, %179 : vector<8x128xf32>
    %183 = arith.mulf %173, %137 : vector<8x128xf32>
    %184 = arith.addf %182, %183 : vector<8x128xf32>
    %cst_43 = arith.constant dense<0.000000e+00> : vector<8x384xf32>
    %185 = tpu.matmul %184, %8, %cst_43 {dimension_numbers = #tpu.dot_dimension_numbers<[1], [0], [0], [1], [0, 0, 1, 1], [], []>} : vector<8x128xf32>, vector<128x384xf32>, vector<8x384xf32> -> vector<8x384xf32>
    %186 = arith.addf %185, %12 : vector<8x384xf32>
    %cst_44 = arith.constant dense<0.000000e+00> : vector<8x384xf32>
    %187 = tpu.matmul %161, %9, %cst_44 {dimension_numbers = #tpu.dot_dimension_numbers<[1], [0], [0], [1], [0, 0, 1, 1], [], []>} : vector<8x128xf32>, vector<128x384xf32>, vector<8x384xf32> -> vector<8x384xf32>
    %188 = vector.extract_strided_slice %186 {offsets = [0, 0], sizes = [8, 256], strides = [1, 1]} : vector<8x384xf32> to vector<8x256xf32>
    %189 = vector.extract_strided_slice %187 {offsets = [0, 0], sizes = [8, 256], strides = [1, 1]} : vector<8x384xf32> to vector<8x256xf32>
    %190 = arith.addf %188, %189 : vector<8x256xf32>
    %191 = arith.negf %190 : vector<8x256xf32>
    %192 = math.exp %191 : vector<8x256xf32>
    %cst_45 = arith.constant 1.000000e+00 : f32
    %193 = vector.broadcast %cst_45 : f32 to vector<8x256xf32>
    %194 = arith.addf %193, %192 : vector<8x256xf32>
    %195 = arith.divf %193, %194 : vector<8x256xf32>
    %196 = vector.extract_strided_slice %195 {offsets = [0, 0], sizes = [8, 128], strides = [1, 1]} : vector<8x256xf32> to vector<8x128xf32>
    %197 = vector.extract_strided_slice %195 {offsets = [0, 128], sizes = [8, 128], strides = [1, 1]} : vector<8x256xf32> to vector<8x128xf32>
    %198 = vector.extract_strided_slice %186 {offsets = [0, 256], sizes = [8, 128], strides = [1, 1]} : vector<8x384xf32> to vector<8x128xf32>
    %199 = vector.extract_strided_slice %187 {offsets = [0, 256], sizes = [8, 128], strides = [1, 1]} : vector<8x384xf32> to vector<8x128xf32>
    %200 = arith.addf %199, %15 : vector<8x128xf32>
    %201 = arith.mulf %196, %200 : vector<8x128xf32>
    %202 = arith.addf %198, %201 : vector<8x128xf32>
    %203 = math.tanh %202 : vector<8x128xf32>
    %cst_46 = arith.constant 1.000000e+00 : f32
    %204 = vector.broadcast %cst_46 : f32 to vector<8x128xf32>
    %205 = arith.subf %204, %197 : vector<8x128xf32>
    %206 = arith.mulf %205, %203 : vector<8x128xf32>
    %207 = arith.mulf %197, %161 : vector<8x128xf32>
    %208 = arith.addf %206, %207 : vector<8x128xf32>
    %209 = vector.extract_strided_slice %18 {offsets = [32, 0], sizes = [8, 384], strides = [1, 1]} : vector<64x384xf32> to vector<8x384xf32>
    %cst_47 = arith.constant dense<0.000000e+00> : vector<8x384xf32>
    %210 = tpu.matmul %184, %1, %cst_47 {dimension_numbers = #tpu.dot_dimension_numbers<[1], [0], [0], [1], [0, 0, 1, 1], [], []>} : vector<8x128xf32>, vector<128x384xf32>, vector<8x384xf32> -> vector<8x384xf32>
    %211 = vector.extract_strided_slice %209 {offsets = [0, 0], sizes = [8, 256], strides = [1, 1]} : vector<8x384xf32> to vector<8x256xf32>
    %212 = vector.extract_strided_slice %210 {offsets = [0, 0], sizes = [8, 256], strides = [1, 1]} : vector<8x384xf32> to vector<8x256xf32>
    %213 = arith.addf %211, %212 : vector<8x256xf32>
    %214 = arith.negf %213 : vector<8x256xf32>
    %215 = math.exp %214 : vector<8x256xf32>
    %cst_48 = arith.constant 1.000000e+00 : f32
    %216 = vector.broadcast %cst_48 : f32 to vector<8x256xf32>
    %217 = arith.addf %216, %215 : vector<8x256xf32>
    %218 = arith.divf %216, %217 : vector<8x256xf32>
    %219 = vector.extract_strided_slice %218 {offsets = [0, 0], sizes = [8, 128], strides = [1, 1]} : vector<8x256xf32> to vector<8x128xf32>
    %220 = vector.extract_strided_slice %218 {offsets = [0, 128], sizes = [8, 128], strides = [1, 1]} : vector<8x256xf32> to vector<8x128xf32>
    %221 = vector.extract_strided_slice %209 {offsets = [0, 256], sizes = [8, 128], strides = [1, 1]} : vector<8x384xf32> to vector<8x128xf32>
    %222 = vector.extract_strided_slice %210 {offsets = [0, 256], sizes = [8, 128], strides = [1, 1]} : vector<8x384xf32> to vector<8x128xf32>
    %223 = arith.addf %222, %7 : vector<8x128xf32>
    %224 = arith.mulf %219, %223 : vector<8x128xf32>
    %225 = arith.addf %221, %224 : vector<8x128xf32>
    %226 = math.tanh %225 : vector<8x128xf32>
    %cst_49 = arith.constant 1.000000e+00 : f32
    %227 = vector.broadcast %cst_49 : f32 to vector<8x128xf32>
    %228 = arith.subf %227, %220 : vector<8x128xf32>
    %229 = arith.mulf %228, %226 : vector<8x128xf32>
    %230 = arith.mulf %220, %184 : vector<8x128xf32>
    %231 = arith.addf %229, %230 : vector<8x128xf32>
    %cst_50 = arith.constant dense<0.000000e+00> : vector<8x384xf32>
    %232 = tpu.matmul %231, %8, %cst_50 {dimension_numbers = #tpu.dot_dimension_numbers<[1], [0], [0], [1], [0, 0, 1, 1], [], []>} : vector<8x128xf32>, vector<128x384xf32>, vector<8x384xf32> -> vector<8x384xf32>
    %233 = arith.addf %232, %12 : vector<8x384xf32>
    %cst_51 = arith.constant dense<0.000000e+00> : vector<8x384xf32>
    %234 = tpu.matmul %208, %9, %cst_51 {dimension_numbers = #tpu.dot_dimension_numbers<[1], [0], [0], [1], [0, 0, 1, 1], [], []>} : vector<8x128xf32>, vector<128x384xf32>, vector<8x384xf32> -> vector<8x384xf32>
    %235 = vector.extract_strided_slice %233 {offsets = [0, 0], sizes = [8, 256], strides = [1, 1]} : vector<8x384xf32> to vector<8x256xf32>
    %236 = vector.extract_strided_slice %234 {offsets = [0, 0], sizes = [8, 256], strides = [1, 1]} : vector<8x384xf32> to vector<8x256xf32>
    %237 = arith.addf %235, %236 : vector<8x256xf32>
    %238 = arith.negf %237 : vector<8x256xf32>
    %239 = math.exp %238 : vector<8x256xf32>
    %cst_52 = arith.constant 1.000000e+00 : f32
    %240 = vector.broadcast %cst_52 : f32 to vector<8x256xf32>
    %241 = arith.addf %240, %239 : vector<8x256xf32>
    %242 = arith.divf %240, %241 : vector<8x256xf32>
    %243 = vector.extract_strided_slice %242 {offsets = [0, 0], sizes = [8, 128], strides = [1, 1]} : vector<8x256xf32> to vector<8x128xf32>
    %244 = vector.extract_strided_slice %242 {offsets = [0, 128], sizes = [8, 128], strides = [1, 1]} : vector<8x256xf32> to vector<8x128xf32>
    %245 = vector.extract_strided_slice %233 {offsets = [0, 256], sizes = [8, 128], strides = [1, 1]} : vector<8x384xf32> to vector<8x128xf32>
    %246 = vector.extract_strided_slice %234 {offsets = [0, 256], sizes = [8, 128], strides = [1, 1]} : vector<8x384xf32> to vector<8x128xf32>
    %247 = arith.addf %246, %15 : vector<8x128xf32>
    %248 = arith.mulf %243, %247 : vector<8x128xf32>
    %249 = arith.addf %245, %248 : vector<8x128xf32>
    %250 = math.tanh %249 : vector<8x128xf32>
    %cst_53 = arith.constant 1.000000e+00 : f32
    %251 = vector.broadcast %cst_53 : f32 to vector<8x128xf32>
    %252 = arith.subf %251, %244 : vector<8x128xf32>
    %253 = arith.mulf %252, %250 : vector<8x128xf32>
    %254 = arith.mulf %244, %208 : vector<8x128xf32>
    %255 = arith.addf %253, %254 : vector<8x128xf32>
    %256 = vector.extract_strided_slice %18 {offsets = [40, 0], sizes = [8, 384], strides = [1, 1]} : vector<64x384xf32> to vector<8x384xf32>
    %cst_54 = arith.constant dense<0.000000e+00> : vector<8x384xf32>
    %257 = tpu.matmul %231, %1, %cst_54 {dimension_numbers = #tpu.dot_dimension_numbers<[1], [0], [0], [1], [0, 0, 1, 1], [], []>} : vector<8x128xf32>, vector<128x384xf32>, vector<8x384xf32> -> vector<8x384xf32>
    %258 = vector.extract_strided_slice %256 {offsets = [0, 0], sizes = [8, 256], strides = [1, 1]} : vector<8x384xf32> to vector<8x256xf32>
    %259 = vector.extract_strided_slice %257 {offsets = [0, 0], sizes = [8, 256], strides = [1, 1]} : vector<8x384xf32> to vector<8x256xf32>
    %260 = arith.addf %258, %259 : vector<8x256xf32>
    %261 = arith.negf %260 : vector<8x256xf32>
    %262 = math.exp %261 : vector<8x256xf32>
    %cst_55 = arith.constant 1.000000e+00 : f32
    %263 = vector.broadcast %cst_55 : f32 to vector<8x256xf32>
    %264 = arith.addf %263, %262 : vector<8x256xf32>
    %265 = arith.divf %263, %264 : vector<8x256xf32>
    %266 = vector.extract_strided_slice %265 {offsets = [0, 0], sizes = [8, 128], strides = [1, 1]} : vector<8x256xf32> to vector<8x128xf32>
    %267 = vector.extract_strided_slice %265 {offsets = [0, 128], sizes = [8, 128], strides = [1, 1]} : vector<8x256xf32> to vector<8x128xf32>
    %268 = vector.extract_strided_slice %256 {offsets = [0, 256], sizes = [8, 128], strides = [1, 1]} : vector<8x384xf32> to vector<8x128xf32>
    %269 = vector.extract_strided_slice %257 {offsets = [0, 256], sizes = [8, 128], strides = [1, 1]} : vector<8x384xf32> to vector<8x128xf32>
    %270 = arith.addf %269, %7 : vector<8x128xf32>
    %271 = arith.mulf %266, %270 : vector<8x128xf32>
    %272 = arith.addf %268, %271 : vector<8x128xf32>
    %273 = math.tanh %272 : vector<8x128xf32>
    %cst_56 = arith.constant 1.000000e+00 : f32
    %274 = vector.broadcast %cst_56 : f32 to vector<8x128xf32>
    %275 = arith.subf %274, %267 : vector<8x128xf32>
    %276 = arith.mulf %275, %273 : vector<8x128xf32>
    %277 = arith.mulf %267, %231 : vector<8x128xf32>
    %278 = arith.addf %276, %277 : vector<8x128xf32>
    %cst_57 = arith.constant dense<0.000000e+00> : vector<8x384xf32>
    %279 = tpu.matmul %278, %8, %cst_57 {dimension_numbers = #tpu.dot_dimension_numbers<[1], [0], [0], [1], [0, 0, 1, 1], [], []>} : vector<8x128xf32>, vector<128x384xf32>, vector<8x384xf32> -> vector<8x384xf32>
    %280 = arith.addf %279, %12 : vector<8x384xf32>
    %cst_58 = arith.constant dense<0.000000e+00> : vector<8x384xf32>
    %281 = tpu.matmul %255, %9, %cst_58 {dimension_numbers = #tpu.dot_dimension_numbers<[1], [0], [0], [1], [0, 0, 1, 1], [], []>} : vector<8x128xf32>, vector<128x384xf32>, vector<8x384xf32> -> vector<8x384xf32>
    %282 = vector.extract_strided_slice %280 {offsets = [0, 0], sizes = [8, 256], strides = [1, 1]} : vector<8x384xf32> to vector<8x256xf32>
    %283 = vector.extract_strided_slice %281 {offsets = [0, 0], sizes = [8, 256], strides = [1, 1]} : vector<8x384xf32> to vector<8x256xf32>
    %284 = arith.addf %282, %283 : vector<8x256xf32>
    %285 = arith.negf %284 : vector<8x256xf32>
    %286 = math.exp %285 : vector<8x256xf32>
    %cst_59 = arith.constant 1.000000e+00 : f32
    %287 = vector.broadcast %cst_59 : f32 to vector<8x256xf32>
    %288 = arith.addf %287, %286 : vector<8x256xf32>
    %289 = arith.divf %287, %288 : vector<8x256xf32>
    %290 = vector.extract_strided_slice %289 {offsets = [0, 0], sizes = [8, 128], strides = [1, 1]} : vector<8x256xf32> to vector<8x128xf32>
    %291 = vector.extract_strided_slice %289 {offsets = [0, 128], sizes = [8, 128], strides = [1, 1]} : vector<8x256xf32> to vector<8x128xf32>
    %292 = vector.extract_strided_slice %280 {offsets = [0, 256], sizes = [8, 128], strides = [1, 1]} : vector<8x384xf32> to vector<8x128xf32>
    %293 = vector.extract_strided_slice %281 {offsets = [0, 256], sizes = [8, 128], strides = [1, 1]} : vector<8x384xf32> to vector<8x128xf32>
    %294 = arith.addf %293, %15 : vector<8x128xf32>
    %295 = arith.mulf %290, %294 : vector<8x128xf32>
    %296 = arith.addf %292, %295 : vector<8x128xf32>
    %297 = math.tanh %296 : vector<8x128xf32>
    %cst_60 = arith.constant 1.000000e+00 : f32
    %298 = vector.broadcast %cst_60 : f32 to vector<8x128xf32>
    %299 = arith.subf %298, %291 : vector<8x128xf32>
    %300 = arith.mulf %299, %297 : vector<8x128xf32>
    %301 = arith.mulf %291, %255 : vector<8x128xf32>
    %302 = arith.addf %300, %301 : vector<8x128xf32>
    %303 = vector.extract_strided_slice %18 {offsets = [48, 0], sizes = [8, 384], strides = [1, 1]} : vector<64x384xf32> to vector<8x384xf32>
    %cst_61 = arith.constant dense<0.000000e+00> : vector<8x384xf32>
    %304 = tpu.matmul %278, %1, %cst_61 {dimension_numbers = #tpu.dot_dimension_numbers<[1], [0], [0], [1], [0, 0, 1, 1], [], []>} : vector<8x128xf32>, vector<128x384xf32>, vector<8x384xf32> -> vector<8x384xf32>
    %305 = vector.extract_strided_slice %303 {offsets = [0, 0], sizes = [8, 256], strides = [1, 1]} : vector<8x384xf32> to vector<8x256xf32>
    %306 = vector.extract_strided_slice %304 {offsets = [0, 0], sizes = [8, 256], strides = [1, 1]} : vector<8x384xf32> to vector<8x256xf32>
    %307 = arith.addf %305, %306 : vector<8x256xf32>
    %308 = arith.negf %307 : vector<8x256xf32>
    %309 = math.exp %308 : vector<8x256xf32>
    %cst_62 = arith.constant 1.000000e+00 : f32
    %310 = vector.broadcast %cst_62 : f32 to vector<8x256xf32>
    %311 = arith.addf %310, %309 : vector<8x256xf32>
    %312 = arith.divf %310, %311 : vector<8x256xf32>
    %313 = vector.extract_strided_slice %312 {offsets = [0, 0], sizes = [8, 128], strides = [1, 1]} : vector<8x256xf32> to vector<8x128xf32>
    %314 = vector.extract_strided_slice %312 {offsets = [0, 128], sizes = [8, 128], strides = [1, 1]} : vector<8x256xf32> to vector<8x128xf32>
    %315 = vector.extract_strided_slice %303 {offsets = [0, 256], sizes = [8, 128], strides = [1, 1]} : vector<8x384xf32> to vector<8x128xf32>
    %316 = vector.extract_strided_slice %304 {offsets = [0, 256], sizes = [8, 128], strides = [1, 1]} : vector<8x384xf32> to vector<8x128xf32>
    %317 = arith.addf %316, %7 : vector<8x128xf32>
    %318 = arith.mulf %313, %317 : vector<8x128xf32>
    %319 = arith.addf %315, %318 : vector<8x128xf32>
    %320 = math.tanh %319 : vector<8x128xf32>
    %cst_63 = arith.constant 1.000000e+00 : f32
    %321 = vector.broadcast %cst_63 : f32 to vector<8x128xf32>
    %322 = arith.subf %321, %314 : vector<8x128xf32>
    %323 = arith.mulf %322, %320 : vector<8x128xf32>
    %324 = arith.mulf %314, %278 : vector<8x128xf32>
    %325 = arith.addf %323, %324 : vector<8x128xf32>
    %cst_64 = arith.constant dense<0.000000e+00> : vector<8x384xf32>
    %326 = tpu.matmul %325, %8, %cst_64 {dimension_numbers = #tpu.dot_dimension_numbers<[1], [0], [0], [1], [0, 0, 1, 1], [], []>} : vector<8x128xf32>, vector<128x384xf32>, vector<8x384xf32> -> vector<8x384xf32>
    %327 = arith.addf %326, %12 : vector<8x384xf32>
    %cst_65 = arith.constant dense<0.000000e+00> : vector<8x384xf32>
    %328 = tpu.matmul %302, %9, %cst_65 {dimension_numbers = #tpu.dot_dimension_numbers<[1], [0], [0], [1], [0, 0, 1, 1], [], []>} : vector<8x128xf32>, vector<128x384xf32>, vector<8x384xf32> -> vector<8x384xf32>
    %329 = vector.extract_strided_slice %327 {offsets = [0, 0], sizes = [8, 256], strides = [1, 1]} : vector<8x384xf32> to vector<8x256xf32>
    %330 = vector.extract_strided_slice %328 {offsets = [0, 0], sizes = [8, 256], strides = [1, 1]} : vector<8x384xf32> to vector<8x256xf32>
    %331 = arith.addf %329, %330 : vector<8x256xf32>
    %332 = arith.negf %331 : vector<8x256xf32>
    %333 = math.exp %332 : vector<8x256xf32>
    %cst_66 = arith.constant 1.000000e+00 : f32
    %334 = vector.broadcast %cst_66 : f32 to vector<8x256xf32>
    %335 = arith.addf %334, %333 : vector<8x256xf32>
    %336 = arith.divf %334, %335 : vector<8x256xf32>
    %337 = vector.extract_strided_slice %336 {offsets = [0, 0], sizes = [8, 128], strides = [1, 1]} : vector<8x256xf32> to vector<8x128xf32>
    %338 = vector.extract_strided_slice %336 {offsets = [0, 128], sizes = [8, 128], strides = [1, 1]} : vector<8x256xf32> to vector<8x128xf32>
    %339 = vector.extract_strided_slice %327 {offsets = [0, 256], sizes = [8, 128], strides = [1, 1]} : vector<8x384xf32> to vector<8x128xf32>
    %340 = vector.extract_strided_slice %328 {offsets = [0, 256], sizes = [8, 128], strides = [1, 1]} : vector<8x384xf32> to vector<8x128xf32>
    %341 = arith.addf %340, %15 : vector<8x128xf32>
    %342 = arith.mulf %337, %341 : vector<8x128xf32>
    %343 = arith.addf %339, %342 : vector<8x128xf32>
    %344 = math.tanh %343 : vector<8x128xf32>
    %cst_67 = arith.constant 1.000000e+00 : f32
    %345 = vector.broadcast %cst_67 : f32 to vector<8x128xf32>
    %346 = arith.subf %345, %338 : vector<8x128xf32>
    %347 = arith.mulf %346, %344 : vector<8x128xf32>
    %348 = arith.mulf %338, %302 : vector<8x128xf32>
    %349 = arith.addf %347, %348 : vector<8x128xf32>
    %350 = vector.extract_strided_slice %18 {offsets = [56, 0], sizes = [8, 384], strides = [1, 1]} : vector<64x384xf32> to vector<8x384xf32>
    %cst_68 = arith.constant dense<0.000000e+00> : vector<8x384xf32>
    %351 = tpu.matmul %325, %1, %cst_68 {dimension_numbers = #tpu.dot_dimension_numbers<[1], [0], [0], [1], [0, 0, 1, 1], [], []>} : vector<8x128xf32>, vector<128x384xf32>, vector<8x384xf32> -> vector<8x384xf32>
    %352 = vector.extract_strided_slice %350 {offsets = [0, 0], sizes = [8, 256], strides = [1, 1]} : vector<8x384xf32> to vector<8x256xf32>
    %353 = vector.extract_strided_slice %351 {offsets = [0, 0], sizes = [8, 256], strides = [1, 1]} : vector<8x384xf32> to vector<8x256xf32>
    %354 = arith.addf %352, %353 : vector<8x256xf32>
    %355 = arith.negf %354 : vector<8x256xf32>
    %356 = math.exp %355 : vector<8x256xf32>
    %cst_69 = arith.constant 1.000000e+00 : f32
    %357 = vector.broadcast %cst_69 : f32 to vector<8x256xf32>
    %358 = arith.addf %357, %356 : vector<8x256xf32>
    %359 = arith.divf %357, %358 : vector<8x256xf32>
    %360 = vector.extract_strided_slice %359 {offsets = [0, 0], sizes = [8, 128], strides = [1, 1]} : vector<8x256xf32> to vector<8x128xf32>
    %361 = vector.extract_strided_slice %359 {offsets = [0, 128], sizes = [8, 128], strides = [1, 1]} : vector<8x256xf32> to vector<8x128xf32>
    %362 = vector.extract_strided_slice %350 {offsets = [0, 256], sizes = [8, 128], strides = [1, 1]} : vector<8x384xf32> to vector<8x128xf32>
    %363 = vector.extract_strided_slice %351 {offsets = [0, 256], sizes = [8, 128], strides = [1, 1]} : vector<8x384xf32> to vector<8x128xf32>
    %364 = arith.addf %363, %7 : vector<8x128xf32>
    %365 = arith.mulf %360, %364 : vector<8x128xf32>
    %366 = arith.addf %362, %365 : vector<8x128xf32>
    %367 = math.tanh %366 : vector<8x128xf32>
    %cst_70 = arith.constant 1.000000e+00 : f32
    %368 = vector.broadcast %cst_70 : f32 to vector<8x128xf32>
    %369 = arith.subf %368, %361 : vector<8x128xf32>
    %370 = arith.mulf %369, %367 : vector<8x128xf32>
    %371 = arith.mulf %361, %325 : vector<8x128xf32>
    %372 = arith.addf %370, %371 : vector<8x128xf32>
    %cst_71 = arith.constant dense<0.000000e+00> : vector<8x384xf32>
    %373 = tpu.matmul %372, %8, %cst_71 {dimension_numbers = #tpu.dot_dimension_numbers<[1], [0], [0], [1], [0, 0, 1, 1], [], []>} : vector<8x128xf32>, vector<128x384xf32>, vector<8x384xf32> -> vector<8x384xf32>
    %374 = arith.addf %373, %12 : vector<8x384xf32>
    %cst_72 = arith.constant dense<0.000000e+00> : vector<8x384xf32>
    %375 = tpu.matmul %349, %9, %cst_72 {dimension_numbers = #tpu.dot_dimension_numbers<[1], [0], [0], [1], [0, 0, 1, 1], [], []>} : vector<8x128xf32>, vector<128x384xf32>, vector<8x384xf32> -> vector<8x384xf32>
    %376 = vector.extract_strided_slice %374 {offsets = [0, 0], sizes = [8, 256], strides = [1, 1]} : vector<8x384xf32> to vector<8x256xf32>
    %377 = vector.extract_strided_slice %375 {offsets = [0, 0], sizes = [8, 256], strides = [1, 1]} : vector<8x384xf32> to vector<8x256xf32>
    %378 = arith.addf %376, %377 : vector<8x256xf32>
    %379 = arith.negf %378 : vector<8x256xf32>
    %380 = math.exp %379 : vector<8x256xf32>
    %cst_73 = arith.constant 1.000000e+00 : f32
    %381 = vector.broadcast %cst_73 : f32 to vector<8x256xf32>
    %382 = arith.addf %381, %380 : vector<8x256xf32>
    %383 = arith.divf %381, %382 : vector<8x256xf32>
    %384 = vector.extract_strided_slice %383 {offsets = [0, 0], sizes = [8, 128], strides = [1, 1]} : vector<8x256xf32> to vector<8x128xf32>
    %385 = vector.extract_strided_slice %383 {offsets = [0, 128], sizes = [8, 128], strides = [1, 1]} : vector<8x256xf32> to vector<8x128xf32>
    %386 = vector.extract_strided_slice %374 {offsets = [0, 256], sizes = [8, 128], strides = [1, 1]} : vector<8x384xf32> to vector<8x128xf32>
    %387 = vector.extract_strided_slice %375 {offsets = [0, 256], sizes = [8, 128], strides = [1, 1]} : vector<8x384xf32> to vector<8x128xf32>
    %388 = arith.addf %387, %15 : vector<8x128xf32>
    %389 = arith.mulf %384, %388 : vector<8x128xf32>
    %390 = arith.addf %386, %389 : vector<8x128xf32>
    %391 = math.tanh %390 : vector<8x128xf32>
    %cst_74 = arith.constant 1.000000e+00 : f32
    %392 = vector.broadcast %cst_74 : f32 to vector<8x128xf32>
    %393 = arith.subf %392, %385 : vector<8x128xf32>
    %394 = arith.mulf %393, %391 : vector<8x128xf32>
    %395 = arith.mulf %385, %349 : vector<8x128xf32>
    %396 = arith.addf %394, %395 : vector<8x128xf32>
    %397 = vector.shape_cast %67 : vector<8x128xf32> to vector<1x8x128xf32>
    %398 = vector.shape_cast %114 : vector<8x128xf32> to vector<1x8x128xf32>
    %399 = vector.shape_cast %161 : vector<8x128xf32> to vector<1x8x128xf32>
    %400 = vector.shape_cast %208 : vector<8x128xf32> to vector<1x8x128xf32>
    %401 = vector.shape_cast %255 : vector<8x128xf32> to vector<1x8x128xf32>
    %402 = vector.shape_cast %302 : vector<8x128xf32> to vector<1x8x128xf32>
    %403 = vector.shape_cast %349 : vector<8x128xf32> to vector<1x8x128xf32>
    %404 = vector.shape_cast %396 : vector<8x128xf32> to vector<1x8x128xf32>
    %405 = tpu.concatenate %397, %398, %399, %400, %401, %402, %403, %404 in 0 : vector<1x8x128xf32>, vector<1x8x128xf32>, vector<1x8x128xf32>, vector<1x8x128xf32>, vector<1x8x128xf32>, vector<1x8x128xf32>, vector<1x8x128xf32>, vector<1x8x128xf32> -> vector<8x8x128xf32>
    %406 = vector.extract_strided_slice %405 {offsets = [0, 0, 0], sizes = [8, 1, 128], strides = [1, 1, 1]} : vector<8x8x128xf32> to vector<8x1x128xf32>
    %407 = vector.shape_cast %406 : vector<8x1x128xf32> to vector<8x128xf32>
    %c0_75 = arith.constant 0 : index
    %c0_76 = arith.constant 0 : index
    %408 = vector.load %arg9[%c0_75, %c0_76] : memref<128x8xf32, #tpu.memory_space<vmem>>, vector<128x8xf32>
    %cst_77 = arith.constant dense<0.000000e+00> : vector<8x8xf32>
    %409 = tpu.matmul %407, %408, %cst_77 {dimension_numbers = #tpu.dot_dimension_numbers<[1], [0], [0], [1], [0, 0, 1, 1], [], []>} : vector<8x128xf32>, vector<128x8xf32>, vector<8x8xf32> -> vector<8x8xf32>
    %c0_78 = arith.constant 0 : index
    %c0_79 = arith.constant 0 : index
    %410 = vector.load %arg10[%c0_78, %c0_79] : memref<1x8xf32, #tpu.memory_space<vmem>>, vector<1x8xf32>
    %411 = vector.broadcast %410 : vector<1x8xf32> to vector<8x8xf32>
    %412 = arith.addf %409, %411 : vector<8x8xf32>
    %c0_80 = arith.constant 0 : index
    %c0_81 = arith.constant 0 : index
    %413 = vector.load %arg11[%c0_80, %c0_81] : memref<8x8xf32, #tpu.memory_space<vmem>>, vector<8x8xf32>
    tpu.vector_store %arg11[%c0_80, %c0_81], %412 {strides = array<i32>} : memref<8x8xf32, #tpu.memory_space<vmem>>, vector<8x8xf32>,
    return
  }
}

</mosaic_0001>

<bundles_post_ra>
// kernel: lstm_forward.1
= control target key start
LH: loop header
LB: loop body
LE: loop exit
PB: predicated region body
PF: predicated region fallthrough
CT: control target
= control target key end

     0   :  { %v9229_v5 = vmov 0.0   ;;  %vm245_vm0 = vcmask 130048   ;;  %v9231_v48 = vmov 0.0|0.0   ;;  %s9217_s0 = inlined_call_operand.vmem [shape: f32[64,16], index: 0, kind: input, shape index: {}]   ;;  %s9218_s1 = inlined_call_operand.vmem [shape: f32[16,384], index: 1, kind: input, shape index: {}]   ;;  %s9219_s2 = inlined_call_operand.vmem [shape: f32[128,384], index: 2, kind: input, shape index: {}]   ;;  %s9220_s3 = inlined_call_operand.vmem [shape: f32[1,384], index: 3, kind: input, shape index: {}]   ;;  %s9221_s4 = inlined_call_operand.vmem [shape: f32[1,128], index: 4, kind: input, shape index: {}]   ;;  %s9222_s5 = inlined_call_operand.vmem [shape: f32[128,384], index: 5, kind: input, shape index: {}]   ;;  %s9223_s6 = inlined_call_operand.vmem [shape: f32[128,384], index: 6, kind: input, shape index: {}]   ;;  %s9224_s7 = inlined_call_operand.vmem [shape: f32[1,384], index: 7, kind: input, shape index: {}]   ;;  %s9225_s8 = inlined_call_operand.vmem [shape: f32[1,128], index: 8, kind: input, shape index: {}]   ;;  %s9226_s9 = inlined_call_operand.vmem [shape: f32[128,8], index: 9, kind: input, shape index: {}]   ;;  %s9227_s10 = inlined_call_operand.vmem [shape: f32[1,8], index: 10, kind: input, shape index: {}]   ;;  %s9228_s11 = inlined_call_operand.hbm [shape: f32[8,8], index: 11, kind: output, shape index: {}]  }
   0x1   :  { %v40_v0 = vld [vmem:[%s9218_s1 + $0x8] sm:$0xff]  ;;  %v43_v1 = vld [vmem:[%s9218_s1 + $0x20] sm:$0xff]  ;;  %v42_v4 = vld [vmem:[%s9218_s1 + $0x18] sm:$0xff]  ;;  %334 = vmatprep.mubr.f32.mxu0 %v9229_v5 }
   0x2   :  { %v39_v2 = vld [vmem:[%s9218_s1] sm:$0xff]  ;;  %v5740_v3 = vpack.c.bf16 %v43_v1, %v40_v0  ;;  %v46_v7 = vld [vmem:[%s9219_s2 + $0x8] sm:$0xff]  ;;  %v48_v11 = vld [vmem:[%s9219_s2 + $0x18] sm:$0xff] }
   0x3   :  { %v237_v6 = vld [vmem:[%s9217_s0] sm:$0xff]  ;;  %v5742_v8 = vpack.c.bf16 %v42_v4, %v39_v2  ;;  %v52_v13 = vld [vmem:[%s9219_s2 + $0x38] sm:$0xff]  ;;  %v55_v14 = vld [vmem:[%s9219_s2 + $0x50] sm:$0xff] }
   0x4   :  { %v49_v9 = vld [vmem:[%s9219_s2 + $0x20] sm:$0xff]  ;;  %4853 = vmatprep.mubr.msk.f32.mxu1 %vm245_vm0, %v237_v6  ;;  %5741 = vmatprep.subr.bf16.mxu0 %v5740_v3  ;;  %v7475_v16 = vpack.c.bf16 %v55_v14, %v52_v13  ;;  %v51_v17 = vld [vmem:[%s9219_s2 + $0x30] sm:$0xff]  ;;  %v54_v18 = vld [vmem:[%s9219_s2 + $0x48] sm:$0xff] }
   0x5   :  { %v45_v10 = vld [vmem:[%s9219_s2] sm:$0xff]  ;;  %v7464_v12 = vpack.c.bf16 %v49_v9, %v46_v7  ;;  %5743 = vmatpush1.bf16.msra.mxu0 %v5742_v8  ;;  %v58_v19 = vld [vmem:[%s9219_s2 + $0x68] sm:$0xff]  ;;  %v7495_v22 = vpack.c.bf16 %v54_v18, %v51_v17  ;;  %v60_v25 = vld [vmem:[%s9219_s2 + $0x78] sm:$0xff] }
   0x6   :  { %v7472_v15 = vpack.c.bf16 %v48_v11, %v45_v10  ;;  %v61_v20 = vld [vmem:[%s9219_s2 + $0x80] sm:$0xff]  ;;  %v238_v21 = vld [vmem:[%s9217_s0 + $0x8] sm:$0xff]  ;;  %v64_v26 = vld [vmem:[%s9219_s2 + $0x98] sm:$0xff] }
   0x7   :  { %5749 = vmatprep.subr.bf16.mxu0 %v7464_v12  ;;  %v7498_v23 = vpack.c.bf16 %v61_v20, %v58_v19  ;;  %v57_v24 = vld [vmem:[%s9219_s2 + $0x60] sm:$0xff]  ;;  %v67_v27 = vld [vmem:[%s9219_s2 + $0xb0] sm:$0xff]  ;;  %v44_v29 = vld [vmem:[%s9218_s1 + $0x28] sm:$0xff] }
   0x8   :  { %4365 = vmatmul.mubr.msk.f32.vlgmr.msra.gmra.mrb[0].mxu0 %vm245_vm0, %v237_v6  ;;  %v41_v28 = vld [vmem:[%s9218_s1 + $0x10] sm:$0xff]  ;;  %v7524_v31 = vpack.c.bf16 %v60_v25, %v57_v24  ;;  %v7527_v33 = vpack.c.bf16 %v67_v27, %v64_v26  ;;  %v66_v35 = vld [vmem:[%s9219_s2 + $0xa8] sm:$0xff]  ;;  %v73_v38 = vld [vmem:[%s9219_s2 + $0xe0] sm:$0xff] }
   0x9   :  { %5751 = vmatpush1.bf16.msra.mxu0 %v7472_v15  ;;  %340 = vmatprep.mubr.f32.mxu0 %v9229_v5  ;;  %v239_v30 = vld [vmem:[%s9217_s0 + $0x10] sm:$0xff]  ;;  %v5744_v32 = vpack.c.bf16 %v44_v29, %v41_v28  ;;  %v70_v37 = vld [vmem:[%s9219_s2 + $0xc8] sm:$0xff]  ;;  %v240_v41 = vld [vmem:[%s9217_s0 + $0x18] sm:$0xff] }
   0xa   :  { %5753 = vmatprep.subr.bf16.mxu0 %v7475_v16  ;;  %v63_v34 = vld [vmem:[%s9219_s2 + $0x90] sm:$0xff]  ;;  %v50_v39 = vld [vmem:[%s9219_s2 + $0x28] sm:$0xff]  ;;  %v53_v43 = vld [vmem:[%s9219_s2 + $0x40] sm:$0xff]  ;;  %v7564_v45 = vpack.c.bf16 %v73_v38, %v70_v37 }
   0xb   :  { %v47_v36 = vld [vmem:[%s9219_s2 + $0x10] sm:$0xff]  ;;  %5745 = vmatprep.subr.bf16.mxu1 %v5744_v32  ;;  %v7555_v42 = vpack.c.bf16 %v66_v35, %v63_v34  ;;  %v56_v44 = vld [vmem:[%s9219_s2 + $0x58] sm:$0xff]  ;;  %v69_v46 = vld [vmem:[%s9219_s2 + $0xc0] sm:$0xff] }
   0xc   :  { %4366 = vmatmul.mubr.msk.f32.gmra.mrb[2].mxu0 %vm245_vm0, %v238_v21  ;;  %5747 = vmatpush3.bf16.msra.mxu1 %v5744_v32  ;;  %v7548_v40 = vpack.c.bf16 %v50_v39, %v47_v36  ;;  %v72_v47 = vld [vmem:[%s9219_s2 + $0xd8] sm:$0xff]  ;;  %v79_v50 = vld [vmem:[%s9219_s2 + $0x110] sm:$0xff]  ;;  %v7582_v51 = vpack.c.bf16 %v56_v44, %v53_v43  ;;  %v241_v52 = vld [vmem:[%s9217_s0 + $0x20] sm:$0xff] }
   0xd   :  { %5755 = vmatpush1.bf16.msra.mxu0 %v7495_v22  ;;  %346 = vmatprep.mubr.f32.mxu0 %v9229_v5  ;;  %v76_v49 = vld [vmem:[%s9219_s2 + $0xf8] sm:$0xff]  ;;  %v7589_v53 = vpack.c.bf16 %v72_v47, %v69_v46  ;;  %v59_v54 = vld [vmem:[%s9219_s2 + $0x70] sm:$0xff]  ;;  %v62_v55 = vld [vmem:[%s9219_s2 + $0x88] sm:$0xff] }
   0xe   :  { %5757 = vmatprep.subr.bf16.mxu0 %v7498_v23  ;;  %5780 = vmatprep.subr.bf16.mxu1 %v9231_v48  ;;  %v7598_v56 = vpack.c.bf16 %v79_v50, %v76_v49  ;;  %v75_v57 = vld [vmem:[%s9219_s2 + $0xf0] sm:$0xff]  ;;  %v78_v58 = vld [vmem:[%s9219_s2 + $0x108] sm:$0xff] }
   0xf   :  { %4854 = vmatmul.mubr.msk.f32.vlgmr.msra.gmra.mrb[0].mxu1 %vm245_vm0, %v238_v21  ;;  %9358 = vst [vmem:[#allocation5_spill] sm:$0xff] %v7589_v53 }
  0x10   :  { %4367 = vmatmul.mubr.msk.f32.gmra.mrb[4].mxu0 %vm245_vm0, %v239_v30  ;;  %5782 = vmatpush3.bf16.msra.mxu1 %v7548_v40  ;;  %9359 = vst [vmem:[#allocation6_spill] sm:$0xff] %v7598_v56 }
  0x11   :  { %5759 = vmatpush1.bf16.msra.mxu0 %v7524_v31  ;;  %352 = vmatprep.mubr.f32.mxu0 %v9229_v5 }
  0x12   :  { %5761 = vmatprep.subr.bf16.mxu0 %v7527_v33  ;;  %5783 = vmatprep.subr.bf16.mxu1 %v9231_v48 }
  0x14   :  { %4368 = vmatmul.mubr.msk.f32.gmra.mrb[6].mxu0 %vm245_vm0, %v240_v41 }
  0x15   :  { %5763 = vmatpush1.bf16.msra.mxu0 %v7555_v42  ;;  %358 = vmatprep.mubr.f32.mxu0 %v9229_v5 }
  0x16   :  { %5765 = vmatprep.subr.bf16.mxu0 %v7564_v45 }
  0x17   :  { %16 = vsyncpa [#allocation3], 0  ;;  %v82_v59 = vld [vmem:[%s9219_s2 + $0x128] sm:$0xff]  ;;  %v85_v60 = vld [vmem:[%s9219_s2 + $0x140] sm:$0xff]  ;;  %4856 = vmatprep.mubr.msk.f32.mxu1 %vm245_vm0, %v239_v30  ;;  %5785 = vmatpush3.bf16.msra.mxu1 %v7582_v51  ;;  %v7616_v61 = vpack.c.bf16 %v62_v55, %v59_v54  ;;  %v7623_v63 = vpack.c.bf16 %v78_v58, %v75_v57  ;;  %vm7373_vm1 = vmmov 0   ;;  %vm4256_vm2 = vcmask 1041409  }
  0x18   :  { %4369 = vmatmul.mubr.msk.f32.gmra.mrb[8].mxu0 %vm245_vm0, %v241_v52  ;;  %v242_v62 = vld [vmem:[%s9217_s0 + $0x28] sm:$0xff]  ;;  %v65_v0 = vld [vmem:[%s9219_s2 + $0xa0] sm:$0xff]  ;;  %v68_v1 = vld [vmem:[%s9219_s2 + $0xb8] sm:$0xff]  ;;  %v7632_v2 = vpack.c.bf16 %v85_v60, %v82_v59  ;;  %5786 = vmatprep.subr.bf16.mxu1 %v9231_v48  ;;  %vm4259_vm3 = vcmask 1042434   ;;  %vm4262_vm4 = vcmask 1043459   ;;  %vm4265_vm5 = vcmask 1044484  }
  0x19   :  { %5767 = vmatpush1.bf16.msra.mxu0 %v7589_v53  ;;  %364 = vmatprep.mubr.f32.mxu0 %v9229_v5  ;;  %9360 = vst [vmem:[#allocation7_spill] sm:$0xff] %v7623_v63  ;;  %v81_v3 = vld [vmem:[%s9219_s2 + $0x120] sm:$0xff]  ;;  %v84_v4 = vld [vmem:[%s9219_s2 + $0x138] sm:$0xff]  ;;  %v91_v7 = vld [vmem:[%s9219_s2 + $0x170] sm:$0xff]  ;;  %v7650_v8 = vpack.c.bf16 %v68_v1, %v65_v0  ;;  %vm4268_vm6 = vcmask 1045509   ;;  %vm4271_vm7 = vcmask 1046534  }
  0x1a   :  { %5769 = vmatprep.subr.bf16.mxu0 %v7598_v56  ;;  %9361 = vst [vmem:[#allocation8_spill] sm:$0xff] %v7632_v2  ;;  %v88_v6 = vld [vmem:[%s9219_s2 + $0x158] sm:$0xff]  ;;  %4857 = vmatmul.mubr.msk.f32.gmra.mrb[2].mxu1 %vm245_vm0, %v240_v41  ;;  %v243_v9 = vld [vmem:[%s9217_s0 + $0x30] sm:$0xff]  ;;  %v7657_v10 = vpack.c.bf16 %v84_v4, %v81_v3  ;;  %v74_v13 = vld [vmem:[%s9219_s2 + $0xe8] sm:$0xff]  ;;  %vm4274_vm8 = vcmask 1047559   ;;  %s7374_s21 = smov [#allocation2]  }
  0x1b   :  { %5788 = vmatpush3.bf16.msra.mxu1 %v7616_v61  ;;  %v71_v11 = vld [vmem:[%s9219_s2 + $0xd0] sm:$0xff]  ;;  %v7666_v14 = vpack.c.bf16 %v91_v7, %v88_v6  ;;  %v90_v18 = vld [vmem:[%s9219_s2 + $0x168] sm:$0xff]  ;;  %4859 = vmatprep.mubr.msk.f32.mxu1 %vm245_vm0, %v241_v52  ;;  %v244_v20 = vld [vmem:[%s9217_s0 + $0x38] sm:$0xff]  ;;  %vm4347_vm9 = vcmask 64512  }
  0x1c   :  { %4370 = vmatmul.mubr.msk.f32.gmra.mrb[10].mxu0 %vm245_vm0, %v242_v62  ;;  %9362 = vst [vmem:[#allocation9_spill] sm:$0xff] %v7657_v10  ;;  %v87_v17 = vld [vmem:[%s9219_s2 + $0x150] sm:$0xff]  ;;  %5789 = vmatprep.subr.bf16.mxu1 %v9231_v48  ;;  %v7678_v19 = vpack.c.bf16 %v74_v13, %v71_v11  ;;  %v77_v24 = vld [vmem:[%s9219_s2 + $0x100] sm:$0xff]  ;;  %v80_v25 = vld [vmem:[%s9219_s2 + $0x118] sm:$0xff] }
  0x1d   :  { %5771 = vmatpush1.bf16.msra.mxu0 %v7623_v63  ;;  %370 = vmatprep.mubr.f32.mxu0 %v9229_v5  ;;  %9363 = vst [vmem:[#allocation10_spill] sm:$0xff] %v7666_v14  ;;  %v7685_v21 = vpack.c.bf16 %v90_v18, %v87_v17  ;;  %v7698_v26 = vpack.c.bf16 %v80_v25, %v77_v24  ;;  %v83_v27 = vld [vmem:[%s9219_s2 + $0x130] sm:$0xff]  ;;  %v86_v28 = vld [vmem:[%s9219_s2 + $0x148] sm:$0xff]  ;;  %v89_v30 = vld [vmem:[%s9219_s2 + $0x160] sm:$0xff] }
  0x1e   :  { %5773 = vmatprep.subr.bf16.mxu0 %v7632_v2  ;;  %9364 = vst [vmem:[#allocation11_spill] sm:$0xff] %v7678_v19  ;;  %4860 = vmatmul.mubr.msk.f32.gmra.mrb[4].mxu1 %vm245_vm0, %v242_v62  ;;  %v7713_v29 = vpack.c.bf16 %v86_v28, %v83_v27  ;;  %v92_v32 = vld [vmem:[%s9219_s2 + $0x178] sm:$0xff]  ;;  %v118_v35 = vld [vmem:[%s9222_s5 + $0x8] sm:$0xff]  ;;  %v121_v36 = vld [vmem:[%s9222_s5 + $0x20] sm:$0xff]  ;;  %s4355_s2 = sshll.u32 %s7374_s21, 4  ;;  %s4356_s2 = int_to_ptr.vmem [resolvable:$true] %s4355_s2 }
  0x1f   :  { %5791 = vmatpush3.bf16.msra.mxu1 %v7650_v8  ;;  %9365 = vst [vmem:[#allocation12_spill] sm:$0xff] %v7685_v21  ;;  %9366 = vst [vmem:[#allocation13_spill] sm:$0xff] %v7698_v26  ;;  %4862 = vmatprep.mubr.msk.f32.mxu1 %vm245_vm0, %v243_v9  ;;  %v7726_v34 = vpack.c.bf16 %v92_v32, %v89_v30  ;;  %v7740_v37 = vpack.c.bf16 %v121_v36, %v118_v35  ;;  %v117_v38 = vld [vmem:[%s9222_s5] sm:$0xff]  ;;  %v120_v39 = vld [vmem:[%s9222_s5 + $0x18] sm:$0xff]  ;;  %s7347_s22 = scalar_lea.vmem %s4356_s2, 128  ;;  %p7352_p1 = scmp.lt.s32.totalorder %s4356_s2, %s4356_s2 }
  0x20   :  { %4371 = vmatmul.mubr.msk.f32.gmra.mrb[12].mxu0 %vm245_vm0, %v243_v9  ;;  %5792 = vmatprep.subr.bf16.mxu1 %v9231_v48  ;;  %9367 = vst [vmem:[#allocation14_spill] sm:$0xff] %v7713_v29  ;;  %v119_v41 = vld [vmem:[%s9222_s5 + $0x10] sm:$0xff]  ;;  %v7751_v43 = vpack.c.bf16 %v120_v39, %v117_v38  ;;  %v122_v44 = vld [vmem:[%s9222_s5 + $0x28] sm:$0xff]  ;;  %v124_v47 = vld [vmem:[%s9222_s5 + $0x38] sm:$0xff]  ;;  %p7348_p0 = scmp.ne.s32.totalorder %s4356_s2, %s7347_s22  ;;  %p7353_p2 = scmp.lt.s32.totalorder %s7347_s22, %s7347_s22 }
  0x21   :  { %5775 = vmatpush1.bf16.msra.mxu0 %v7657_v10  ;;  %376 = vmatprep.mubr.f32.mxu0 %v9229_v5  ;;  %9368 = vst [vmem:[#allocation15_spill] sm:$0xff] %v7726_v34  ;;  %9369 = vst [vmem:[#allocation16_spill] sm:$0xff] %v7740_v37  ;;  %v7757_v46 = vpack.c.bf16 %v122_v44, %v119_v41  ;;  %v127_v49 = vld [vmem:[%s9222_s5 + $0x50] sm:$0xff]  ;;  %v126_v54 = vld [vmem:[%s9222_s5 + $0x48] sm:$0xff] }
  0x22   :  { %5777 = vmatprep.subr.bf16.mxu0 %v7666_v14  ;;  %4863 = vmatmul.mubr.msk.f32.gmra.mrb[6].mxu1 %vm245_vm0, %v244_v20  ;;  %9370 = vst [vmem:[#allocation17_spill] sm:$0xff] %v7751_v43  ;;  %v7767_v50 = vpack.c.bf16 %v127_v49, %v124_v47  ;;  %v123_v52 = vld [vmem:[%s9222_s5 + $0x30] sm:$0xff]  ;;  %v125_v55 = vld [vmem:[%s9222_s5 + $0x40] sm:$0xff]  ;;  %v128_v58 = vld [vmem:[%s9222_s5 + $0x58] sm:$0xff]  ;;  %p7354_p3 = por %p7353_p2, %p7352_p1 }
  0x23   :  { %5794 = vmatpush3.bf16.msra.mxu1 %v7678_v19  ;;  %4897 = vmatprep.mubr.msk.f32.mxu1 %vm7373_vm1, %v9229_v5  ;;  %9371 = vst [vmem:[#allocation18_spill] sm:$0xff] %v7757_v46  ;;  %v7779_v57 = vpack.c.bf16 %v126_v54, %v123_v52  ;;  %v7785_v59 = vpack.c.bf16 %v128_v58, %v125_v55  ;;  %v130_v60 = vld [vmem:[%s9222_s5 + $0x68] sm:$0xff]  ;;  %v133_v62 = vld [vmem:[%s9222_s5 + $0x80] sm:$0xff]  ;;  %v132_v3 = vld [vmem:[%s9222_s5 + $0x78] sm:$0xff] }
  0x24   :  { %4372 = vmatmul.mubr.msk.f32.gmra.mrb[14].mxu0 %vm245_vm0, %v244_v20  ;;  %5795 = vmatprep.subr.bf16.mxu1 %v9231_v48  ;;  %9372 = vst [vmem:[#allocation19_spill] sm:$0xff] %v7767_v50  ;;  %v7795_v0 = vpack.c.bf16 %v133_v62, %v130_v60  ;;  %v129_v1 = vld [vmem:[%s9222_s5 + $0x60] sm:$0xff]  ;;  %v131_v4 = vld [vmem:[%s9222_s5 + $0x70] sm:$0xff]  ;;  %v134_v7 = vld [vmem:[%s9222_s5 + $0x88] sm:$0xff]  ;;  %p7355_p4 = pnand %p7354_p3, %p7348_p0 }
  0x25   :  { %5779 = vmatpush1.bf16.msra.mxu0 %v7685_v21  ;;  %552 = vmatprep.mubr.f32.mxu0 %v9229_v5  ;;  %9373 = vst [vmem:[#allocation20_spill] sm:$0xff] %v7779_v57  ;;  %9374 = vst [vmem:[#allocation21_spill] sm:$0xff] %v7785_v59  ;;  %v7807_v6 = vpack.c.bf16 %v132_v3, %v129_v1  ;;  %v7813_v9 = vpack.c.bf16 %v134_v7, %v131_v4  ;;  %v136_v11 = vld [vmem:[%s9222_s5 + $0x98] sm:$0xff]  ;;  %v139_v13 = vld [vmem:[%s9222_s5 + $0xb0] sm:$0xff] }
  0x26   :  { %5805 = vmatprep.subr.bf16.mxu0 %v7740_v37  ;;  %9375 = vst [vmem:[#allocation22_spill] sm:$0xff] %v7795_v0  ;;  %v7823_v17 = vpack.c.bf16 %v139_v13, %v136_v11  ;;  %v135_v18 = vld [vmem:[%s9222_s5 + $0x90] sm:$0xff]  ;;  %v138_v20 = vld [vmem:[%s9222_s5 + $0xa8] sm:$0xff]  ;;  %v137_v24 = vld [vmem:[%s9222_s5 + $0xa0] sm:$0xff] }
  0x27   :  { %5797 = vmatpush3.bf16.msra.mxu1 %v7698_v26  ;;  %9376 = vst [vmem:[#allocation23_spill] sm:$0xff] %v7807_v6  ;;  %9377 = vst [vmem:[#allocation24_spill] sm:$0xff] %v7813_v9  ;;  %v7835_v25 = vpack.c.bf16 %v138_v20, %v135_v18  ;;  %v140_v27 = vld [vmem:[%s9222_s5 + $0xb8] sm:$0xff]  ;;  %v142_v30 = vld [vmem:[%s9222_s5 + $0xc8] sm:$0xff] }
  0x28   :  { %553 = vmatmul.mubr.f32.vlgmr.msra.gmra.mrb[0].mxu0 %v9229_v5  ;;  %5798 = vmatprep.subr.bf16.mxu1 %v9231_v48  ;;  %9378 = vst [vmem:[#allocation25_spill] sm:$0xff] %v7823_v17  ;;  %v7841_v28 = vpack.c.bf16 %v140_v27, %v137_v24  ;;  %v145_v32 = vld [vmem:[%s9222_s5 + $0xe0] sm:$0xff]  ;;  %v144_v38 = vld [vmem:[%s9222_s5 + $0xd8] sm:$0xff]  ;;  %v143_v39 = vld [vmem:[%s9222_s5 + $0xd0] sm:$0xff] }
  0x29   :  { %715 = vmatprep.mubr.f32.mxu0 %v9229_v5  ;;  %5807 = vmatpush1.bf16.msra.mxu0 %v7751_v43  ;;  %9379 = vst [vmem:[#allocation26_spill] sm:$0xff] %v7835_v25  ;;  %v7851_v35 = vpack.c.bf16 %v145_v32, %v142_v30  ;;  %v141_v36 = vld [vmem:[%s9222_s5 + $0xc0] sm:$0xff]  ;;  %v146_v44 = vld [vmem:[%s9222_s5 + $0xe8] sm:$0xff]  ;;  %v148_v49 = vld [vmem:[%s9222_s5 + $0xf8] sm:$0xff] }
  0x2a   :  { %5809 = vmatprep.subr.bf16.mxu0 %v7767_v50  ;;  %9380 = vst [vmem:[#allocation27_spill] sm:$0xff] %v7841_v28  ;;  %v7863_v41 = vpack.c.bf16 %v144_v38, %v141_v36  ;;  %v7869_v47 = vpack.c.bf16 %v146_v44, %v143_v39  ;;  %v151_v52 = vld [vmem:[%s9222_s5 + $0x110] sm:$0xff]  ;;  %v150_v58 = vld [vmem:[%s9222_s5 + $0x108] sm:$0xff]  ;;  %v149_v60 = vld [vmem:[%s9222_s5 + $0x100] sm:$0xff] }
  0x2b   :  { %5800 = vmatpush3.bf16.msra.mxu1 %v7713_v29  ;;  %9381 = vst [vmem:[#allocation28_spill] sm:$0xff] %v7851_v35  ;;  %v7879_v54 = vpack.c.bf16 %v151_v52, %v148_v49  ;;  %v147_v55 = vld [vmem:[%s9222_s5 + $0xf0] sm:$0xff]  ;;  %v152_v1 = vld [vmem:[%s9222_s5 + $0x118] sm:$0xff]  ;;  %v154_v3 = vld [vmem:[%s9222_s5 + $0x128] sm:$0xff] }
  0x2c   :  { %5801 = vmatprep.subr.bf16.mxu1 %v9231_v48  ;;  %9382 = vst [vmem:[#allocation29_spill] sm:$0xff] %v7863_v41  ;;  %9383 = vst [vmem:[#allocation30_spill] sm:$0xff] %v7869_v47  ;;  %v7891_v62 = vpack.c.bf16 %v150_v58, %v147_v55  ;;  %v157_v4 = vld [vmem:[%s9222_s5 + $0x140] sm:$0xff]  ;;  %v7903_v7 = vpack.c.bf16 %v152_v1, %v149_v60  ;;  %v156_v18 = vld [vmem:[%s9222_s5 + $0x138] sm:$0xff] }
  0x2d   :  { %5811 = vmatpush1.bf16.msra.mxu0 %v7779_v57  ;;  %9384 = vst [vmem:[#allocation31_spill] sm:$0xff] %v7879_v54  ;;  %v7905_v11 = vpack.c.bf16 %v157_v4, %v154_v3  ;;  %v153_v13 = vld [vmem:[%s9222_s5 + $0x120] sm:$0xff]  ;;  %v155_v20 = vld [vmem:[%s9222_s5 + $0x130] sm:$0xff]  ;;  %v158_v27 = vld [vmem:[%s9222_s5 + $0x148] sm:$0xff]  ;;  %v95_v4 = vlaneseq }
  0x2e   :  { %5813 = vmatprep.subr.bf16.mxu0 %v7795_v0  ;;  %9385 = vst [vmem:[#allocation32_spill] sm:$0xff] %v7891_v62  ;;  %9386 = vst [vmem:[#allocation33_spill] sm:$0xff] %v7903_v7  ;;  %v7917_v24 = vpack.c.bf16 %v156_v18, %v153_v13  ;;  %v160_v30 = vld [vmem:[%s9222_s5 + $0x158] sm:$0xff]  ;;  %v163_v32 = vld [vmem:[%s9222_s5 + $0x170] sm:$0xff]  ;;  %v7930_v36 = vpack.c.bf16 %v158_v27, %v155_v20 }
  0x2f   :  { %5803 = vmatpush3.bf16.msra.mxu1 %v7726_v34  ;;  %9387 = vst [vmem:[#allocation34_spill] sm:$0xff] %v7905_v11  ;;  %v7932_v38 = vpack.c.bf16 %v163_v32, %v160_v30  ;;  %v159_v39 = vld [vmem:[%s9222_s5 + $0x150] sm:$0xff]  ;;  %v162_v44 = vld [vmem:[%s9222_s5 + $0x168] sm:$0xff]  ;;  %v161_v49 = vld [vmem:[%s9222_s5 + $0x160] sm:$0xff]  ;;  %v7967_v13 = vshrl.u32 %v95_v4, 7 }
  0x30   :  { %5836 = vmatprep.subr.bf16.mxu1 %v9231_v48  ;;  %9388 = vst [vmem:[#allocation35_spill] sm:$0xff] %v7917_v24  ;;  %9389 = vst [vmem:[#allocation36_spill] sm:$0xff] %v7930_v36  ;;  %v164_v52 = vld [vmem:[%s9222_s5 + $0x178] sm:$0xff]  ;;  %v166_v55 = vld [vmem:[%s9223_s6 + $0x8] sm:$0xff]  ;;  %v7954_v60 = vpack.c.bf16 %v162_v44, %v159_v39 }
  0x31   :  { %5815 = vmatpush1.bf16.msra.mxu0 %v7807_v6  ;;  %9390 = vst [vmem:[#allocation37_spill] sm:$0xff] %v7932_v38  ;;  %v169_v58 = vld [vmem:[%s9223_s6 + $0x20] sm:$0xff]  ;;  %v7958_v1 = vpack.c.bf16 %v164_v52, %v161_v49  ;;  %9394 = vst [vmem:[#allocation41_spill] sm:$0xff] %v7967_v13  ;;  %v9235_v18 = vsub.s32 2, %v7967_v13 }
  0x32   :  { %4898 = vmatmul.mubr.f32.vlgmr.msra.gmra.mrb[8].mxu1 %v9229_v5  ;;  %5817 = vmatprep.subr.bf16.mxu0 %v7823_v17  ;;  %9391 = vst [vmem:[#allocation38_spill] sm:$0xff] %v7954_v60  ;;  %v7960_v3 = vpack.c.bf16 %v169_v58, %v166_v55  ;;  %v93_v20 = vld [vmem:[%s9220_s3] sm:$0x7]  ;;  %v9240_v58 = vsub.s32 0, %v7967_v13 }
  0x33   :  { %4932 = vmatprep.mubr.msk.f32.mxu1 %vm7373_vm1, %v9229_v5  ;;  %5838 = vmatpush3.bf16.msra.mxu1 %v7757_v46  ;;  %9392 = vst [vmem:[#allocation39_spill] sm:$0xff] %v7958_v1  ;;  %v106_v27 = vrot.slane %v93_v20, %v9235_v18  ;;  %v9247_v5 = vsub.s32 1, %v7967_v13 }
  0x34   :  { %5839 = vmatprep.subr.bf16.mxu1 %v9231_v48  ;;  %9393 = vst [vmem:[#allocation40_spill] sm:$0xff] %v7960_v3  ;;  %v7987_v18 = vrot.slane %v93_v20, %v9240_v58 }
  0x35   :  { %5819 = vmatpush1.bf16.msra.mxu0 %v7835_v25 }
  0x36   :  { %5821 = vmatprep.subr.bf16.mxu0 %v7851_v35 }
  0x37   :  { %5841 = vmatpush3.bf16.msra.mxu1 %v7785_v59 }
  0x38   :  { %5842 = vmatprep.subr.bf16.mxu1 %v9231_v48 }
  0x39   :  { %5823 = vmatpush1.bf16.msra.mxu0 %v7863_v41 }
  0x3a   :  { %5825 = vmatprep.subr.bf16.mxu0 %v7879_v54 }
  0x3b   :  { %5844 = vmatpush3.bf16.msra.mxu1 %v7813_v9 }
  0x3c   :  { %5845 = vmatprep.subr.bf16.mxu1 %v9231_v48 }
  0x3d   :  { %5827 = vmatpush1.bf16.msra.mxu0 %v7891_v62 }
  0x3e   :  { %5829 = vmatprep.subr.bf16.mxu0 %v7905_v11 }
  0x3f   :  { %5847 = vmatpush3.bf16.msra.mxu1 %v7841_v28 }
  0x40   :  { %5848 = vmatprep.subr.bf16.mxu1 %v9231_v48 }
  0x41   :  { %5831 = vmatpush1.bf16.msra.mxu0 %v7917_v24 }
  0x42   :  { %5833 = vmatprep.subr.bf16.mxu0 %v7932_v38 }
  0x43   :  { %5850 = vmatpush3.bf16.msra.mxu1 %v7869_v47 }
  0x44   :  { %5851 = vmatprep.subr.bf16.mxu1 %v9231_v48 }
  0x45   :  { %5835 = vmatpush1.bf16.msra.mxu0 %v7954_v60 }
  0x46   :  { %5861 = vmatprep.subr.bf16.mxu0 %v7960_v3 }
  0x47   :  { %5853 = vmatpush3.bf16.msra.mxu1 %v7903_v7 }
  0x48   :  { %5854 = vmatprep.subr.bf16.mxu1 %v9231_v48 }
  0x4b   :  { %5856 = vmatpush3.bf16.msra.mxu1 %v7930_v36 }
  0x4c   :  { %5857 = vmatprep.subr.bf16.mxu1 %v9231_v48 }
  0x4f   :  { %5859 = vmatpush3.bf16.msra.mxu1 %v7958_v1 }
  0x50   :  { %5892 = vmatprep.subr.bf16.mxu1 %v9231_v48 }
  0xe2   :  { %v4855_v30 = vpop.f32.mrb[0].mxu1 }
  0xe3   :  { %v7975_v32 = vadd.f32 %v4855_v30, %v106_v27  ;;  %v449_v39 = vpop.f32.mrb[1].mxu1 }
  0xe5   :  { %9395 = vst [vmem:[#allocation42_spill] sm:$0xff] %v7975_v32 }
  0xed   :  { %v4858_v44 = vpop.f32.mrb[2].mxu1 }
  0xee   :  { %v7977_v49 = vadd.f32 %v4858_v44, %v106_v27  ;;  %v459_v52 = vpop.f32.mrb[3].mxu1 }
  0xef   :  { %v7979_v55 = vadd.f32 %v459_v52, %v106_v27  ;;  %v7993_v52 = vrot.slane %v93_v20, %v9247_v5  ;;  %v450_v5 = vadd.f32 %v449_v39, %v106_v27  ;;  %v172_v39 = vld [vmem:[%s9223_s6 + $0x38] sm:$0xff] }
  0xf0   :  { %9396 = vst [vmem:[#allocation43_spill] sm:$0xff] %v7977_v49 }
  0xf1   :  { %9397 = vst [vmem:[#allocation44_spill] sm:$0xff] %v7979_v55  ;;  %v4861_v4 = vpop.f32.mrb[4].mxu1  ;;  %9400 = vst [vmem:[#allocation47_spill] sm:$0xff] %v7993_v52 }
  0xf2   :  { %v7983_v48 = vadd.f32 %v4861_v4, %v106_v27  ;;  %v469_v3 = vpop.f32.mrb[5].mxu1 }
  0xf3   :  { %v7989_v30 = vadd.f32 %v469_v3, %v106_v27 }
  0xf4   :  { %9398 = vst [vmem:[#allocation45_spill] sm:$0xff] %v7983_v48 }
  0xf5   :  { %9399 = vst [vmem:[#allocation46_spill] sm:$0xff] %v7989_v30  ;;  %v4864_v32 = vpop.f32.mrb[6].mxu1 }
  0xf6   :  { %v7995_v49 = vadd.f32 %v4864_v32, %v106_v27  ;;  %v479_v55 = vpop.f32.mrb[7].mxu1  ;;  %v8004_v32 = vld [vmem:[%s9221_s4] ss:$0 sm:$0xff] }
  0xf7   :  { %v7998_v48 = vadd.f32 %v479_v55, %v106_v27  ;;  %v170_v27 = vld [vmem:[%s9223_s6 + $0x28] sm:$0xff] }
  0xf8   :  { %9401 = vst [vmem:[#allocation48_spill] sm:$0xff] %v7995_v49 }
  0xf9   :  { %9402 = vst [vmem:[#allocation49_spill] sm:$0xff] %v7998_v48  ;;  %v174_v48 = vld [vmem:[%s9223_s6 + $0x48] sm:$0xff] }
  0xfb   :  { %v554_v44 = vpop.f32.mrb[0].mxu0 }
  0xfc   :  { %v7116_v1 = vadd.f32 %v554_v44, %v7987_v18  ;;  %v556_v4 = vpop.f32.mrb[1].mxu0 }
  0xfd   :  { %v7117_v58 = vadd.f32 %v556_v4, %v7993_v52 }
  0xfe   :  { %v4381_v60 = vmul.f32 -1.442695, %v7116_v1 }
  0xff   :  { %v4382_v3 = vmul.f32 -1.442695, %v7117_v58 }
 0x100   :  { %7184 = vpow2.f32 %v4381_v60 }
 0x101   :  { %7186 = vpow2.f32 %v4382_v3  ;;  %v175_v3 = vld [vmem:[%s9223_s6 + $0x50] sm:$0xff] }
 0x102   :  { %v8034_v49 = vpack.c.bf16 %v175_v3, %v172_v39  ;;  %v9407_v39 = vmov 0.0|0.0  }
 0x104   :  { %9404 = vst [vmem:[#allocation51_spill] sm:$0xff] %v8034_v49 }
 0x105   :  { %v625_v30 = vpop.f32.mrb[8].mxu1 }
 0x106   :  { %v4899_v38 = vpop.f32.mrb[9].mxu1  ;;  %v643_v55 = vadd.f32 %v8004_v32, %v625_v30  ;;  %v167_v30 = vld [vmem:[%s9223_s6 + $0x10] sm:$0xff] }
 0x10a   :  { %v7185_v36 = vpop.eup %7184 }
 0x10b   :  { %v637_v13 = vadd.f32 1.0, %v7185_v36  ;;  %v7187_v20 = vpop.eup %7186  ;;  %v165_v36 = vld [vmem:[%s9223_s6] sm:$0xff] }
 0x10c   :  { %v638_v44 = vadd.f32 1.0, %v7187_v20 }
 0x10d   :  { %7188 = vrcp.f32 %v637_v13  ;;  %v168_v13 = vld [vmem:[%s9223_s6 + $0x18] sm:$0xff] }
 0x10e   :  { %7190 = vrcp.f32 %v638_v44 }
 0x117   :  { %v7189_v1 = vpop.eup %7188 }
 0x118   :  { %v644_v60 = vmul.f32 %v7189_v1, %v643_v55  ;;  %v7191_v4 = vpop.eup %7190  ;;  %v8025_v55 = vpack.c.bf16 %v168_v13, %v165_v36  ;;  %v8027_v1 = vpack.c.bf16 %v170_v27, %v167_v30  ;;  %v176_v36 = vld [vmem:[%s9223_s6 + $0x58] sm:$0xff]  ;;  %v181_v13 = vld [vmem:[%s9223_s6 + $0x80] sm:$0xff] }
 0x119   :  { %v647_v38 = vsub.f32 1.0, %v7191_v4  ;;  %v649_v44 = vmul.f32 0.0, %v7191_v4  ;;  %v173_v4 = vld [vmem:[%s9223_s6 + $0x40] sm:$0xff] }
 0x11a   :  { %v645_v58 = vadd.f32 %v644_v60, %v450_v5  ;;  %9403 = vst [vmem:[#allocation50_spill] sm:$0xff] %v8027_v1  ;;  %v171_v60 = vld [vmem:[%s9223_s6 + $0x30] sm:$0xff]  ;;  %v8057_v27 = vpack.c.bf16 %v176_v36, %v173_v4  ;;  %v9409_v36 = vmov 0.0  }
 0x11b   :  { %v8055_v30 = vpack.c.bf16 %v174_v48, %v171_v60  ;;  %v179_v48 = vld [vmem:[%s9223_s6 + $0x70] sm:$0xff]  ;;  %v184_v60 = vld [vmem:[%s9223_s6 + $0x98] sm:$0xff] }
 0x11c   :  { %7192 = vtanh.f32 %v645_v58  ;;  %9406 = vst [vmem:[#allocation53_spill] sm:$0xff] %v8057_v27  ;;  %v187_v4 = vld [vmem:[%s9223_s6 + $0xb0] sm:$0xff] }
 0x11d   :  { %9405 = vst [vmem:[#allocation52_spill] sm:$0xff] %v8055_v30 }
 0x126   :  { %v7193_v5 = vpop.eup %7192 }
 0x127   :  { %v648_v20 = vmul.f32 %v7193_v5, %v647_v38  ;;  %v178_v38 = vld [vmem:[%s9223_s6 + $0x68] sm:$0xff]  ;;  %v177_v5 = vld [vmem:[%s9223_s6 + $0x60] sm:$0xff] }
 0x128   :  { %v8064_v3 = vpack.c.bf16 %v181_v13, %v178_v38 }
 0x129   :  { %v8032_v58 = vadd.f32 %v649_v44, %v648_v20  ;;  %v180_v20 = vld [vmem:[%s9223_s6 + $0x78] sm:$0xff]  ;;  %v182_v44 = vld [vmem:[%s9223_s6 + $0x88] sm:$0xff] }
 0x12a   :  { %9408 = vst [vmem:[#allocation54_spill] sm:$0xff] %v8064_v3  ;;  %v8086_v38 = vpack.c.bf16 %v180_v20, %v177_v5  ;;  %v8088_v13 = vpack.c.bf16 %v182_v44, %v179_v48  ;;  %v185_v5 = vld [vmem:[%s9223_s6 + $0xa0] sm:$0xff]  ;;  %v188_v20 = vld [vmem:[%s9223_s6 + $0xb8] sm:$0xff]  ;;  %v190_v48 = vld [vmem:[%s9223_s6 + $0xc8] sm:$0xff] }
 0x12b   :  { %716 = vmatmul.mubr.f32.vlgmr.msra.gmra.mrb[16].mxu0 %v8032_v58  ;;  %4933 = vmatmul.mubr.f32.vlgmr.msra.gmra.mrb[10].mxu1 %v8032_v58  ;;  %v193_v44 = vld [vmem:[%s9223_s6 + $0xe0] sm:$0xff] }
 0x12c   :  { %5863 = vmatpush1.bf16.msra.mxu0 %v8025_v55  ;;  %5894 = vmatpush3.bf16.msra.mxu1 %v8027_v1  ;;  %9410 = vst [vmem:[#allocation55_spill] sm:$0xff] %v8086_v38  ;;  %9411 = vst [vmem:[#allocation56_spill] sm:$0xff] %v8088_v13  ;;  %v8095_v1 = vpack.c.bf16 %v187_v4, %v184_v60  ;;  %v8116_v4 = vpack.c.bf16 %v188_v20, %v185_v5  ;;  %v196_v5 = vld [vmem:[%s9223_s6 + $0xf8] sm:$0xff]  ;;  %v199_v20 = vld [vmem:[%s9223_s6 + $0x110] sm:$0xff] }
 0x12d   :  { %5865 = vmatprep.subr.bf16.mxu0 %v8034_v49  ;;  %5895 = vmatprep.subr.bf16.mxu1 %v9407_v39  ;;  %v183_v49 = vld [vmem:[%s9223_s6 + $0x90] sm:$0xff] }
 0x12e   :  { %856 = vmatprep.mubr.f32.mxu0 %v9409_v36  ;;  %4967 = vmatprep.mubr.msk.f32.mxu1 %vm7373_vm1, %v9409_v36  ;;  %9412 = vst [vmem:[#allocation57_spill] sm:$0xff] %v8095_v1  ;;  %9414 = vst [vmem:[#allocation59_spill] sm:$0xff] %v8116_v4 }
 0x130   :  { %5867 = vmatpush1.bf16.msra.mxu0 %v8055_v30  ;;  %5897 = vmatpush3.bf16.msra.mxu1 %v8057_v27  ;;  %v186_v30 = vld [vmem:[%s9223_s6 + $0xa8] sm:$0xff]  ;;  %v8123_v27 = vpack.c.bf16 %v193_v44, %v190_v48 }
 0x131   :  { %5869 = vmatprep.subr.bf16.mxu0 %v8064_v3  ;;  %5898 = vmatprep.subr.bf16.mxu1 %v9407_v39  ;;  %v8114_v60 = vpack.c.bf16 %v186_v30, %v183_v49  ;;  %v189_v3 = vld [vmem:[%s9223_s6 + $0xc0] sm:$0xff]  ;;  %v191_v49 = vld [vmem:[%s9223_s6 + $0xd0] sm:$0xff]  ;;  %v194_v30 = vld [vmem:[%s9223_s6 + $0xe8] sm:$0xff] }
 0x132   :  { %9415 = vst [vmem:[#allocation60_spill] sm:$0xff] %v8123_v27  ;;  %v8144_v44 = vpack.c.bf16 %v194_v30, %v191_v49  ;;  %v202_v49 = vld [vmem:[%s9223_s6 + $0x128] sm:$0xff]  ;;  %v205_v30 = vld [vmem:[%s9223_s6 + $0x140] sm:$0xff] }
 0x133   :  { %9413 = vst [vmem:[#allocation58_spill] sm:$0xff] %v8114_v60 }
 0x134   :  { %5871 = vmatpush1.bf16.msra.mxu0 %v8086_v38  ;;  %5900 = vmatpush3.bf16.msra.mxu1 %v8088_v13  ;;  %v192_v38 = vld [vmem:[%s9223_s6 + $0xd8] sm:$0xff]  ;;  %9417 = vst [vmem:[#allocation62_spill] sm:$0xff] %v8144_v44  ;;  %v8151_v13 = vpack.c.bf16 %v199_v20, %v196_v5 }
 0x135   :  { %5873 = vmatprep.subr.bf16.mxu0 %v8095_v1  ;;  %5901 = vmatprep.subr.bf16.mxu1 %v9407_v39  ;;  %v8142_v48 = vpack.c.bf16 %v192_v38, %v189_v3  ;;  %v195_v1 = vld [vmem:[%s9223_s6 + $0xf0] sm:$0xff]  ;;  %v197_v3 = vld [vmem:[%s9223_s6 + $0x100] sm:$0xff]  ;;  %v200_v38 = vld [vmem:[%s9223_s6 + $0x118] sm:$0xff] }
 0x136   :  { %9418 = vst [vmem:[#allocation63_spill] sm:$0xff] %v8151_v13  ;;  %v8172_v20 = vpack.c.bf16 %v200_v38, %v197_v3  ;;  %v208_v3 = vld [vmem:[%s9223_s6 + $0x158] sm:$0xff]  ;;  %v211_v38 = vld [vmem:[%s9223_s6 + $0x170] sm:$0xff] }
 0x137   :  { %9416 = vst [vmem:[#allocation61_spill] sm:$0xff] %v8142_v48 }
 0x138   :  { %5875 = vmatpush1.bf16.msra.mxu0 %v8114_v60  ;;  %5903 = vmatpush3.bf16.msra.mxu1 %v8116_v4  ;;  %v198_v60 = vld [vmem:[%s9223_s6 + $0x108] sm:$0xff]  ;;  %v8179_v4 = vpack.c.bf16 %v205_v30, %v202_v49 }
 0x139   :  { %5877 = vmatprep.subr.bf16.mxu0 %v8123_v27  ;;  %5904 = vmatprep.subr.bf16.mxu1 %v9407_v39  ;;  %v8170_v5 = vpack.c.bf16 %v198_v60, %v195_v1  ;;  %v201_v27 = vld [vmem:[%s9223_s6 + $0x120] sm:$0xff]  ;;  %v203_v1 = vld [vmem:[%s9223_s6 + $0x130] sm:$0xff]  ;;  %v206_v60 = vld [vmem:[%s9223_s6 + $0x148] sm:$0xff] }
 0x13a   :  { %v8200_v30 = vpack.c.bf16 %v206_v60, %v203_v1 }
 0x13b   :  { %9419 = vst [vmem:[#allocation64_spill] sm:$0xff] %v8170_v5 }
 0x13c   :  { %5879 = vmatpush1.bf16.msra.mxu0 %v8142_v48  ;;  %5906 = vmatpush3.bf16.msra.mxu1 %v8144_v44  ;;  %v204_v48 = vld [vmem:[%s9223_s6 + $0x138] sm:$0xff]  ;;  %v8207_v44 = vpack.c.bf16 %v211_v38, %v208_v3  ;;  %v9422_v3 = vld [vmem:[#allocation38_spill] sm:$0xff] }
 0x13d   :  { %5881 = vmatprep.subr.bf16.mxu0 %v8151_v13  ;;  %5907 = vmatprep.subr.bf16.mxu1 %v9407_v39  ;;  %v8198_v49 = vpack.c.bf16 %v204_v48, %v201_v27  ;;  %v207_v13 = vld [vmem:[%s9223_s6 + $0x150] sm:$0xff]  ;;  %v209_v27 = vld [vmem:[%s9223_s6 + $0x160] sm:$0xff]  ;;  %v212_v48 = vld [vmem:[%s9223_s6 + $0x178] sm:$0xff] }
 0x13e   :  { %v8222_v60 = vpack.c.bf16 %v212_v48, %v209_v27  ;;  %v9423_v38 = vld [vmem:[#allocation39_spill] sm:$0xff]  ;;  %v9424_v27 = vld [vmem:[#allocation40_spill] sm:$0xff] }
 0x140   :  { %5883 = vmatpush1.bf16.msra.mxu0 %v8170_v5  ;;  %5909 = vmatpush3.bf16.msra.mxu1 %v8172_v20  ;;  %v210_v5 = vld [vmem:[%s9223_s6 + $0x168] sm:$0xff] }
 0x141   :  { %5885 = vmatprep.subr.bf16.mxu0 %v8179_v4  ;;  %5910 = vmatprep.subr.bf16.mxu1 %v9407_v39  ;;  %v8220_v1 = vpack.c.bf16 %v210_v5, %v207_v13  ;;  %v9420_v13 = vld [vmem:[#allocation36_spill] sm:$0xff]  ;;  %v9421_v5 = vld [vmem:[#allocation37_spill] sm:$0xff] }
 0x144   :  { %5887 = vmatpush1.bf16.msra.mxu0 %v8198_v49  ;;  %5912 = vmatpush3.bf16.msra.mxu1 %v8200_v30 }
 0x145   :  { %5889 = vmatprep.subr.bf16.mxu0 %v8207_v44  ;;  %5913 = vmatprep.subr.bf16.mxu1 %v9407_v39 }
 0x148   :  { %5891 = vmatpush1.bf16.msra.mxu0 %v8220_v1  ;;  %5915 = vmatpush3.bf16.msra.mxu1 %v8222_v60 }
 0x149   :  { %5917 = vmatprep.subr.bf16.mxu0 %v7464_v12  ;;  %5948 = vmatprep.subr.bf16.mxu1 %v9407_v39 }
 0x14b   :  { %857 = vmatmul.mubr.f32.vlgmr.msra.gmra.mrb[16].mxu0 %v9409_v36  ;;  %4968 = vmatmul.mubr.f32.vlgmr.msra.gmra.mrb[12].mxu1 %v9409_v36 }
 0x14c   :  { %5919 = vmatpush1.bf16.msra.mxu0 %v7472_v15  ;;  %5950 = vmatpush3.bf16.msra.mxu1 %v7548_v40 }
 0x14d   :  { %5921 = vmatprep.subr.bf16.mxu0 %v7475_v16  ;;  %5951 = vmatprep.subr.bf16.mxu1 %v9407_v39 }
 0x14e   :  { %1019 = vmatprep.mubr.f32.mxu0 %v9409_v36  ;;  %5002 = vmatprep.mubr.msk.f32.mxu1 %vm7373_vm1, %v9409_v36 }
 0x150   :  { %5923 = vmatpush1.bf16.msra.mxu0 %v7495_v22  ;;  %5953 = vmatpush3.bf16.msra.mxu1 %v7582_v51 }
 0x151   :  { %5925 = vmatprep.subr.bf16.mxu0 %v7498_v23  ;;  %5954 = vmatprep.subr.bf16.mxu1 %v9407_v39 }
 0x154   :  { %5927 = vmatpush1.bf16.msra.mxu0 %v7524_v31  ;;  %5956 = vmatpush3.bf16.msra.mxu1 %v7616_v61 }
 0x155   :  { %5929 = vmatprep.subr.bf16.mxu0 %v7527_v33  ;;  %5957 = vmatprep.subr.bf16.mxu1 %v9407_v39 }
 0x158   :  { %5931 = vmatpush1.bf16.msra.mxu0 %v7555_v42  ;;  %5959 = vmatpush3.bf16.msra.mxu1 %v7650_v8 }
 0x159   :  { %5933 = vmatprep.subr.bf16.mxu0 %v7564_v45  ;;  %5960 = vmatprep.subr.bf16.mxu1 %v9407_v39 }
 0x15c   :  { %5935 = vmatpush1.bf16.msra.mxu0 %v7589_v53  ;;  %5962 = vmatpush3.bf16.msra.mxu1 %v7678_v19 }
 0x15d   :  { %5937 = vmatprep.subr.bf16.mxu0 %v7598_v56  ;;  %5963 = vmatprep.subr.bf16.mxu1 %v9407_v39 }
 0x160   :  { %5939 = vmatpush1.bf16.msra.mxu0 %v7623_v63  ;;  %5965 = vmatpush3.bf16.msra.mxu1 %v7698_v26 }
 0x161   :  { %5941 = vmatprep.subr.bf16.mxu0 %v7632_v2  ;;  %5966 = vmatprep.subr.bf16.mxu1 %v9407_v39 }
 0x164   :  { %5943 = vmatpush1.bf16.msra.mxu0 %v7657_v10  ;;  %5968 = vmatpush3.bf16.msra.mxu1 %v7713_v29 }
 0x165   :  { %5945 = vmatprep.subr.bf16.mxu0 %v7666_v14  ;;  %5969 = vmatprep.subr.bf16.mxu1 %v9407_v39 }
 0x168   :  { %5947 = vmatpush1.bf16.msra.mxu0 %v7685_v21  ;;  %5971 = vmatpush3.bf16.msra.mxu1 %v7726_v34 }
 0x169   :  { %5973 = vmatprep.subr.bf16.mxu0 %v7740_v37  ;;  %6004 = vmatprep.subr.bf16.mxu1 %v9407_v39 }
 0x16b   :  { %1020 = vmatmul.mubr.f32.vlgmr.msra.gmra.mrb[2].mxu0 %v8032_v58  ;;  %5003 = vmatmul.mubr.f32.vlgmr.msra.gmra.mrb[14].mxu1 %v8032_v58 }
 0x16c   :  { %5975 = vmatpush1.bf16.msra.mxu0 %v7751_v43  ;;  %6006 = vmatpush3.bf16.msra.mxu1 %v7757_v46 }
 0x16d   :  { %5977 = vmatprep.subr.bf16.mxu0 %v7767_v50  ;;  %6007 = vmatprep.subr.bf16.mxu1 %v9407_v39 }
 0x16e   :  { %1182 = vmatprep.mubr.f32.mxu0 %v9409_v36  ;;  %5037 = vmatprep.mubr.msk.f32.mxu1 %vm7373_vm1, %v9409_v36 }
 0x170   :  { %5979 = vmatpush1.bf16.msra.mxu0 %v7779_v57  ;;  %6009 = vmatpush3.bf16.msra.mxu1 %v7785_v59 }
 0x171   :  { %5981 = vmatprep.subr.bf16.mxu0 %v7795_v0  ;;  %6010 = vmatprep.subr.bf16.mxu1 %v9407_v39 }
 0x174   :  { %5983 = vmatpush1.bf16.msra.mxu0 %v7807_v6  ;;  %6012 = vmatpush3.bf16.msra.mxu1 %v7813_v9 }
 0x175   :  { %5985 = vmatprep.subr.bf16.mxu0 %v7823_v17  ;;  %6013 = vmatprep.subr.bf16.mxu1 %v9407_v39 }
 0x178   :  { %5987 = vmatpush1.bf16.msra.mxu0 %v7835_v25  ;;  %6015 = vmatpush3.bf16.msra.mxu1 %v7841_v28 }
 0x179   :  { %5989 = vmatprep.subr.bf16.mxu0 %v7851_v35  ;;  %6016 = vmatprep.subr.bf16.mxu1 %v9407_v39 }
 0x17c   :  { %5991 = vmatpush1.bf16.msra.mxu0 %v7863_v41  ;;  %6018 = vmatpush3.bf16.msra.mxu1 %v7869_v47 }
 0x17d   :  { %5993 = vmatprep.subr.bf16.mxu0 %v7879_v54  ;;  %6019 = vmatprep.subr.bf16.mxu1 %v9407_v39 }
 0x180   :  { %5995 = vmatpush1.bf16.msra.mxu0 %v7891_v62  ;;  %6021 = vmatpush3.bf16.msra.mxu1 %v7903_v7  ;;  %v9425_v7 = vld [vmem:[#allocation41_spill] sm:$0xff] }
 0x181   :  { %5997 = vmatprep.subr.bf16.mxu0 %v7905_v11  ;;  %6022 = vmatprep.subr.bf16.mxu1 %v9407_v39  ;;  %v9428_v54 = vsub.s32 1, %v9425_v7  ;;  %v9431_v9 = vsub.s32 2, %v9425_v7 }
 0x184   :  { %5999 = vmatpush1.bf16.msra.mxu0 %v7917_v24  ;;  %6024 = vmatpush3.bf16.msra.mxu1 %v9420_v13  ;;  %v213_v24 = vld [vmem:[%s9224_s7] sm:$0x7]  ;;  %v9426_v13 = vsub.s32 0, %v9425_v7 }
 0x185   :  { %6001 = vmatprep.subr.bf16.mxu0 %v9421_v5  ;;  %6025 = vmatprep.subr.bf16.mxu1 %v9407_v39 }
 0x186   :  { %v8309_v62 = vrot.slane %v213_v24, %v9426_v13 }
 0x188   :  { %6003 = vmatpush1.bf16.msra.mxu0 %v9422_v3  ;;  %6027 = vmatpush3.bf16.msra.mxu1 %v9423_v38  ;;  %9427 = vst [vmem:[#allocation41_spill] sm:$0xff] %v8309_v62  ;;  %v8313_v3 = vrot.slane %v213_v24, %v9428_v54  ;;  %v8320_v54 = vld [vmem:[%s9225_s8] ss:$0 sm:$0xff] }
 0x189   :  { %6029 = vmatprep.subr.bf16.mxu0 %v9424_v27  ;;  %6060 = vmatprep.subr.bf16.mxu1 %v9407_v39  ;;  %9430 = vst [vmem:[#allocation66_spill] sm:$0xff] %v8320_v54 }
 0x18a   :  { %9429 = vst [vmem:[#allocation65_spill] sm:$0xff] %v8313_v3 }
 0x1fe   :  { %v788_v48 = vpop.f32.mrb[10].mxu1 }
 0x1ff   :  { %v4934_v11 = vpop.f32.mrb[11].mxu1 }
 0x21e   :  { %v858_v5 = vpop.f32.mrb[16].mxu0  ;;  %v929_v38 = vpop.f32.mrb[12].mxu1 }
 0x21f   :  { %v7132_v27 = vadd.f32 %v858_v5, %v8309_v62  ;;  %v860_v47 = vpop.f32.mrb[17].mxu0  ;;  %v4969_v41 = vpop.f32.mrb[13].mxu1  ;;  %v8324_v5 = vrot.slane %v213_v24, %v9431_v9 }
 0x220   :  { %v7133_v11 = vadd.f32 %v860_v47, %v8313_v3 }
 0x221   :  { %v4383_v35 = vmul.f32 -1.442695, %v7132_v27  ;;  %v947_v27 = vadd.f32 %v8320_v54, %v929_v38 }
 0x222   :  { %v4384_v28 = vmul.f32 -1.442695, %v7133_v11 }
 0x223   :  { %7194 = vpow2.f32 %v4383_v35  ;;  %v789_v35 = vadd.f32 %v788_v48, %v8324_v5 }
 0x224   :  { %7196 = vpow2.f32 %v4384_v28 }
 0x22d   :  { %v7195_v25 = vpop.eup %7194 }
 0x22e   :  { %v941_v17 = vadd.f32 1.0, %v7195_v25  ;;  %v7197_v13 = vpop.eup %7196 }
 0x22f   :  { %v942_v41 = vadd.f32 1.0, %v7197_v13 }
 0x230   :  { %7198 = vrcp.f32 %v941_v17 }
 0x231   :  { %7200 = vrcp.f32 %v942_v41 }
 0x23a   :  { %v7199_v47 = vpop.eup %7198 }
 0x23b   :  { %v948_v28 = vmul.f32 %v7199_v47, %v947_v27  ;;  %v7201_v7 = vpop.eup %7200 }
 0x23c   :  { %v951_v38 = vsub.f32 1.0, %v7201_v7  ;;  %v953_v41 = vmul.f32 0.0, %v7201_v7 }
 0x23d   :  { %v949_v25 = vadd.f32 %v948_v28, %v789_v35 }
 0x23e   :  { %v1021_v17 = vpop.f32.mrb[2].mxu0  ;;  %v1092_v11 = vpop.f32.mrb[14].mxu1 }
 0x23f   :  { %7202 = vtanh.f32 %v949_v25  ;;  %v7118_v3 = vadd.f32 %v1021_v17, %v7987_v18  ;;  %v1023_v62 = vpop.f32.mrb[3].mxu0  ;;  %v5004_v6 = vpop.f32.mrb[15].mxu1 }
 0x240   :  { %v7119_v9 = vadd.f32 %v1023_v62, %v7993_v52  ;;  %v1110_v6 = vadd.f32 %v8004_v32, %v1092_v11  ;;  %v9434_v11 = vld [vmem:[#allocation50_spill] sm:$0xff] }
 0x241   :  { %v4385_v0 = vmul.f32 -1.442695, %v7118_v3 }
 0x242   :  { %v4386_v24 = vmul.f32 -1.442695, %v7119_v9 }
 0x243   :  { %7204 = vpow2.f32 %v4385_v0  ;;  %v9433_v0 = vld [vmem:[#allocation42_spill] sm:$0xff] }
 0x244   :  { %7206 = vpow2.f32 %v4386_v24 }
 0x249   :  { %v7203_v13 = vpop.eup %7202 }
 0x24a   :  { %v952_v48 = vmul.f32 %v7203_v13, %v951_v38 }
 0x24c   :  { %v8330_v27 = vadd.f32 %v953_v41, %v952_v48  ;;  %v9435_v48 = vld [vmem:[#allocation51_spill] sm:$0xff]  ;;  %v9438_v41 = vld [vmem:[#allocation54_spill] sm:$0xff] }
 0x24d   :  { %v7205_v47 = vpop.eup %7204 }
 0x24e   :  { %9432 = vst [vmem:[#allocation67_spill] sm:$0xff] %v8330_v27  ;;  %v1104_v35 = vadd.f32 1.0, %v7205_v47  ;;  %v7207_v28 = vpop.eup %7206  ;;  %v9439_v47 = vld [vmem:[#allocation55_spill] sm:$0xff] }
 0x24f   :  { %v1105_v25 = vadd.f32 1.0, %v7207_v28  ;;  %v9441_v28 = vld [vmem:[#allocation57_spill] sm:$0xff] }
 0x250   :  { %7208 = vrcp.f32 %v1104_v35  ;;  %v9440_v35 = vld [vmem:[#allocation56_spill] sm:$0xff] }
 0x251   :  { %7210 = vrcp.f32 %v1105_v25  ;;  %v9442_v25 = vld [vmem:[#allocation58_spill] sm:$0xff] }
 0x25a   :  { %v7209_v3 = vpop.eup %7208 }
 0x25b   :  { %v1111_v17 = vmul.f32 %v7209_v3, %v1110_v6  ;;  %v7211_v9 = vpop.eup %7210  ;;  %v9443_v6 = vld [vmem:[#allocation59_spill] sm:$0xff]  ;;  %v9444_v3 = vld [vmem:[#allocation60_spill] sm:$0xff] }
 0x25c   :  { %v1114_v52 = vsub.f32 1.0, %v7211_v9  ;;  %v1116_v7 = vmul.f32 %v7211_v9, %v8032_v58  ;;  %v9437_v58 = vld [vmem:[#allocation53_spill] sm:$0xff]  ;;  %v9448_v9 = vld [vmem:[#allocation64_spill] sm:$0xff] }
 0x25d   :  { %v1112_v62 = vadd.f32 %v1111_v17, %v9433_v0  ;;  %v9445_v17 = vld [vmem:[#allocation61_spill] sm:$0xff]  ;;  %v9446_v0 = vld [vmem:[#allocation62_spill] sm:$0xff] }
 0x25f   :  { %7212 = vtanh.f32 %v1112_v62  ;;  %v9447_v62 = vld [vmem:[#allocation63_spill] sm:$0xff] }
 0x269   :  { %v7213_v24 = vpop.eup %7212 }
 0x26a   :  { %v1115_v38 = vmul.f32 %v7213_v24, %v1114_v52  ;;  %v9436_v52 = vld [vmem:[#allocation52_spill] sm:$0xff]  ;;  %v9449_v24 = vld [vmem:[#allocation22_spill] sm:$0xff] }
 0x26c   :  { %v8335_v13 = vadd.f32 %v1116_v7, %v1115_v38  ;;  %v9450_v38 = vld [vmem:[#allocation23_spill] sm:$0xff]  ;;  %v9451_v7 = vld [vmem:[#allocation24_spill] sm:$0xff] }
 0x26e   :  { %1183 = vmatmul.mubr.f32.vlgmr.msra.gmra.mrb[18].mxu0 %v8335_v13  ;;  %5038 = vmatmul.mubr.f32.vlgmr.msra.gmra.mrb[16].mxu1 %v8335_v13 }
 0x26f   :  { %6031 = vmatpush1.bf16.msra.mxu0 %v8025_v55  ;;  %6062 = vmatpush3.bf16.msra.mxu1 %v9434_v11 }
 0x270   :  { %6033 = vmatprep.subr.bf16.mxu0 %v9435_v48  ;;  %6063 = vmatprep.subr.bf16.mxu1 %v9407_v39 }
 0x271   :  { %1323 = vmatprep.mubr.f32.mxu0 %v9409_v36  ;;  %5072 = vmatprep.mubr.msk.f32.mxu1 %vm7373_vm1, %v9409_v36 }
 0x273   :  { %6035 = vmatpush1.bf16.msra.mxu0 %v9436_v52  ;;  %6065 = vmatpush3.bf16.msra.mxu1 %v9437_v58 }
 0x274   :  { %6037 = vmatprep.subr.bf16.mxu0 %v9438_v41  ;;  %6066 = vmatprep.subr.bf16.mxu1 %v9407_v39 }
 0x277   :  { %6039 = vmatpush1.bf16.msra.mxu0 %v9439_v47  ;;  %6068 = vmatpush3.bf16.msra.mxu1 %v9440_v35 }
 0x278   :  { %6041 = vmatprep.subr.bf16.mxu0 %v9441_v28  ;;  %6069 = vmatprep.subr.bf16.mxu1 %v9407_v39 }
 0x27b   :  { %6043 = vmatpush1.bf16.msra.mxu0 %v9442_v25  ;;  %6071 = vmatpush3.bf16.msra.mxu1 %v9443_v6 }
 0x27c   :  { %6045 = vmatprep.subr.bf16.mxu0 %v9444_v3  ;;  %6072 = vmatprep.subr.bf16.mxu1 %v9407_v39 }
 0x27f   :  { %6047 = vmatpush1.bf16.msra.mxu0 %v9445_v17  ;;  %6074 = vmatpush3.bf16.msra.mxu1 %v9446_v0 }
 0x280   :  { %6049 = vmatprep.subr.bf16.mxu0 %v9447_v62  ;;  %6075 = vmatprep.subr.bf16.mxu1 %v9407_v39 }
 0x283   :  { %6051 = vmatpush1.bf16.msra.mxu0 %v9448_v9  ;;  %6077 = vmatpush3.bf16.msra.mxu1 %v8172_v20 }
 0x284   :  { %6053 = vmatprep.subr.bf16.mxu0 %v8179_v4  ;;  %6078 = vmatprep.subr.bf16.mxu1 %v9407_v39 }
 0x287   :  { %6055 = vmatpush1.bf16.msra.mxu0 %v8198_v49  ;;  %6080 = vmatpush3.bf16.msra.mxu1 %v8200_v30 }
 0x288   :  { %6057 = vmatprep.subr.bf16.mxu0 %v8207_v44  ;;  %6081 = vmatprep.subr.bf16.mxu1 %v9407_v39 }
 0x28b   :  { %6059 = vmatpush1.bf16.msra.mxu0 %v8220_v1  ;;  %6083 = vmatpush3.bf16.msra.mxu1 %v8222_v60 }
 0x28c   :  { %6085 = vmatprep.subr.bf16.mxu0 %v7464_v12  ;;  %6116 = vmatprep.subr.bf16.mxu1 %v9407_v39 }
 0x28e   :  { %1324 = vmatmul.mubr.f32.vlgmr.msra.gmra.mrb[18].mxu0 %v8330_v27  ;;  %5073 = vmatmul.mubr.f32.vlgmr.msra.gmra.mrb[18].mxu1 %v8330_v27 }
 0x28f   :  { %6087 = vmatpush1.bf16.msra.mxu0 %v7472_v15  ;;  %6118 = vmatpush3.bf16.msra.mxu1 %v7548_v40 }
 0x290   :  { %6089 = vmatprep.subr.bf16.mxu0 %v7475_v16  ;;  %6119 = vmatprep.subr.bf16.mxu1 %v9407_v39 }
 0x291   :  { %1486 = vmatprep.mubr.f32.mxu0 %v9409_v36  ;;  %5107 = vmatprep.mubr.msk.f32.mxu1 %vm7373_vm1, %v9409_v36 }
 0x293   :  { %6091 = vmatpush1.bf16.msra.mxu0 %v7495_v22  ;;  %6121 = vmatpush3.bf16.msra.mxu1 %v7582_v51 }
 0x294   :  { %6093 = vmatprep.subr.bf16.mxu0 %v7498_v23  ;;  %6122 = vmatprep.subr.bf16.mxu1 %v9407_v39 }
 0x297   :  { %6095 = vmatpush1.bf16.msra.mxu0 %v7524_v31  ;;  %6124 = vmatpush3.bf16.msra.mxu1 %v7616_v61 }
 0x298   :  { %6097 = vmatprep.subr.bf16.mxu0 %v7527_v33  ;;  %6125 = vmatprep.subr.bf16.mxu1 %v9407_v39 }
 0x29b   :  { %6099 = vmatpush1.bf16.msra.mxu0 %v7555_v42  ;;  %6127 = vmatpush3.bf16.msra.mxu1 %v7650_v8 }
 0x29c   :  { %6101 = vmatprep.subr.bf16.mxu0 %v7564_v45  ;;  %6128 = vmatprep.subr.bf16.mxu1 %v9407_v39 }
 0x29f   :  { %6103 = vmatpush1.bf16.msra.mxu0 %v7589_v53  ;;  %6130 = vmatpush3.bf16.msra.mxu1 %v7678_v19 }
 0x2a0   :  { %6105 = vmatprep.subr.bf16.mxu0 %v7598_v56  ;;  %6131 = vmatprep.subr.bf16.mxu1 %v9407_v39 }
 0x2a3   :  { %6107 = vmatpush1.bf16.msra.mxu0 %v7623_v63  ;;  %6133 = vmatpush3.bf16.msra.mxu1 %v7698_v26 }
 0x2a4   :  { %6109 = vmatprep.subr.bf16.mxu0 %v7632_v2  ;;  %6134 = vmatprep.subr.bf16.mxu1 %v9407_v39 }
 0x2a7   :  { %6111 = vmatpush1.bf16.msra.mxu0 %v7657_v10  ;;  %6136 = vmatpush3.bf16.msra.mxu1 %v7713_v29 }
 0x2a8   :  { %6113 = vmatprep.subr.bf16.mxu0 %v7666_v14  ;;  %6137 = vmatprep.subr.bf16.mxu1 %v9407_v39 }
 0x2ab   :  { %6115 = vmatpush1.bf16.msra.mxu0 %v7685_v21  ;;  %6139 = vmatpush3.bf16.msra.mxu1 %v7726_v34  ;;  %v9468_v21 = vld [vmem:[#allocation41_spill] sm:$0xff] }
 0x2ac   :  { %6141 = vmatprep.subr.bf16.mxu0 %v7740_v37  ;;  %6172 = vmatprep.subr.bf16.mxu1 %v9407_v39  ;;  %v9455_v37 = vld [vmem:[#allocation28_spill] sm:$0xff] }
 0x2ae   :  { %1487 = vmatmul.mubr.f32.vlgmr.msra.gmra.mrb[4].mxu0 %v8335_v13  ;;  %5108 = vmatmul.mubr.f32.vlgmr.msra.gmra.mrb[20].mxu1 %v8335_v13 }
 0x2af   :  { %6143 = vmatpush1.bf16.msra.mxu0 %v7751_v43  ;;  %6174 = vmatpush3.bf16.msra.mxu1 %v7757_v46  ;;  %v9453_v46 = vld [vmem:[#allocation26_spill] sm:$0xff]  ;;  %v9454_v43 = vld [vmem:[#allocation27_spill] sm:$0xff] }
 0x2b0   :  { %6145 = vmatprep.subr.bf16.mxu0 %v7767_v50  ;;  %6175 = vmatprep.subr.bf16.mxu1 %v9407_v39  ;;  %v9452_v50 = vld [vmem:[#allocation25_spill] sm:$0xff] }
 0x2b1   :  { %1649 = vmatprep.mubr.f32.mxu0 %v9409_v36  ;;  %5142 = vmatprep.mubr.msk.f32.mxu1 %vm7373_vm1, %v9409_v36 }
 0x2b3   :  { %6147 = vmatpush1.bf16.msra.mxu0 %v7779_v57  ;;  %6177 = vmatpush3.bf16.msra.mxu1 %v7785_v59  ;;  %v9456_v59 = vld [vmem:[#allocation29_spill] sm:$0xff]  ;;  %v9458_v57 = vld [vmem:[#allocation31_spill] sm:$0xff] }
 0x2b4   :  { %6149 = vmatprep.subr.bf16.mxu0 %v9449_v24  ;;  %6178 = vmatprep.subr.bf16.mxu1 %v9407_v39  ;;  %v9457_v24 = vld [vmem:[#allocation30_spill] sm:$0xff] }
 0x2b7   :  { %6151 = vmatpush1.bf16.msra.mxu0 %v9450_v38  ;;  %6180 = vmatpush3.bf16.msra.mxu1 %v9451_v7  ;;  %v9459_v7 = vld [vmem:[#allocation32_spill] sm:$0xff]  ;;  %v9461_v38 = vld [vmem:[#allocation34_spill] sm:$0xff] }
 0x2b8   :  { %6153 = vmatprep.subr.bf16.mxu0 %v9452_v50  ;;  %6181 = vmatprep.subr.bf16.mxu1 %v9407_v39  ;;  %v9460_v50 = vld [vmem:[#allocation33_spill] sm:$0xff] }
 0x2bb   :  { %6155 = vmatpush1.bf16.msra.mxu0 %v9453_v46  ;;  %6183 = vmatpush3.bf16.msra.mxu1 %v9454_v43  ;;  %v9462_v43 = vld [vmem:[#allocation35_spill] sm:$0xff]  ;;  %v9464_v46 = vld [vmem:[#allocation37_spill] sm:$0xff] }
 0x2bc   :  { %6157 = vmatprep.subr.bf16.mxu0 %v9455_v37  ;;  %6184 = vmatprep.subr.bf16.mxu1 %v9407_v39  ;;  %v9463_v37 = vld [vmem:[#allocation36_spill] sm:$0xff] }
 0x2bf   :  { %6159 = vmatpush1.bf16.msra.mxu0 %v9456_v59  ;;  %6186 = vmatpush3.bf16.msra.mxu1 %v9457_v24  ;;  %v9465_v24 = vld [vmem:[#allocation38_spill] sm:$0xff]  ;;  %v9467_v59 = vld [vmem:[#allocation40_spill] sm:$0xff] }
 0x2c0   :  { %6161 = vmatprep.subr.bf16.mxu0 %v9458_v57  ;;  %6187 = vmatprep.subr.bf16.mxu1 %v9407_v39  ;;  %v9466_v57 = vld [vmem:[#allocation39_spill] sm:$0xff] }
 0x2c3   :  { %6163 = vmatpush1.bf16.msra.mxu0 %v9459_v7  ;;  %6189 = vmatpush3.bf16.msra.mxu1 %v9460_v50 }
 0x2c4   :  { %6165 = vmatprep.subr.bf16.mxu0 %v9461_v38  ;;  %6190 = vmatprep.subr.bf16.mxu1 %v9407_v39 }
 0x2c7   :  { %6167 = vmatpush1.bf16.msra.mxu0 %v9462_v43  ;;  %6192 = vmatpush3.bf16.msra.mxu1 %v9463_v37 }
 0x2c8   :  { %6169 = vmatprep.subr.bf16.mxu0 %v9464_v46  ;;  %6193 = vmatprep.subr.bf16.mxu1 %v9407_v39  ;;  %v9469_v46 = vld [vmem:[#allocation65_spill] sm:$0xff] }
 0x2cb   :  { %6171 = vmatpush1.bf16.msra.mxu0 %v9465_v24  ;;  %6195 = vmatpush3.bf16.msra.mxu1 %v9466_v57 }
 0x2cc   :  { %6197 = vmatprep.subr.bf16.mxu0 %v9467_v59  ;;  %6228 = vmatprep.subr.bf16.mxu1 %v9407_v39 }
 0x341   :  { %v1255_v50 = vpop.f32.mrb[16].mxu1 }
 0x342   :  { %v5039_v38 = vpop.f32.mrb[17].mxu1  ;;  %v1256_v56 = vadd.f32 %v1255_v50, %v8324_v5 }
 0x361   :  { %v1325_v7 = vpop.f32.mrb[18].mxu0  ;;  %v1396_v34 = vpop.f32.mrb[18].mxu1 }
 0x362   :  { %v7134_v43 = vadd.f32 %v1325_v7, %v9468_v21  ;;  %v1327_v14 = vpop.f32.mrb[19].mxu0  ;;  %v5074_v37 = vpop.f32.mrb[19].mxu1  ;;  %v1414_v63 = vadd.f32 %v8320_v54, %v1396_v34 }
 0x363   :  { %v7135_v10 = vadd.f32 %v1327_v14, %v9469_v46 }
 0x364   :  { %v4387_v29 = vmul.f32 -1.442695, %v7134_v43 }
 0x365   :  { %v4388_v2 = vmul.f32 -1.442695, %v7135_v10 }
 0x366   :  { %7214 = vpow2.f32 %v4387_v29 }
 0x367   :  { %7216 = vpow2.f32 %v4388_v2 }
 0x370   :  { %v7215_v24 = vpop.eup %7214 }
 0x371   :  { %v1408_v57 = vadd.f32 1.0, %v7215_v24  ;;  %v7217_v59 = vpop.eup %7216  ;;  %v9470_v24 = vld [vmem:[#allocation47_spill] sm:$0xff] }
 0x372   :  { %v1409_v26 = vadd.f32 1.0, %v7217_v59 }
 0x373   :  { %7218 = vrcp.f32 %v1408_v57 }
 0x374   :  { %7220 = vrcp.f32 %v1409_v26 }
 0x37d   :  { %v7219_v38 = vpop.eup %7218 }
 0x37e   :  { %v1415_v19 = vmul.f32 %v7219_v38, %v1414_v63  ;;  %v7221_v59 = vpop.eup %7220 }
 0x37f   :  { %v1418_v34 = vsub.f32 1.0, %v7221_v59  ;;  %v1420_v63 = vmul.f32 %v7221_v59, %v8330_v27  ;;  %v9491_v27 = vld [vmem:[#allocation24_spill] sm:$0xff] }
 0x380   :  { %v1416_v7 = vadd.f32 %v1415_v19, %v1256_v56 }
 0x381   :  { %v1488_v37 = vpop.f32.mrb[4].mxu0  ;;  %v1559_v43 = vpop.f32.mrb[20].mxu1 }
 0x382   :  { %7222 = vtanh.f32 %v1416_v7  ;;  %v7120_v14 = vadd.f32 %v1488_v37, %v7987_v18  ;;  %v1490_v10 = vpop.f32.mrb[5].mxu0  ;;  %v5109_v2 = vpop.f32.mrb[21].mxu1  ;;  %v1577_v37 = vadd.f32 %v8004_v32, %v1559_v43  ;;  %v9473_v32 = vld [vmem:[#allocation11_spill] sm:$0xff] }
 0x383   :  { %v7121_v57 = vadd.f32 %v1490_v10, %v9470_v24  ;;  %v9472_v2 = vld [vmem:[#allocation44_spill] sm:$0xff]  ;;  %v9475_v43 = vld [vmem:[#allocation7_spill] sm:$0xff] }
 0x384   :  { %v4389_v29 = vmul.f32 -1.442695, %v7120_v14 }
 0x385   :  { %v4390_v46 = vmul.f32 -1.442695, %v7121_v57 }
 0x386   :  { %7224 = vpow2.f32 %v4389_v29 }
 0x387   :  { %7226 = vpow2.f32 %v4390_v46 }
 0x38c   :  { %v7223_v54 = vpop.eup %7222 }
 0x38d   :  { %v1419_v50 = vmul.f32 %v7223_v54, %v1418_v34 }
 0x38f   :  { %v8455_v56 = vadd.f32 %v1420_v63, %v1419_v50  ;;  %v9476_v63 = vld [vmem:[#allocation13_spill] sm:$0xff] }
 0x390   :  { %v7225_v19 = vpop.eup %7224 }
 0x391   :  { %9471 = vst [vmem:[#allocation42_spill] sm:$0xff] %v8455_v56  ;;  %v1571_v26 = vadd.f32 1.0, %v7225_v19  ;;  %v7227_v38 = vpop.eup %7226  ;;  %v9477_v19 = vld [vmem:[#allocation8_spill] sm:$0xff] }
 0x392   :  { %v1572_v7 = vadd.f32 1.0, %v7227_v38  ;;  %v9479_v38 = vld [vmem:[#allocation14_spill] sm:$0xff] }
 0x393   :  { %7228 = vrcp.f32 %v1571_v26  ;;  %v9478_v26 = vld [vmem:[#allocation9_spill] sm:$0xff] }
 0x394   :  { %7230 = vrcp.f32 %v1572_v7  ;;  %v9480_v7 = vld [vmem:[#allocation10_spill] sm:$0xff] }
 0x39d   :  { %v7229_v14 = vpop.eup %7228 }
 0x39e   :  { %v1578_v10 = vmul.f32 %v7229_v14, %v1577_v37  ;;  %v7231_v57 = vpop.eup %7230  ;;  %v9481_v37 = vld [vmem:[#allocation12_spill] sm:$0xff]  ;;  %v9482_v14 = vld [vmem:[#allocation15_spill] sm:$0xff] }
 0x39f   :  { %v1581_v46 = vsub.f32 1.0, %v7231_v57  ;;  %v1583_v59 = vmul.f32 %v7231_v57, %v8335_v13  ;;  %v9474_v13 = vld [vmem:[#allocation6_spill] sm:$0xff]  ;;  %v9486_v57 = vld [vmem:[#allocation19_spill] sm:$0xff] }
 0x3a0   :  { %v1579_v29 = vadd.f32 %v1578_v10, %v9472_v2  ;;  %v9483_v10 = vld [vmem:[#allocation16_spill] sm:$0xff]  ;;  %v9484_v2 = vld [vmem:[#allocation17_spill] sm:$0xff] }
 0x3a2   :  { %7232 = vtanh.f32 %v1579_v29  ;;  %v9485_v29 = vld [vmem:[#allocation18_spill] sm:$0xff] }
 0x3ac   :  { %v7233_v54 = vpop.eup %7232 }
 0x3ad   :  { %v1582_v34 = vmul.f32 %v7233_v54, %v1581_v46  ;;  %v9487_v46 = vld [vmem:[#allocation20_spill] sm:$0xff]  ;;  %v9488_v54 = vld [vmem:[#allocation21_spill] sm:$0xff] }
 0x3af   :  { %v8460_v50 = vadd.f32 %v1583_v59, %v1582_v34  ;;  %v9489_v34 = vld [vmem:[#allocation22_spill] sm:$0xff]  ;;  %v9490_v59 = vld [vmem:[#allocation23_spill] sm:$0xff] }
 0x3b1   :  { %1650 = vmatmul.mubr.f32.vlgmr.msra.gmra.mrb[20].mxu0 %v8460_v50  ;;  %5143 = vmatmul.mubr.f32.vlgmr.msra.gmra.mrb[22].mxu1 %v8460_v50 }
 0x3b2   :  { %6199 = vmatpush1.bf16.msra.mxu0 %v8025_v55  ;;  %6230 = vmatpush3.bf16.msra.mxu1 %v9434_v11 }
 0x3b3   :  { %6201 = vmatprep.subr.bf16.mxu0 %v9435_v48  ;;  %6231 = vmatprep.subr.bf16.mxu1 %v9407_v39 }
 0x3b4   :  { %1790 = vmatprep.mubr.f32.mxu0 %v9409_v36  ;;  %5177 = vmatprep.mubr.msk.f32.mxu1 %vm7373_vm1, %v9409_v36 }
 0x3b6   :  { %6203 = vmatpush1.bf16.msra.mxu0 %v9436_v52  ;;  %6233 = vmatpush3.bf16.msra.mxu1 %v9437_v58 }
 0x3b7   :  { %6205 = vmatprep.subr.bf16.mxu0 %v9438_v41  ;;  %6234 = vmatprep.subr.bf16.mxu1 %v9407_v39 }
 0x3ba   :  { %6207 = vmatpush1.bf16.msra.mxu0 %v9439_v47  ;;  %6236 = vmatpush3.bf16.msra.mxu1 %v9440_v35 }
 0x3bb   :  { %6209 = vmatprep.subr.bf16.mxu0 %v9441_v28  ;;  %6237 = vmatprep.subr.bf16.mxu1 %v9407_v39 }
 0x3be   :  { %6211 = vmatpush1.bf16.msra.mxu0 %v9442_v25  ;;  %6239 = vmatpush3.bf16.msra.mxu1 %v9443_v6 }
 0x3bf   :  { %6213 = vmatprep.subr.bf16.mxu0 %v9444_v3  ;;  %6240 = vmatprep.subr.bf16.mxu1 %v9407_v39 }
 0x3c2   :  { %6215 = vmatpush1.bf16.msra.mxu0 %v9445_v17  ;;  %6242 = vmatpush3.bf16.msra.mxu1 %v9446_v0 }
 0x3c3   :  { %6217 = vmatprep.subr.bf16.mxu0 %v9447_v62  ;;  %6243 = vmatprep.subr.bf16.mxu1 %v9407_v39 }
 0x3c6   :  { %6219 = vmatpush1.bf16.msra.mxu0 %v9448_v9  ;;  %6245 = vmatpush3.bf16.msra.mxu1 %v8172_v20 }
 0x3c7   :  { %6221 = vmatprep.subr.bf16.mxu0 %v8179_v4  ;;  %6246 = vmatprep.subr.bf16.mxu1 %v9407_v39 }
 0x3ca   :  { %6223 = vmatpush1.bf16.msra.mxu0 %v8198_v49  ;;  %6248 = vmatpush3.bf16.msra.mxu1 %v8200_v30 }
 0x3cb   :  { %6225 = vmatprep.subr.bf16.mxu0 %v8207_v44  ;;  %6249 = vmatprep.subr.bf16.mxu1 %v9407_v39 }
 0x3ce   :  { %6227 = vmatpush1.bf16.msra.mxu0 %v8220_v1  ;;  %6251 = vmatpush3.bf16.msra.mxu1 %v8222_v60 }
 0x3cf   :  { %6253 = vmatprep.subr.bf16.mxu0 %v7464_v12  ;;  %6284 = vmatprep.subr.bf16.mxu1 %v9407_v39 }
 0x3d1   :  { %1791 = vmatmul.mubr.f32.vlgmr.msra.gmra.mrb[20].mxu0 %v8455_v56  ;;  %5178 = vmatmul.mubr.f32.vlgmr.msra.gmra.mrb[24].mxu1 %v8455_v56 }
 0x3d2   :  { %6255 = vmatpush1.bf16.msra.mxu0 %v7472_v15  ;;  %6286 = vmatpush3.bf16.msra.mxu1 %v7548_v40 }
 0x3d3   :  { %6257 = vmatprep.subr.bf16.mxu0 %v7475_v16  ;;  %6287 = vmatprep.subr.bf16.mxu1 %v9407_v39 }
 0x3d4   :  { %1953 = vmatprep.mubr.f32.mxu0 %v9409_v36  ;;  %5212 = vmatprep.mubr.msk.f32.mxu1 %vm7373_vm1, %v9409_v36 }
 0x3d6   :  { %6259 = vmatpush1.bf16.msra.mxu0 %v7495_v22  ;;  %6289 = vmatpush3.bf16.msra.mxu1 %v7582_v51 }
 0x3d7   :  { %6261 = vmatprep.subr.bf16.mxu0 %v7498_v23  ;;  %6290 = vmatprep.subr.bf16.mxu1 %v9407_v39 }
 0x3da   :  { %6263 = vmatpush1.bf16.msra.mxu0 %v7524_v31  ;;  %6292 = vmatpush3.bf16.msra.mxu1 %v7616_v61 }
 0x3db   :  { %6265 = vmatprep.subr.bf16.mxu0 %v7527_v33  ;;  %6293 = vmatprep.subr.bf16.mxu1 %v9407_v39 }
 0x3de   :  { %6267 = vmatpush1.bf16.msra.mxu0 %v7555_v42  ;;  %6295 = vmatpush3.bf16.msra.mxu1 %v7650_v8 }
 0x3df   :  { %6269 = vmatprep.subr.bf16.mxu0 %v7564_v45  ;;  %6296 = vmatprep.subr.bf16.mxu1 %v9407_v39 }
 0x3e2   :  { %6271 = vmatpush1.bf16.msra.mxu0 %v7589_v53  ;;  %6298 = vmatpush3.bf16.msra.mxu1 %v9473_v32 }
 0x3e3   :  { %6273 = vmatprep.subr.bf16.mxu0 %v9474_v13  ;;  %6299 = vmatprep.subr.bf16.mxu1 %v9407_v39 }
 0x3e6   :  { %6275 = vmatpush1.bf16.msra.mxu0 %v9475_v43  ;;  %6301 = vmatpush3.bf16.msra.mxu1 %v9476_v63  ;;  %v9509_v63 = vld [vmem:[#allocation66_spill] sm:$0xff] }
 0x3e7   :  { %6277 = vmatprep.subr.bf16.mxu0 %v9477_v19  ;;  %6302 = vmatprep.subr.bf16.mxu1 %v9407_v39 }
 0x3ea   :  { %6279 = vmatpush1.bf16.msra.mxu0 %v9478_v26  ;;  %6304 = vmatpush3.bf16.msra.mxu1 %v9479_v38 }
 0x3eb   :  { %6281 = vmatprep.subr.bf16.mxu0 %v9480_v7  ;;  %6305 = vmatprep.subr.bf16.mxu1 %v9407_v39 }
 0x3ee   :  { %6283 = vmatpush1.bf16.msra.mxu0 %v9481_v37  ;;  %6307 = vmatpush3.bf16.msra.mxu1 %v9482_v14 }
 0x3ef   :  { %6309 = vmatprep.subr.bf16.mxu0 %v9483_v10  ;;  %6340 = vmatprep.subr.bf16.mxu1 %v9407_v39  ;;  %v9495_v10 = vld [vmem:[#allocation28_spill] sm:$0xff] }
 0x3f1   :  { %1954 = vmatmul.mubr.f32.vlgmr.msra.gmra.mrb[6].mxu0 %v8460_v50  ;;  %5213 = vmatmul.mubr.f32.vlgmr.msra.gmra.mrb[26].mxu1 %v8460_v50 }
 0x3f2   :  { %6311 = vmatpush1.bf16.msra.mxu0 %v9484_v2  ;;  %6342 = vmatpush3.bf16.msra.mxu1 %v9485_v29  ;;  %v9493_v29 = vld [vmem:[#allocation26_spill] sm:$0xff]  ;;  %v9494_v2 = vld [vmem:[#allocation27_spill] sm:$0xff] }
 0x3f3   :  { %6313 = vmatprep.subr.bf16.mxu0 %v9486_v57  ;;  %6343 = vmatprep.subr.bf16.mxu1 %v9407_v39  ;;  %v9492_v57 = vld [vmem:[#allocation25_spill] sm:$0xff] }
 0x3f4   :  { %2116 = vmatprep.mubr.f32.mxu0 %v9409_v36  ;;  %5247 = vmatprep.mubr.msk.f32.mxu1 %vm7373_vm1, %v9409_v36 }
 0x3f6   :  { %6315 = vmatpush1.bf16.msra.mxu0 %v9487_v46  ;;  %6345 = vmatpush3.bf16.msra.mxu1 %v9488_v54  ;;  %v9496_v54 = vld [vmem:[#allocation29_spill] sm:$0xff]  ;;  %v9498_v46 = vld [vmem:[#allocation31_spill] sm:$0xff] }
 0x3f7   :  { %6317 = vmatprep.subr.bf16.mxu0 %v9489_v34  ;;  %6346 = vmatprep.subr.bf16.mxu1 %v9407_v39  ;;  %v9497_v34 = vld [vmem:[#allocation30_spill] sm:$0xff] }
 0x3fa   :  { %6319 = vmatpush1.bf16.msra.mxu0 %v9490_v59  ;;  %6348 = vmatpush3.bf16.msra.mxu1 %v9491_v27  ;;  %v9499_v27 = vld [vmem:[#allocation32_spill] sm:$0xff]  ;;  %v9501_v59 = vld [vmem:[#allocation34_spill] sm:$0xff] }
 0x3fb   :  { %6321 = vmatprep.subr.bf16.mxu0 %v9492_v57  ;;  %6349 = vmatprep.subr.bf16.mxu1 %v9407_v39  ;;  %v9500_v57 = vld [vmem:[#allocation33_spill] sm:$0xff] }
 0x3fe   :  { %6323 = vmatpush1.bf16.msra.mxu0 %v9493_v29  ;;  %6351 = vmatpush3.bf16.msra.mxu1 %v9494_v2  ;;  %v9502_v2 = vld [vmem:[#allocation35_spill] sm:$0xff]  ;;  %v9504_v29 = vld [vmem:[#allocation37_spill] sm:$0xff] }
 0x3ff   :  { %6325 = vmatprep.subr.bf16.mxu0 %v9495_v10  ;;  %6352 = vmatprep.subr.bf16.mxu1 %v9407_v39  ;;  %v9503_v10 = vld [vmem:[#allocation36_spill] sm:$0xff] }
 0x402   :  { %6327 = vmatpush1.bf16.msra.mxu0 %v9496_v54  ;;  %6354 = vmatpush3.bf16.msra.mxu1 %v9497_v34  ;;  %v9505_v34 = vld [vmem:[#allocation38_spill] sm:$0xff]  ;;  %v9507_v54 = vld [vmem:[#allocation40_spill] sm:$0xff] }
 0x403   :  { %6329 = vmatprep.subr.bf16.mxu0 %v9498_v46  ;;  %6355 = vmatprep.subr.bf16.mxu1 %v9407_v39  ;;  %v9506_v46 = vld [vmem:[#allocation39_spill] sm:$0xff] }
 0x406   :  { %6331 = vmatpush1.bf16.msra.mxu0 %v9499_v27  ;;  %6357 = vmatpush3.bf16.msra.mxu1 %v9500_v57 }
 0x407   :  { %6333 = vmatprep.subr.bf16.mxu0 %v9501_v59  ;;  %6358 = vmatprep.subr.bf16.mxu1 %v9407_v39 }
 0x40a   :  { %6335 = vmatpush1.bf16.msra.mxu0 %v9502_v2  ;;  %6360 = vmatpush3.bf16.msra.mxu1 %v9503_v10 }
 0x40b   :  { %6337 = vmatprep.subr.bf16.mxu0 %v9504_v29  ;;  %6361 = vmatprep.subr.bf16.mxu1 %v9407_v39  ;;  %v9508_v29 = vld [vmem:[#allocation65_spill] sm:$0xff] }
 0x40e   :  { %6339 = vmatpush1.bf16.msra.mxu0 %v9505_v34  ;;  %6363 = vmatpush3.bf16.msra.mxu1 %v9506_v46 }
 0x40f   :  { %6365 = vmatprep.subr.bf16.mxu0 %v9507_v54  ;;  %6396 = vmatprep.subr.bf16.mxu1 %v9407_v39 }
 0x484   :  { %v1722_v57 = vpop.f32.mrb[22].mxu1 }
 0x485   :  { %v5144_v59 = vpop.f32.mrb[23].mxu1  ;;  %v1723_v13 = vadd.f32 %v1722_v57, %v8324_v5 }
 0x4a4   :  { %v1792_v27 = vpop.f32.mrb[20].mxu0  ;;  %v1863_v14 = vpop.f32.mrb[24].mxu1 }
 0x4a5   :  { %v7136_v2 = vadd.f32 %v1792_v27, %v9468_v21  ;;  %v1794_v37 = vpop.f32.mrb[21].mxu0  ;;  %v5179_v10 = vpop.f32.mrb[25].mxu1  ;;  %v1881_v43 = vadd.f32 %v9509_v63, %v1863_v14 }
 0x4a6   :  { %v7137_v38 = vadd.f32 %v1794_v37, %v9508_v29 }
 0x4a7   :  { %v4391_v7 = vmul.f32 -1.442695, %v7136_v2 }
 0x4a8   :  { %v4392_v26 = vmul.f32 -1.442695, %v7137_v38 }
 0x4a9   :  { %7234 = vpow2.f32 %v4391_v7 }
 0x4aa   :  { %7236 = vpow2.f32 %v4392_v26 }
 0x4b3   :  { %v7235_v34 = vpop.eup %7234 }
 0x4b4   :  { %v1875_v46 = vadd.f32 1.0, %v7235_v34  ;;  %v7237_v54 = vpop.eup %7236 }
 0x4b5   :  { %v1876_v19 = vadd.f32 1.0, %v7237_v54 }
 0x4b6   :  { %7238 = vrcp.f32 %v1875_v46 }
 0x4b7   :  { %7240 = vrcp.f32 %v1876_v19 }
 0x4c0   :  { %v7239_v59 = vpop.eup %7238 }
 0x4c1   :  { %v1882_v32 = vmul.f32 %v7239_v59, %v1881_v43  ;;  %v7241_v54 = vpop.eup %7240 }
 0x4c2   :  { %v1885_v14 = vsub.f32 1.0, %v7241_v54  ;;  %v1887_v43 = vmul.f32 %v7241_v54, %v8455_v56  ;;  %v9528_v56 = vld [vmem:[#allocation22_spill] sm:$0xff] }
 0x4c3   :  { %v1883_v27 = vadd.f32 %v1882_v32, %v1723_v13 }
 0x4c4   :  { %v1955_v10 = vpop.f32.mrb[6].mxu0  ;;  %v2026_v2 = vpop.f32.mrb[26].mxu1 }
 0x4c5   :  { %7242 = vtanh.f32 %v1883_v27  ;;  %v7122_v7 = vadd.f32 %v1955_v10, %v7987_v18  ;;  %v1957_v38 = vpop.f32.mrb[7].mxu0  ;;  %v5214_v26 = vpop.f32.mrb[27].mxu1  ;;  %v8585_v10 = vld [vmem:[%s9221_s4] ss:$0 sm:$0xff] }
 0x4c6   :  { %v7123_v46 = vadd.f32 %v1957_v38, %v9470_v24 }
 0x4c7   :  { %v4393_v37 = vmul.f32 -1.442695, %v7122_v7  ;;  %v2044_v7 = vadd.f32 %v8585_v10, %v2026_v2  ;;  %v9513_v2 = vld [vmem:[#allocation6_spill] sm:$0xff] }
 0x4c8   :  { %v4394_v34 = vmul.f32 -1.442695, %v7123_v46 }
 0x4c9   :  { %7244 = vpow2.f32 %v4393_v37 }
 0x4ca   :  { %7246 = vpow2.f32 %v4394_v34 }
 0x4cf   :  { %v7243_v63 = vpop.eup %7242 }
 0x4d0   :  { %v1886_v57 = vmul.f32 %v7243_v63, %v1885_v14  ;;  %v9511_v63 = vld [vmem:[#allocation43_spill] sm:$0xff] }
 0x4d2   :  { %v8580_v32 = vadd.f32 %v1887_v43, %v1886_v57 }
 0x4d3   :  { %v7245_v13 = vpop.eup %7244 }
 0x4d4   :  { %9510 = vst [vmem:[#allocation50_spill] sm:$0xff] %v8580_v32  ;;  %v2038_v19 = vadd.f32 1.0, %v7245_v13  ;;  %v7247_v59 = vpop.eup %7246  ;;  %v9514_v13 = vld [vmem:[#allocation7_spill] sm:$0xff] }
 0x4d5   :  { %v2039_v27 = vadd.f32 1.0, %v7247_v59  ;;  %v9516_v59 = vld [vmem:[#allocation8_spill] sm:$0xff] }
 0x4d6   :  { %7248 = vrcp.f32 %v2038_v19  ;;  %v9515_v19 = vld [vmem:[#allocation13_spill] sm:$0xff] }
 0x4d7   :  { %7250 = vrcp.f32 %v2039_v27  ;;  %v9517_v27 = vld [vmem:[#allocation9_spill] sm:$0xff] }
 0x4e0   :  { %v7249_v38 = vpop.eup %7248 }
 0x4e1   :  { %v2045_v26 = vmul.f32 %v7249_v38, %v2044_v7  ;;  %v7251_v46 = vpop.eup %7250  ;;  %v9518_v7 = vld [vmem:[#allocation14_spill] sm:$0xff] }
 0x4e2   :  { %v2048_v54 = vsub.f32 1.0, %v7251_v46  ;;  %v2050_v57 = vmul.f32 %v7251_v46, %v8460_v50  ;;  %v9512_v50 = vld [vmem:[#allocation11_spill] sm:$0xff]  ;;  %v9519_v38 = vld [vmem:[#allocation10_spill] sm:$0xff]  ;;  %v9523_v46 = vld [vmem:[#allocation17_spill] sm:$0xff] }
 0x4e3   :  { %v2046_v37 = vadd.f32 %v2045_v26, %v9511_v63  ;;  %v9520_v26 = vld [vmem:[#allocation12_spill] sm:$0xff]  ;;  %v9521_v63 = vld [vmem:[#allocation15_spill] sm:$0xff] }
 0x4e5   :  { %7252 = vtanh.f32 %v2046_v37  ;;  %v9522_v37 = vld [vmem:[#allocation16_spill] sm:$0xff] }
 0x4ef   :  { %v7253_v34 = vpop.eup %7252 }
 0x4f0   :  { %v2049_v14 = vmul.f32 %v7253_v34, %v2048_v54  ;;  %v9524_v54 = vld [vmem:[#allocation18_spill] sm:$0xff]  ;;  %v9525_v34 = vld [vmem:[#allocation19_spill] sm:$0xff] }
 0x4f2   :  { %v8590_v43 = vadd.f32 %v2050_v57, %v2049_v14  ;;  %v9526_v14 = vld [vmem:[#allocation20_spill] sm:$0xff]  ;;  %v9527_v57 = vld [vmem:[#allocation21_spill] sm:$0xff] }
 0x4f4   :  { %2117 = vmatmul.mubr.f32.vlgmr.msra.gmra.mrb[22].mxu0 %v8590_v43  ;;  %5248 = vmatmul.mubr.f32.vlgmr.msra.gmra.mrb[28].mxu1 %v8590_v43 }
 0x4f5   :  { %6367 = vmatpush1.bf16.msra.mxu0 %v8025_v55  ;;  %6398 = vmatpush3.bf16.msra.mxu1 %v9434_v11 }
 0x4f6   :  { %6369 = vmatprep.subr.bf16.mxu0 %v9435_v48  ;;  %6399 = vmatprep.subr.bf16.mxu1 %v9407_v39 }
 0x4f7   :  { %2257 = vmatprep.mubr.f32.mxu0 %v9409_v36  ;;  %5282 = vmatprep.mubr.msk.f32.mxu1 %vm7373_vm1, %v9409_v36 }
 0x4f9   :  { %6371 = vmatpush1.bf16.msra.mxu0 %v9436_v52  ;;  %6401 = vmatpush3.bf16.msra.mxu1 %v9437_v58 }
 0x4fa   :  { %6373 = vmatprep.subr.bf16.mxu0 %v9438_v41  ;;  %6402 = vmatprep.subr.bf16.mxu1 %v9407_v39 }
 0x4fd   :  { %6375 = vmatpush1.bf16.msra.mxu0 %v9439_v47  ;;  %6404 = vmatpush3.bf16.msra.mxu1 %v9440_v35 }
 0x4fe   :  { %6377 = vmatprep.subr.bf16.mxu0 %v9441_v28  ;;  %6405 = vmatprep.subr.bf16.mxu1 %v9407_v39 }
 0x501   :  { %6379 = vmatpush1.bf16.msra.mxu0 %v9442_v25  ;;  %6407 = vmatpush3.bf16.msra.mxu1 %v9443_v6 }
 0x502   :  { %6381 = vmatprep.subr.bf16.mxu0 %v9444_v3  ;;  %6408 = vmatprep.subr.bf16.mxu1 %v9407_v39 }
 0x505   :  { %6383 = vmatpush1.bf16.msra.mxu0 %v9445_v17  ;;  %6410 = vmatpush3.bf16.msra.mxu1 %v9446_v0 }
 0x506   :  { %6385 = vmatprep.subr.bf16.mxu0 %v9447_v62  ;;  %6411 = vmatprep.subr.bf16.mxu1 %v9407_v39 }
 0x509   :  { %6387 = vmatpush1.bf16.msra.mxu0 %v9448_v9  ;;  %6413 = vmatpush3.bf16.msra.mxu1 %v8172_v20 }
 0x50a   :  { %6389 = vmatprep.subr.bf16.mxu0 %v8179_v4  ;;  %6414 = vmatprep.subr.bf16.mxu1 %v9407_v39 }
 0x50d   :  { %6391 = vmatpush1.bf16.msra.mxu0 %v8198_v49  ;;  %6416 = vmatpush3.bf16.msra.mxu1 %v8200_v30 }
 0x50e   :  { %6393 = vmatprep.subr.bf16.mxu0 %v8207_v44  ;;  %6417 = vmatprep.subr.bf16.mxu1 %v9407_v39 }
 0x511   :  { %6395 = vmatpush1.bf16.msra.mxu0 %v8220_v1  ;;  %6419 = vmatpush3.bf16.msra.mxu1 %v8222_v60 }
 0x512   :  { %6421 = vmatprep.subr.bf16.mxu0 %v7464_v12  ;;  %6452 = vmatprep.subr.bf16.mxu1 %v9407_v39 }
 0x514   :  { %2258 = vmatmul.mubr.f32.vlgmr.msra.gmra.mrb[22].mxu0 %v8580_v32  ;;  %5283 = vmatmul.mubr.f32.vlgmr.msra.gmra.mrb[30].mxu1 %v8580_v32 }
 0x515   :  { %6423 = vmatpush1.bf16.msra.mxu0 %v7472_v15  ;;  %6454 = vmatpush3.bf16.msra.mxu1 %v7548_v40 }
 0x516   :  { %6425 = vmatprep.subr.bf16.mxu0 %v7475_v16  ;;  %6455 = vmatprep.subr.bf16.mxu1 %v9407_v39 }
 0x517   :  { %2420 = vmatprep.mubr.f32.mxu0 %v9409_v36  ;;  %5317 = vmatprep.mubr.msk.f32.mxu1 %vm7373_vm1, %v9409_v36 }
 0x519   :  { %6427 = vmatpush1.bf16.msra.mxu0 %v7495_v22  ;;  %6457 = vmatpush3.bf16.msra.mxu1 %v7582_v51 }
 0x51a   :  { %6429 = vmatprep.subr.bf16.mxu0 %v7498_v23  ;;  %6458 = vmatprep.subr.bf16.mxu1 %v9407_v39 }
 0x51d   :  { %6431 = vmatpush1.bf16.msra.mxu0 %v7524_v31  ;;  %6460 = vmatpush3.bf16.msra.mxu1 %v7616_v61 }
 0x51e   :  { %6433 = vmatprep.subr.bf16.mxu0 %v7527_v33  ;;  %6461 = vmatprep.subr.bf16.mxu1 %v9407_v39 }
 0x521   :  { %6435 = vmatpush1.bf16.msra.mxu0 %v7555_v42  ;;  %6463 = vmatpush3.bf16.msra.mxu1 %v7650_v8 }
 0x522   :  { %6437 = vmatprep.subr.bf16.mxu0 %v7564_v45  ;;  %6464 = vmatprep.subr.bf16.mxu1 %v9407_v39 }
 0x525   :  { %6439 = vmatpush1.bf16.msra.mxu0 %v7589_v53  ;;  %6466 = vmatpush3.bf16.msra.mxu1 %v9512_v50 }
 0x526   :  { %6441 = vmatprep.subr.bf16.mxu0 %v9513_v2  ;;  %6467 = vmatprep.subr.bf16.mxu1 %v9407_v39 }
 0x529   :  { %6443 = vmatpush1.bf16.msra.mxu0 %v9514_v13  ;;  %6469 = vmatpush3.bf16.msra.mxu1 %v9515_v19  ;;  %v9547_v13 = vld [vmem:[#allocation66_spill] sm:$0xff] }
 0x52a   :  { %6445 = vmatprep.subr.bf16.mxu0 %v9516_v59  ;;  %6470 = vmatprep.subr.bf16.mxu1 %v9407_v39 }
 0x52d   :  { %6447 = vmatpush1.bf16.msra.mxu0 %v9517_v27  ;;  %6472 = vmatpush3.bf16.msra.mxu1 %v9518_v7 }
 0x52e   :  { %6449 = vmatprep.subr.bf16.mxu0 %v9519_v38  ;;  %6473 = vmatprep.subr.bf16.mxu1 %v9407_v39 }
 0x531   :  { %6451 = vmatpush1.bf16.msra.mxu0 %v9520_v26  ;;  %6475 = vmatpush3.bf16.msra.mxu1 %v9521_v63  ;;  %v9533_v63 = vld [vmem:[#allocation27_spill] sm:$0xff]  ;;  %v9534_v26 = vld [vmem:[#allocation28_spill] sm:$0xff] }
 0x532   :  { %6477 = vmatprep.subr.bf16.mxu0 %v9522_v37  ;;  %6508 = vmatprep.subr.bf16.mxu1 %v9407_v39  ;;  %v9532_v37 = vld [vmem:[#allocation26_spill] sm:$0xff] }
 0x534   :  { %2421 = vmatmul.mubr.f32.vlgmr.msra.gmra.mrb[8].mxu0 %v8590_v43  ;;  %5318 = vmatmul.mubr.f32.vlgmr.msra.gmra.mrb[32].mxu1 %v8590_v43 }
 0x535   :  { %6479 = vmatpush1.bf16.msra.mxu0 %v9523_v46  ;;  %6510 = vmatpush3.bf16.msra.mxu1 %v9524_v54  ;;  %v9529_v46 = vld [vmem:[#allocation23_spill] sm:$0xff]  ;;  %v9530_v54 = vld [vmem:[#allocation24_spill] sm:$0xff] }
 0x536   :  { %6481 = vmatprep.subr.bf16.mxu0 %v9525_v34  ;;  %6511 = vmatprep.subr.bf16.mxu1 %v9407_v39  ;;  %v9531_v34 = vld [vmem:[#allocation25_spill] sm:$0xff] }
 0x537   :  { %2583 = vmatprep.mubr.f32.mxu0 %v9409_v36  ;;  %5352 = vmatprep.mubr.msk.f32.mxu1 %vm7373_vm1, %v9409_v36 }
 0x539   :  { %6483 = vmatpush1.bf16.msra.mxu0 %v9526_v14  ;;  %6513 = vmatpush3.bf16.msra.mxu1 %v9527_v57  ;;  %v9535_v57 = vld [vmem:[#allocation29_spill] sm:$0xff]  ;;  %v9537_v14 = vld [vmem:[#allocation31_spill] sm:$0xff] }
 0x53a   :  { %6485 = vmatprep.subr.bf16.mxu0 %v9528_v56  ;;  %6514 = vmatprep.subr.bf16.mxu1 %v9407_v39  ;;  %v9536_v56 = vld [vmem:[#allocation30_spill] sm:$0xff] }
 0x53d   :  { %6487 = vmatpush1.bf16.msra.mxu0 %v9529_v46  ;;  %6516 = vmatpush3.bf16.msra.mxu1 %v9530_v54  ;;  %v9538_v54 = vld [vmem:[#allocation32_spill] sm:$0xff]  ;;  %v9540_v46 = vld [vmem:[#allocation34_spill] sm:$0xff] }
 0x53e   :  { %6489 = vmatprep.subr.bf16.mxu0 %v9531_v34  ;;  %6517 = vmatprep.subr.bf16.mxu1 %v9407_v39  ;;  %v9539_v34 = vld [vmem:[#allocation33_spill] sm:$0xff] }
 0x541   :  { %6491 = vmatpush1.bf16.msra.mxu0 %v9532_v37  ;;  %6519 = vmatpush3.bf16.msra.mxu1 %v9533_v63  ;;  %v9541_v63 = vld [vmem:[#allocation35_spill] sm:$0xff]  ;;  %v9543_v37 = vld [vmem:[#allocation37_spill] sm:$0xff] }
 0x542   :  { %6493 = vmatprep.subr.bf16.mxu0 %v9534_v26  ;;  %6520 = vmatprep.subr.bf16.mxu1 %v9407_v39  ;;  %v9542_v26 = vld [vmem:[#allocation36_spill] sm:$0xff] }
 0x545   :  { %6495 = vmatpush1.bf16.msra.mxu0 %v9535_v57  ;;  %6522 = vmatpush3.bf16.msra.mxu1 %v9536_v56  ;;  %v9544_v56 = vld [vmem:[#allocation38_spill] sm:$0xff]  ;;  %v9546_v57 = vld [vmem:[#allocation40_spill] sm:$0xff] }
 0x546   :  { %6497 = vmatprep.subr.bf16.mxu0 %v9537_v14  ;;  %6523 = vmatprep.subr.bf16.mxu1 %v9407_v39  ;;  %v9545_v14 = vld [vmem:[#allocation39_spill] sm:$0xff] }
 0x549   :  { %6499 = vmatpush1.bf16.msra.mxu0 %v9538_v54  ;;  %6525 = vmatpush3.bf16.msra.mxu1 %v9539_v34 }
 0x54a   :  { %6501 = vmatprep.subr.bf16.mxu0 %v9540_v46  ;;  %6526 = vmatprep.subr.bf16.mxu1 %v9407_v39 }
 0x54d   :  { %6503 = vmatpush1.bf16.msra.mxu0 %v9541_v63  ;;  %6528 = vmatpush3.bf16.msra.mxu1 %v9542_v26 }
 0x54e   :  { %6505 = vmatprep.subr.bf16.mxu0 %v9543_v37  ;;  %6529 = vmatprep.subr.bf16.mxu1 %v9407_v39 }
 0x551   :  { %6507 = vmatpush1.bf16.msra.mxu0 %v9544_v56  ;;  %6531 = vmatpush3.bf16.msra.mxu1 %v9545_v14 }
 0x552   :  { %6533 = vmatprep.subr.bf16.mxu0 %v9546_v57  ;;  %6564 = vmatprep.subr.bf16.mxu1 %v9407_v39 }
 0x5c7   :  { %v2189_v34 = vpop.f32.mrb[28].mxu1 }
 0x5c8   :  { %v5249_v46 = vpop.f32.mrb[29].mxu1  ;;  %v2190_v50 = vadd.f32 %v2189_v34, %v8324_v5 }
 0x5e7   :  { %v2259_v54 = vpop.f32.mrb[22].mxu0  ;;  %v2330_v38 = vpop.f32.mrb[30].mxu1 }
 0x5e8   :  { %v7138_v63 = vadd.f32 %v2259_v54, %v9468_v21  ;;  %v2261_v7 = vpop.f32.mrb[23].mxu0  ;;  %v5284_v26 = vpop.f32.mrb[31].mxu1  ;;  %v2348_v2 = vadd.f32 %v9547_v13, %v2330_v38 }
 0x5e9   :  { %v7139_v37 = vadd.f32 %v2261_v7, %v9508_v29 }
 0x5ea   :  { %v4395_v27 = vmul.f32 -1.442695, %v7138_v63 }
 0x5eb   :  { %v4396_v59 = vmul.f32 -1.442695, %v7139_v37 }
 0x5ec   :  { %7254 = vpow2.f32 %v4395_v27 }
 0x5ed   :  { %7256 = vpow2.f32 %v4396_v59 }
 0x5f6   :  { %v7255_v56 = vpop.eup %7254 }
 0x5f7   :  { %v2342_v14 = vadd.f32 1.0, %v7255_v56  ;;  %v7257_v57 = vpop.eup %7256 }
 0x5f8   :  { %v2343_v19 = vadd.f32 1.0, %v7257_v57 }
 0x5f9   :  { %7258 = vrcp.f32 %v2342_v14 }
 0x5fa   :  { %7260 = vrcp.f32 %v2343_v19 }
 0x603   :  { %v7259_v46 = vpop.eup %7258 }
 0x604   :  { %v2349_v53 = vmul.f32 %v7259_v46, %v2348_v2  ;;  %v7261_v14 = vpop.eup %7260 }
 0x605   :  { %v2352_v13 = vsub.f32 1.0, %v7261_v14  ;;  %v2354_v2 = vmul.f32 %v7261_v14, %v8580_v32  ;;  %v9567_v32 = vld [vmem:[#allocation22_spill] sm:$0xff] }
 0x606   :  { %v2350_v54 = vadd.f32 %v2349_v53, %v2190_v50 }
 0x607   :  { %v2422_v26 = vpop.f32.mrb[8].mxu0  ;;  %v2493_v63 = vpop.f32.mrb[32].mxu1 }
 0x608   :  { %7262 = vtanh.f32 %v2350_v54  ;;  %v7124_v27 = vadd.f32 %v2422_v26, %v7987_v18  ;;  %v2424_v7 = vpop.f32.mrb[9].mxu0  ;;  %v5319_v59 = vpop.f32.mrb[33].mxu1  ;;  %v2511_v26 = vadd.f32 %v8585_v10, %v2493_v63  ;;  %v9551_v63 = vld [vmem:[#allocation11_spill] sm:$0xff] }
 0x609   :  { %v7125_v56 = vadd.f32 %v2424_v7, %v9470_v24  ;;  %v9549_v59 = vld [vmem:[#allocation46_spill] sm:$0xff] }
 0x60a   :  { %v4397_v37 = vmul.f32 -1.442695, %v7124_v27 }
 0x60b   :  { %v4398_v57 = vmul.f32 -1.442695, %v7125_v56 }
 0x60c   :  { %7264 = vpow2.f32 %v4397_v37 }
 0x60d   :  { %7266 = vpow2.f32 %v4398_v57 }
 0x612   :  { %v7263_v38 = vpop.eup %7262 }
 0x613   :  { %v2353_v34 = vmul.f32 %v7263_v38, %v2352_v13 }
 0x615   :  { %v8710_v53 = vadd.f32 %v2354_v2, %v2353_v34  ;;  %v9552_v2 = vld [vmem:[#allocation6_spill] sm:$0xff] }
 0x616   :  { %v7265_v50 = vpop.eup %7264 }
 0x617   :  { %9548 = vst [vmem:[#allocation51_spill] sm:$0xff] %v8710_v53  ;;  %v2505_v19 = vadd.f32 1.0, %v7265_v50  ;;  %v7267_v46 = vpop.eup %7266  ;;  %v9553_v50 = vld [vmem:[#allocation7_spill] sm:$0xff] }
 0x618   :  { %v2506_v54 = vadd.f32 1.0, %v7267_v46  ;;  %v9555_v46 = vld [vmem:[#allocation8_spill] sm:$0xff] }
 0x619   :  { %7268 = vrcp.f32 %v2505_v19  ;;  %v9554_v19 = vld [vmem:[#allocation13_spill] sm:$0xff] }
 0x61a   :  { %7270 = vrcp.f32 %v2506_v54  ;;  %v9556_v54 = vld [vmem:[#allocation9_spill] sm:$0xff] }
 0x623   :  { %v7269_v27 = vpop.eup %7268 }
 0x624   :  { %v2512_v7 = vmul.f32 %v7269_v27, %v2511_v26  ;;  %v7271_v56 = vpop.eup %7270  ;;  %v9557_v26 = vld [vmem:[#allocation14_spill] sm:$0xff] }
 0x625   :  { %v2515_v57 = vsub.f32 1.0, %v7271_v56  ;;  %v2517_v14 = vmul.f32 %v7271_v56, %v8590_v43  ;;  %v9550_v43 = vld [vmem:[#allocation5_spill] sm:$0xff]  ;;  %v9558_v27 = vld [vmem:[#allocation10_spill] sm:$0xff] }
 0x626   :  { %v2513_v37 = vadd.f32 %v2512_v7, %v9549_v59  ;;  %v9559_v7 = vld [vmem:[#allocation12_spill] sm:$0xff]  ;;  %v9560_v59 = vld [vmem:[#allocation15_spill] sm:$0xff]  ;;  %v9562_v56 = vld [vmem:[#allocation17_spill] sm:$0xff] }
 0x628   :  { %7272 = vtanh.f32 %v2513_v37  ;;  %v9561_v37 = vld [vmem:[#allocation16_spill] sm:$0xff] }
 0x632   :  { %v7273_v13 = vpop.eup %7272 }
 0x633   :  { %v2516_v38 = vmul.f32 %v7273_v13, %v2515_v57  ;;  %v9563_v57 = vld [vmem:[#allocation18_spill] sm:$0xff]  ;;  %v9564_v13 = vld [vmem:[#allocation19_spill] sm:$0xff] }
 0x635   :  { %v8715_v34 = vadd.f32 %v2517_v14, %v2516_v38  ;;  %v9565_v38 = vld [vmem:[#allocation20_spill] sm:$0xff]  ;;  %v9566_v14 = vld [vmem:[#allocation21_spill] sm:$0xff] }
 0x637   :  { %2584 = vmatmul.mubr.f32.vlgmr.msra.gmra.mrb[24].mxu0 %v8715_v34  ;;  %5353 = vmatmul.mubr.f32.vlgmr.msra.gmra.mrb[34].mxu1 %v8715_v34 }
 0x638   :  { %6535 = vmatpush1.bf16.msra.mxu0 %v8025_v55  ;;  %6566 = vmatpush3.bf16.msra.mxu1 %v9434_v11 }
 0x639   :  { %6537 = vmatprep.subr.bf16.mxu0 %v9435_v48  ;;  %6567 = vmatprep.subr.bf16.mxu1 %v9407_v39 }
 0x63a   :  { %2724 = vmatprep.mubr.f32.mxu0 %v9409_v36  ;;  %5387 = vmatprep.mubr.msk.f32.mxu1 %vm7373_vm1, %v9409_v36 }
 0x63c   :  { %6539 = vmatpush1.bf16.msra.mxu0 %v9436_v52  ;;  %6569 = vmatpush3.bf16.msra.mxu1 %v9437_v58 }
 0x63d   :  { %6541 = vmatprep.subr.bf16.mxu0 %v9438_v41  ;;  %6570 = vmatprep.subr.bf16.mxu1 %v9407_v39 }
 0x640   :  { %6543 = vmatpush1.bf16.msra.mxu0 %v9439_v47  ;;  %6572 = vmatpush3.bf16.msra.mxu1 %v9440_v35 }
 0x641   :  { %6545 = vmatprep.subr.bf16.mxu0 %v9441_v28  ;;  %6573 = vmatprep.subr.bf16.mxu1 %v9407_v39 }
 0x644   :  { %6547 = vmatpush1.bf16.msra.mxu0 %v9442_v25  ;;  %6575 = vmatpush3.bf16.msra.mxu1 %v9443_v6 }
 0x645   :  { %6549 = vmatprep.subr.bf16.mxu0 %v9444_v3  ;;  %6576 = vmatprep.subr.bf16.mxu1 %v9407_v39 }
 0x648   :  { %6551 = vmatpush1.bf16.msra.mxu0 %v9445_v17  ;;  %6578 = vmatpush3.bf16.msra.mxu1 %v9446_v0 }
 0x649   :  { %6553 = vmatprep.subr.bf16.mxu0 %v9447_v62  ;;  %6579 = vmatprep.subr.bf16.mxu1 %v9407_v39 }
 0x64c   :  { %6555 = vmatpush1.bf16.msra.mxu0 %v9448_v9  ;;  %6581 = vmatpush3.bf16.msra.mxu1 %v8172_v20 }
 0x64d   :  { %6557 = vmatprep.subr.bf16.mxu0 %v8179_v4  ;;  %6582 = vmatprep.subr.bf16.mxu1 %v9407_v39 }
 0x650   :  { %6559 = vmatpush1.bf16.msra.mxu0 %v8198_v49  ;;  %6584 = vmatpush3.bf16.msra.mxu1 %v8200_v30 }
 0x651   :  { %6561 = vmatprep.subr.bf16.mxu0 %v8207_v44  ;;  %6585 = vmatprep.subr.bf16.mxu1 %v9407_v39 }
 0x654   :  { %6563 = vmatpush1.bf16.msra.mxu0 %v8220_v1  ;;  %6587 = vmatpush3.bf16.msra.mxu1 %v8222_v60 }
 0x655   :  { %6589 = vmatprep.subr.bf16.mxu0 %v7464_v12  ;;  %6620 = vmatprep.subr.bf16.mxu1 %v9407_v39 }
 0x657   :  { %2725 = vmatmul.mubr.f32.vlgmr.msra.gmra.mrb[24].mxu0 %v8710_v53  ;;  %5388 = vmatmul.mubr.f32.vlgmr.msra.gmra.mrb[36].mxu1 %v8710_v53 }
 0x658   :  { %6591 = vmatpush1.bf16.msra.mxu0 %v7472_v15  ;;  %6622 = vmatpush3.bf16.msra.mxu1 %v7548_v40 }
 0x659   :  { %6593 = vmatprep.subr.bf16.mxu0 %v7475_v16  ;;  %6623 = vmatprep.subr.bf16.mxu1 %v9407_v39 }
 0x65a   :  { %2887 = vmatprep.mubr.f32.mxu0 %v9409_v36  ;;  %5422 = vmatprep.mubr.msk.f32.mxu1 %vm7373_vm1, %v9409_v36 }
 0x65c   :  { %6595 = vmatpush1.bf16.msra.mxu0 %v7495_v22  ;;  %6625 = vmatpush3.bf16.msra.mxu1 %v7582_v51 }
 0x65d   :  { %6597 = vmatprep.subr.bf16.mxu0 %v7498_v23  ;;  %6626 = vmatprep.subr.bf16.mxu1 %v9407_v39 }
 0x660   :  { %6599 = vmatpush1.bf16.msra.mxu0 %v7524_v31  ;;  %6628 = vmatpush3.bf16.msra.mxu1 %v7616_v61 }
 0x661   :  { %6601 = vmatprep.subr.bf16.mxu0 %v7527_v33  ;;  %6629 = vmatprep.subr.bf16.mxu1 %v9407_v39 }
 0x664   :  { %6603 = vmatpush1.bf16.msra.mxu0 %v7555_v42  ;;  %6631 = vmatpush3.bf16.msra.mxu1 %v7650_v8 }
 0x665   :  { %6605 = vmatprep.subr.bf16.mxu0 %v7564_v45  ;;  %6632 = vmatprep.subr.bf16.mxu1 %v9407_v39 }
 0x668   :  { %6607 = vmatpush1.bf16.msra.mxu0 %v9550_v43  ;;  %6634 = vmatpush3.bf16.msra.mxu1 %v9551_v63 }
 0x669   :  { %6609 = vmatprep.subr.bf16.mxu0 %v9552_v2  ;;  %6635 = vmatprep.subr.bf16.mxu1 %v9407_v39 }
 0x66c   :  { %6611 = vmatpush1.bf16.msra.mxu0 %v9553_v50  ;;  %6637 = vmatpush3.bf16.msra.mxu1 %v9554_v19 }
 0x66d   :  { %6613 = vmatprep.subr.bf16.mxu0 %v9555_v46  ;;  %6638 = vmatprep.subr.bf16.mxu1 %v9407_v39 }
 0x670   :  { %6615 = vmatpush1.bf16.msra.mxu0 %v9556_v54  ;;  %6640 = vmatpush3.bf16.msra.mxu1 %v9557_v26 }
 0x671   :  { %6617 = vmatprep.subr.bf16.mxu0 %v9558_v27  ;;  %6641 = vmatprep.subr.bf16.mxu1 %v9407_v39 }
 0x674   :  { %6619 = vmatpush1.bf16.msra.mxu0 %v9559_v7  ;;  %6643 = vmatpush3.bf16.msra.mxu1 %v9560_v59  ;;  %v9572_v59 = vld [vmem:[#allocation27_spill] sm:$0xff]  ;;  %v9573_v7 = vld [vmem:[#allocation28_spill] sm:$0xff] }
 0x675   :  { %6645 = vmatprep.subr.bf16.mxu0 %v9561_v37  ;;  %6676 = vmatprep.subr.bf16.mxu1 %v9407_v39  ;;  %v9571_v37 = vld [vmem:[#allocation26_spill] sm:$0xff] }
 0x677   :  { %2888 = vmatmul.mubr.f32.vlgmr.msra.gmra.mrb[10].mxu0 %v8715_v34  ;;  %5423 = vmatmul.mubr.f32.vlgmr.msra.gmra.mrb[38].mxu1 %v8715_v34 }
 0x678   :  { %6647 = vmatpush1.bf16.msra.mxu0 %v9562_v56  ;;  %6678 = vmatpush3.bf16.msra.mxu1 %v9563_v57  ;;  %v9568_v56 = vld [vmem:[#allocation23_spill] sm:$0xff]  ;;  %v9569_v57 = vld [vmem:[#allocation24_spill] sm:$0xff] }
 0x679   :  { %6649 = vmatprep.subr.bf16.mxu0 %v9564_v13  ;;  %6679 = vmatprep.subr.bf16.mxu1 %v9407_v39  ;;  %v9570_v13 = vld [vmem:[#allocation25_spill] sm:$0xff] }
 0x67a   :  { %3050 = vmatprep.mubr.f32.mxu0 %v9409_v36  ;;  %5457 = vmatprep.mubr.msk.f32.mxu1 %vm7373_vm1, %v9409_v36 }
 0x67c   :  { %6651 = vmatpush1.bf16.msra.mxu0 %v9565_v38  ;;  %6681 = vmatpush3.bf16.msra.mxu1 %v9566_v14  ;;  %v9574_v14 = vld [vmem:[#allocation29_spill] sm:$0xff]  ;;  %v9576_v38 = vld [vmem:[#allocation31_spill] sm:$0xff] }
 0x67d   :  { %6653 = vmatprep.subr.bf16.mxu0 %v9567_v32  ;;  %6682 = vmatprep.subr.bf16.mxu1 %v9407_v39  ;;  %v9575_v32 = vld [vmem:[#allocation30_spill] sm:$0xff] }
 0x680   :  { %6655 = vmatpush1.bf16.msra.mxu0 %v9568_v56  ;;  %6684 = vmatpush3.bf16.msra.mxu1 %v9569_v57  ;;  %v9577_v57 = vld [vmem:[#allocation32_spill] sm:$0xff]  ;;  %v9579_v56 = vld [vmem:[#allocation34_spill] sm:$0xff] }
 0x681   :  { %6657 = vmatprep.subr.bf16.mxu0 %v9570_v13  ;;  %6685 = vmatprep.subr.bf16.mxu1 %v9407_v39  ;;  %v9578_v13 = vld [vmem:[#allocation33_spill] sm:$0xff] }
 0x684   :  { %6659 = vmatpush1.bf16.msra.mxu0 %v9571_v37  ;;  %6687 = vmatpush3.bf16.msra.mxu1 %v9572_v59  ;;  %v9580_v59 = vld [vmem:[#allocation35_spill] sm:$0xff]  ;;  %v9582_v37 = vld [vmem:[#allocation37_spill] sm:$0xff] }
 0x685   :  { %6661 = vmatprep.subr.bf16.mxu0 %v9573_v7  ;;  %6688 = vmatprep.subr.bf16.mxu1 %v9407_v39  ;;  %v9581_v7 = vld [vmem:[#allocation36_spill] sm:$0xff] }
 0x688   :  { %6663 = vmatpush1.bf16.msra.mxu0 %v9574_v14  ;;  %6690 = vmatpush3.bf16.msra.mxu1 %v9575_v32  ;;  %v9583_v32 = vld [vmem:[#allocation38_spill] sm:$0xff]  ;;  %v9585_v14 = vld [vmem:[#allocation40_spill] sm:$0xff] }
 0x689   :  { %6665 = vmatprep.subr.bf16.mxu0 %v9576_v38  ;;  %6691 = vmatprep.subr.bf16.mxu1 %v9407_v39  ;;  %v9584_v38 = vld [vmem:[#allocation39_spill] sm:$0xff] }
 0x68c   :  { %6667 = vmatpush1.bf16.msra.mxu0 %v9577_v57  ;;  %6693 = vmatpush3.bf16.msra.mxu1 %v9578_v13 }
 0x68d   :  { %6669 = vmatprep.subr.bf16.mxu0 %v9579_v56  ;;  %6694 = vmatprep.subr.bf16.mxu1 %v9407_v39 }
 0x690   :  { %6671 = vmatpush1.bf16.msra.mxu0 %v9580_v59  ;;  %6696 = vmatpush3.bf16.msra.mxu1 %v9581_v7 }
 0x691   :  { %6673 = vmatprep.subr.bf16.mxu0 %v9582_v37  ;;  %6697 = vmatprep.subr.bf16.mxu1 %v9407_v39 }
 0x694   :  { %6675 = vmatpush1.bf16.msra.mxu0 %v9583_v32  ;;  %6699 = vmatpush3.bf16.msra.mxu1 %v9584_v38 }
 0x695   :  { %6701 = vmatprep.subr.bf16.mxu0 %v9585_v14  ;;  %6732 = vmatprep.subr.bf16.mxu1 %v9407_v39 }
 0x70a   :  { %v2656_v13 = vpop.f32.mrb[34].mxu1 }
 0x70b   :  { %v5354_v56 = vpop.f32.mrb[35].mxu1 }
 0x70c   :  { %v8833_v56 = vld [vmem:[%s9225_s8] ss:$0 sm:$0xff] }
 0x70d   :  { %9586 = vst [vmem:[#allocation52_spill] sm:$0xff] %v8833_v56 }
 0x72a   :  { %v2726_v57 = vpop.f32.mrb[24].mxu0  ;;  %v2797_v27 = vpop.f32.mrb[36].mxu1 }
 0x72b   :  { %v7140_v59 = vadd.f32 %v2726_v57, %v9468_v21  ;;  %v2728_v26 = vpop.f32.mrb[25].mxu0  ;;  %v5389_v7 = vpop.f32.mrb[37].mxu1  ;;  %v2815_v57 = vadd.f32 %v8833_v56, %v2797_v27 }
 0x72c   :  { %v7141_v37 = vadd.f32 %v2728_v26, %v9508_v29  ;;  %v2657_v7 = vadd.f32 %v2656_v13, %v8324_v5 }
 0x72d   :  { %v4399_v54 = vmul.f32 -1.442695, %v7140_v59 }
 0x72e   :  { %v4400_v46 = vmul.f32 -1.442695, %v7141_v37 }
 0x72f   :  { %7274 = vpow2.f32 %v4399_v54 }
 0x730   :  { %7276 = vpow2.f32 %v4400_v46 }
 0x739   :  { %v7275_v32 = vpop.eup %7274 }
 0x73a   :  { %v2809_v38 = vadd.f32 1.0, %v7275_v32  ;;  %v7277_v14 = vpop.eup %7276 }
 0x73b   :  { %v2810_v19 = vadd.f32 1.0, %v7277_v14 }
 0x73c   :  { %7278 = vrcp.f32 %v2809_v38 }
 0x73d   :  { %7280 = vrcp.f32 %v2810_v19 }
 0x746   :  { %v7279_v21 = vpop.eup %7278 }
 0x747   :  { %v2816_v59 = vmul.f32 %v7279_v21, %v2815_v57  ;;  %v7281_v50 = vpop.eup %7280 }
 0x748   :  { %v2819_v27 = vsub.f32 1.0, %v7281_v50  ;;  %v2821_v21 = vmul.f32 %v7281_v50, %v8710_v53  ;;  %v9605_v53 = vld [vmem:[#allocation24_spill] sm:$0xff] }
 0x749   :  { %v2817_v54 = vadd.f32 %v2816_v59, %v2657_v7 }
 0x74a   :  { %v2889_v26 = vpop.f32.mrb[10].mxu0  ;;  %v2960_v46 = vpop.f32.mrb[38].mxu1 }
 0x74b   :  { %7282 = vtanh.f32 %v2817_v54  ;;  %v7126_v32 = vadd.f32 %v2889_v26, %v7987_v18  ;;  %v2891_v37 = vpop.f32.mrb[11].mxu0  ;;  %v5424_v38 = vpop.f32.mrb[39].mxu1  ;;  %v2978_v26 = vadd.f32 %v8585_v10, %v2960_v46  ;;  %v9589_v46 = vld [vmem:[#allocation7_spill] sm:$0xff] }
 0x74c   :  { %v7127_v29 = vadd.f32 %v2891_v37, %v9470_v24  ;;  %v9587_v38 = vld [vmem:[#allocation45_spill] sm:$0xff] }
 0x74d   :  { %v4401_v14 = vmul.f32 -1.442695, %v7126_v32 }
 0x74e   :  { %v4402_v2 = vmul.f32 -1.442695, %v7127_v29 }
 0x74f   :  { %7284 = vpow2.f32 %v4401_v14 }
 0x750   :  { %7286 = vpow2.f32 %v4402_v2 }
 0x755   :  { %v7283_v56 = vpop.eup %7282 }
 0x756   :  { %v2820_v13 = vmul.f32 %v7283_v56, %v2819_v27 }
 0x758   :  { %v8840_v19 = vadd.f32 %v2821_v21, %v2820_v13  ;;  %v9590_v21 = vld [vmem:[#allocation13_spill] sm:$0xff] }
 0x759   :  { %v7285_v57 = vpop.eup %7284 }
 0x75a   :  { %v2972_v7 = vadd.f32 1.0, %v7285_v57  ;;  %v7287_v59 = vpop.eup %7286  ;;  %v9591_v57 = vld [vmem:[#allocation8_spill] sm:$0xff] }
 0x75b   :  { %v2973_v54 = vadd.f32 1.0, %v7287_v59  ;;  %v9593_v59 = vld [vmem:[#allocation14_spill] sm:$0xff] }
 0x75c   :  { %7288 = vrcp.f32 %v2972_v7  ;;  %v9592_v7 = vld [vmem:[#allocation9_spill] sm:$0xff] }
 0x75d   :  { %7290 = vrcp.f32 %v2973_v54  ;;  %v9594_v54 = vld [vmem:[#allocation10_spill] sm:$0xff] }
 0x766   :  { %v7289_v32 = vpop.eup %7288 }
 0x767   :  { %v2979_v37 = vmul.f32 %v7289_v32, %v2978_v26  ;;  %v7291_v14 = vpop.eup %7290  ;;  %v9595_v26 = vld [vmem:[#allocation12_spill] sm:$0xff]  ;;  %v9596_v32 = vld [vmem:[#allocation15_spill] sm:$0xff] }
 0x768   :  { %v2982_v2 = vsub.f32 1.0, %v7291_v14  ;;  %v2984_v50 = vmul.f32 %v7291_v14, %v8715_v34  ;;  %v9588_v34 = vld [vmem:[#allocation6_spill] sm:$0xff]  ;;  %v9600_v14 = vld [vmem:[#allocation19_spill] sm:$0xff] }
 0x769   :  { %v2980_v29 = vadd.f32 %v2979_v37, %v9587_v38  ;;  %v9597_v37 = vld [vmem:[#allocation16_spill] sm:$0xff]  ;;  %v9598_v38 = vld [vmem:[#allocation17_spill] sm:$0xff] }
 0x76b   :  { %7292 = vtanh.f32 %v2980_v29  ;;  %v9599_v29 = vld [vmem:[#allocation18_spill] sm:$0xff] }
 0x775   :  { %v7293_v56 = vpop.eup %7292 }
 0x776   :  { %v2983_v27 = vmul.f32 %v7293_v56, %v2982_v2  ;;  %v9601_v2 = vld [vmem:[#allocation20_spill] sm:$0xff]  ;;  %v9602_v56 = vld [vmem:[#allocation21_spill] sm:$0xff] }
 0x778   :  { %v8845_v13 = vadd.f32 %v2984_v50, %v2983_v27  ;;  %v9603_v27 = vld [vmem:[#allocation22_spill] sm:$0xff]  ;;  %v9604_v50 = vld [vmem:[#allocation23_spill] sm:$0xff] }
 0x77a   :  { %3051 = vmatmul.mubr.f32.vlgmr.msra.gmra.mrb[26].mxu0 %v8845_v13  ;;  %5458 = vmatmul.mubr.f32.vlgmr.msra.gmra.mrb[40].mxu1 %v8845_v13 }
 0x77b   :  { %6703 = vmatpush1.bf16.msra.mxu0 %v8025_v55  ;;  %6734 = vmatpush3.bf16.msra.mxu1 %v9434_v11 }
 0x77c   :  { %6705 = vmatprep.subr.bf16.mxu0 %v9435_v48  ;;  %6735 = vmatprep.subr.bf16.mxu1 %v9407_v39 }
 0x77d   :  { %3191 = vmatprep.mubr.f32.mxu0 %v9409_v36  ;;  %5492 = vmatprep.mubr.msk.f32.mxu1 %vm7373_vm1, %v9409_v36 }
 0x77f   :  { %6707 = vmatpush1.bf16.msra.mxu0 %v9436_v52  ;;  %6737 = vmatpush3.bf16.msra.mxu1 %v9437_v58 }
 0x780   :  { %6709 = vmatprep.subr.bf16.mxu0 %v9438_v41  ;;  %6738 = vmatprep.subr.bf16.mxu1 %v9407_v39 }
 0x783   :  { %6711 = vmatpush1.bf16.msra.mxu0 %v9439_v47  ;;  %6740 = vmatpush3.bf16.msra.mxu1 %v9440_v35 }
 0x784   :  { %6713 = vmatprep.subr.bf16.mxu0 %v9441_v28  ;;  %6741 = vmatprep.subr.bf16.mxu1 %v9407_v39 }
 0x787   :  { %6715 = vmatpush1.bf16.msra.mxu0 %v9442_v25  ;;  %6743 = vmatpush3.bf16.msra.mxu1 %v9443_v6 }
 0x788   :  { %6717 = vmatprep.subr.bf16.mxu0 %v9444_v3  ;;  %6744 = vmatprep.subr.bf16.mxu1 %v9407_v39 }
 0x78b   :  { %6719 = vmatpush1.bf16.msra.mxu0 %v9445_v17  ;;  %6746 = vmatpush3.bf16.msra.mxu1 %v9446_v0 }
 0x78c   :  { %6721 = vmatprep.subr.bf16.mxu0 %v9447_v62  ;;  %6747 = vmatprep.subr.bf16.mxu1 %v9407_v39 }
 0x78f   :  { %6723 = vmatpush1.bf16.msra.mxu0 %v9448_v9  ;;  %6749 = vmatpush3.bf16.msra.mxu1 %v8172_v20 }
 0x790   :  { %6725 = vmatprep.subr.bf16.mxu0 %v8179_v4  ;;  %6750 = vmatprep.subr.bf16.mxu1 %v9407_v39 }
 0x793   :  { %6727 = vmatpush1.bf16.msra.mxu0 %v8198_v49  ;;  %6752 = vmatpush3.bf16.msra.mxu1 %v8200_v30 }
 0x794   :  { %6729 = vmatprep.subr.bf16.mxu0 %v8207_v44  ;;  %6753 = vmatprep.subr.bf16.mxu1 %v9407_v39 }
 0x797   :  { %6731 = vmatpush1.bf16.msra.mxu0 %v8220_v1  ;;  %6755 = vmatpush3.bf16.msra.mxu1 %v8222_v60 }
 0x798   :  { %6757 = vmatprep.subr.bf16.mxu0 %v7464_v12  ;;  %6788 = vmatprep.subr.bf16.mxu1 %v9407_v39 }
 0x79a   :  { %3192 = vmatmul.mubr.f32.vlgmr.msra.gmra.mrb[26].mxu0 %v8840_v19  ;;  %5493 = vmatmul.mubr.f32.vlgmr.msra.gmra.mrb[42].mxu1 %v8840_v19 }
 0x79b   :  { %6759 = vmatpush1.bf16.msra.mxu0 %v7472_v15  ;;  %6790 = vmatpush3.bf16.msra.mxu1 %v7548_v40 }
 0x79c   :  { %6761 = vmatprep.subr.bf16.mxu0 %v7475_v16  ;;  %6791 = vmatprep.subr.bf16.mxu1 %v9407_v39 }
 0x79d   :  { %3354 = vmatprep.mubr.f32.mxu0 %v9409_v36  ;;  %5527 = vmatprep.mubr.msk.f32.mxu1 %vm7373_vm1, %v9409_v36 }
 0x79f   :  { %6763 = vmatpush1.bf16.msra.mxu0 %v7495_v22  ;;  %6793 = vmatpush3.bf16.msra.mxu1 %v7582_v51 }
 0x7a0   :  { %6765 = vmatprep.subr.bf16.mxu0 %v7498_v23  ;;  %6794 = vmatprep.subr.bf16.mxu1 %v9407_v39 }
 0x7a3   :  { %6767 = vmatpush1.bf16.msra.mxu0 %v7524_v31  ;;  %6796 = vmatpush3.bf16.msra.mxu1 %v7616_v61 }
 0x7a4   :  { %6769 = vmatprep.subr.bf16.mxu0 %v7527_v33  ;;  %6797 = vmatprep.subr.bf16.mxu1 %v9407_v39 }
 0x7a7   :  { %6771 = vmatpush1.bf16.msra.mxu0 %v7555_v42  ;;  %6799 = vmatpush3.bf16.msra.mxu1 %v7650_v8 }
 0x7a8   :  { %6773 = vmatprep.subr.bf16.mxu0 %v7564_v45  ;;  %6800 = vmatprep.subr.bf16.mxu1 %v9407_v39 }
 0x7ab   :  { %6775 = vmatpush1.bf16.msra.mxu0 %v9550_v43  ;;  %6802 = vmatpush3.bf16.msra.mxu1 %v9551_v63 }
 0x7ac   :  { %6777 = vmatprep.subr.bf16.mxu0 %v9588_v34  ;;  %6803 = vmatprep.subr.bf16.mxu1 %v9407_v39 }
 0x7af   :  { %6779 = vmatpush1.bf16.msra.mxu0 %v9589_v46  ;;  %6805 = vmatpush3.bf16.msra.mxu1 %v9590_v21  ;;  %v9624_v46 = vld [vmem:[#allocation52_spill] sm:$0xff] }
 0x7b0   :  { %6781 = vmatprep.subr.bf16.mxu0 %v9591_v57  ;;  %6806 = vmatprep.subr.bf16.mxu1 %v9407_v39 }
 0x7b3   :  { %6783 = vmatpush1.bf16.msra.mxu0 %v9592_v7  ;;  %6808 = vmatpush3.bf16.msra.mxu1 %v9593_v59 }
 0x7b4   :  { %6785 = vmatprep.subr.bf16.mxu0 %v9594_v54  ;;  %6809 = vmatprep.subr.bf16.mxu1 %v9407_v39 }
 0x7b7   :  { %6787 = vmatpush1.bf16.msra.mxu0 %v9595_v26  ;;  %6811 = vmatpush3.bf16.msra.mxu1 %v9596_v32  ;;  %v9622_v26 = vld [vmem:[#allocation41_spill] sm:$0xff] }
 0x7b8   :  { %6813 = vmatprep.subr.bf16.mxu0 %v9597_v37  ;;  %6844 = vmatprep.subr.bf16.mxu1 %v9407_v39  ;;  %v9609_v37 = vld [vmem:[#allocation28_spill] sm:$0xff] }
 0x7ba   :  { %3355 = vmatmul.mubr.f32.vlgmr.msra.gmra.mrb[12].mxu0 %v8845_v13  ;;  %5528 = vmatmul.mubr.f32.vlgmr.msra.gmra.mrb[44].mxu1 %v8845_v13 }
 0x7bb   :  { %6815 = vmatpush1.bf16.msra.mxu0 %v9598_v38  ;;  %6846 = vmatpush3.bf16.msra.mxu1 %v9599_v29  ;;  %v9607_v29 = vld [vmem:[#allocation26_spill] sm:$0xff]  ;;  %v9608_v38 = vld [vmem:[#allocation27_spill] sm:$0xff] }
 0x7bc   :  { %6817 = vmatprep.subr.bf16.mxu0 %v9600_v14  ;;  %6847 = vmatprep.subr.bf16.mxu1 %v9407_v39  ;;  %v9606_v14 = vld [vmem:[#allocation25_spill] sm:$0xff] }
 0x7bd   :  { %3517 = vmatprep.mubr.f32.mxu0 %v9409_v36  ;;  %5562 = vmatprep.mubr.msk.f32.mxu1 %vm7373_vm1, %v9409_v36 }
 0x7bf   :  { %6819 = vmatpush1.bf16.msra.mxu0 %v9601_v2  ;;  %6849 = vmatpush3.bf16.msra.mxu1 %v9602_v56  ;;  %v9610_v56 = vld [vmem:[#allocation29_spill] sm:$0xff]  ;;  %v9612_v2 = vld [vmem:[#allocation31_spill] sm:$0xff] }
 0x7c0   :  { %6821 = vmatprep.subr.bf16.mxu0 %v9603_v27  ;;  %6850 = vmatprep.subr.bf16.mxu1 %v9407_v39  ;;  %v9611_v27 = vld [vmem:[#allocation30_spill] sm:$0xff] }
 0x7c3   :  { %6823 = vmatpush1.bf16.msra.mxu0 %v9604_v50  ;;  %6852 = vmatpush3.bf16.msra.mxu1 %v9605_v53  ;;  %v9613_v53 = vld [vmem:[#allocation32_spill] sm:$0xff]  ;;  %v9615_v50 = vld [vmem:[#allocation34_spill] sm:$0xff] }
 0x7c4   :  { %6825 = vmatprep.subr.bf16.mxu0 %v9606_v14  ;;  %6853 = vmatprep.subr.bf16.mxu1 %v9407_v39  ;;  %v9614_v14 = vld [vmem:[#allocation33_spill] sm:$0xff] }
 0x7c7   :  { %6827 = vmatpush1.bf16.msra.mxu0 %v9607_v29  ;;  %6855 = vmatpush3.bf16.msra.mxu1 %v9608_v38  ;;  %v9616_v38 = vld [vmem:[#allocation35_spill] sm:$0xff]  ;;  %v9618_v29 = vld [vmem:[#allocation37_spill] sm:$0xff] }
 0x7c8   :  { %6829 = vmatprep.subr.bf16.mxu0 %v9609_v37  ;;  %6856 = vmatprep.subr.bf16.mxu1 %v9407_v39  ;;  %v9617_v37 = vld [vmem:[#allocation36_spill] sm:$0xff] }
 0x7cb   :  { %6831 = vmatpush1.bf16.msra.mxu0 %v9610_v56  ;;  %6858 = vmatpush3.bf16.msra.mxu1 %v9611_v27  ;;  %v9619_v27 = vld [vmem:[#allocation38_spill] sm:$0xff]  ;;  %v9621_v56 = vld [vmem:[#allocation40_spill] sm:$0xff] }
 0x7cc   :  { %6833 = vmatprep.subr.bf16.mxu0 %v9612_v2  ;;  %6859 = vmatprep.subr.bf16.mxu1 %v9407_v39  ;;  %v9620_v2 = vld [vmem:[#allocation39_spill] sm:$0xff] }
 0x7cf   :  { %6835 = vmatpush1.bf16.msra.mxu0 %v9613_v53  ;;  %6861 = vmatpush3.bf16.msra.mxu1 %v9614_v14 }
 0x7d0   :  { %6837 = vmatprep.subr.bf16.mxu0 %v9615_v50  ;;  %6862 = vmatprep.subr.bf16.mxu1 %v9407_v39 }
 0x7d3   :  { %6839 = vmatpush1.bf16.msra.mxu0 %v9616_v38  ;;  %6864 = vmatpush3.bf16.msra.mxu1 %v9617_v37 }
 0x7d4   :  { %6841 = vmatprep.subr.bf16.mxu0 %v9618_v29  ;;  %6865 = vmatprep.subr.bf16.mxu1 %v9407_v39  ;;  %v9623_v29 = vld [vmem:[#allocation65_spill] sm:$0xff] }
 0x7d7   :  { %6843 = vmatpush1.bf16.msra.mxu0 %v9619_v27  ;;  %6867 = vmatpush3.bf16.msra.mxu1 %v9620_v2 }
 0x7d8   :  { %6869 = vmatprep.subr.bf16.mxu0 %v9621_v56  ;;  %6900 = vmatprep.subr.bf16.mxu1 %v9407_v39 }
 0x84d   :  { %v3123_v14 = vpop.f32.mrb[40].mxu1 }
 0x84e   :  { %v5459_v50 = vpop.f32.mrb[41].mxu1  ;;  %v3124_v63 = vadd.f32 %v3123_v14, %v8324_v5 }
 0x86d   :  { %v3193_v53 = vpop.f32.mrb[26].mxu0  ;;  %v3264_v32 = vpop.f32.mrb[42].mxu1 }
 0x86e   :  { %v7142_v38 = vadd.f32 %v3193_v53, %v9622_v26  ;;  %v3195_v54 = vpop.f32.mrb[27].mxu0  ;;  %v5494_v37 = vpop.f32.mrb[43].mxu1  ;;  %v3282_v34 = vadd.f32 %v9624_v46, %v3264_v32 }
 0x86f   :  { %v7143_v7 = vadd.f32 %v3195_v54, %v9623_v29 }
 0x870   :  { %v4403_v59 = vmul.f32 -1.442695, %v7142_v38 }
 0x871   :  { %v4404_v57 = vmul.f32 -1.442695, %v7143_v7 }
 0x872   :  { %7294 = vpow2.f32 %v4403_v59 }
 0x873   :  { %7296 = vpow2.f32 %v4404_v57 }
 0x87c   :  { %v7295_v27 = vpop.eup %7294 }
 0x87d   :  { %v3276_v2 = vadd.f32 1.0, %v7295_v27  ;;  %v7297_v56 = vpop.eup %7296 }
 0x87e   :  { %v3277_v21 = vadd.f32 1.0, %v7297_v56 }
 0x87f   :  { %7298 = vrcp.f32 %v3276_v2 }
 0x880   :  { %7300 = vrcp.f32 %v3277_v21 }
 0x889   :  { %v7299_v50 = vpop.eup %7298 }
 0x88a   :  { %v3283_v43 = vmul.f32 %v7299_v50, %v3282_v34  ;;  %v7301_v56 = vpop.eup %7300 }
 0x88b   :  { %v3286_v32 = vsub.f32 1.0, %v7301_v56  ;;  %v3288_v34 = vmul.f32 %v7301_v56, %v8840_v19 }
 0x88c   :  { %v3284_v53 = vadd.f32 %v3283_v43, %v3124_v63 }
 0x88d   :  { %v3356_v37 = vpop.f32.mrb[12].mxu0  ;;  %v3427_v38 = vpop.f32.mrb[44].mxu1 }
 0x88e   :  { %7302 = vtanh.f32 %v3284_v53  ;;  %v7128_v59 = vadd.f32 %v3356_v37, %v7987_v18  ;;  %v3358_v7 = vpop.f32.mrb[13].mxu0  ;;  %v5529_v57 = vpop.f32.mrb[45].mxu1  ;;  %v3445_v37 = vadd.f32 %v8585_v10, %v3427_v38  ;;  %v9639_v10 = vld [vmem:[#allocation18_spill] sm:$0xff]  ;;  %v9641_v38 = vld [vmem:[#allocation20_spill] sm:$0xff] }
 0x88f   :  { %v7129_v2 = vadd.f32 %v3358_v7, %v9470_v24  ;;  %v9625_v57 = vld [vmem:[#allocation49_spill] sm:$0xff] }
 0x890   :  { %v4405_v54 = vmul.f32 -1.442695, %v7128_v59 }
 0x891   :  { %v4406_v27 = vmul.f32 -1.442695, %v7129_v2 }
 0x892   :  { %7304 = vpow2.f32 %v4405_v54 }
 0x893   :  { %7306 = vpow2.f32 %v4406_v27 }
 0x898   :  { %v7303_v46 = vpop.eup %7302 }
 0x899   :  { %v3287_v14 = vmul.f32 %v7303_v46, %v3286_v32 }
 0x89b   :  { %v8965_v43 = vadd.f32 %v3288_v34, %v3287_v14  ;;  %v9642_v34 = vld [vmem:[#allocation21_spill] sm:$0xff] }
 0x89c   :  { %v7305_v63 = vpop.eup %7304 }
 0x89d   :  { %v3439_v21 = vadd.f32 1.0, %v7305_v63  ;;  %v7307_v50 = vpop.eup %7306  ;;  %v9643_v63 = vld [vmem:[#allocation22_spill] sm:$0xff] }
 0x89e   :  { %v3440_v53 = vadd.f32 1.0, %v7307_v50  ;;  %v9645_v50 = vld [vmem:[#allocation24_spill] sm:$0xff] }
 0x89f   :  { %7308 = vrcp.f32 %v3439_v21  ;;  %v9644_v21 = vld [vmem:[#allocation23_spill] sm:$0xff] }
 0x8a0   :  { %7310 = vrcp.f32 %v3440_v53  ;;  %v9646_v53 = vld [vmem:[#allocation25_spill] sm:$0xff] }
 0x8a9   :  { %v7309_v59 = vpop.eup %7308 }
 0x8aa   :  { %v3446_v7 = vmul.f32 %v7309_v59, %v3445_v37  ;;  %v7311_v2 = vpop.eup %7310  ;;  %v9647_v37 = vld [vmem:[#allocation26_spill] sm:$0xff]  ;;  %v9648_v59 = vld [vmem:[#allocation27_spill] sm:$0xff] }
 0x8ab   :  { %v3449_v27 = vsub.f32 1.0, %v7311_v2  ;;  %v3451_v56 = vmul.f32 %v7311_v2, %v8845_v13  ;;  %v9640_v13 = vld [vmem:[#allocation19_spill] sm:$0xff] }
 0x8ac   :  { %v3447_v54 = vadd.f32 %v3446_v7, %v9625_v57  ;;  %v9649_v7 = vld [vmem:[#allocation28_spill] sm:$0xff]  ;;  %v9650_v57 = vld [vmem:[#allocation29_spill] sm:$0xff]  ;;  %v9652_v2 = vld [vmem:[#allocation31_spill] sm:$0xff] }
 0x8ae   :  { %7312 = vtanh.f32 %v3447_v54  ;;  %v9651_v54 = vld [vmem:[#allocation30_spill] sm:$0xff] }
 0x8b8   :  { %v7313_v46 = vpop.eup %7312 }
 0x8b9   :  { %v3450_v32 = vmul.f32 %v7313_v46, %v3449_v27  ;;  %v9653_v27 = vld [vmem:[#allocation32_spill] sm:$0xff]  ;;  %v9654_v46 = vld [vmem:[#allocation33_spill] sm:$0xff] }
 0x8bb   :  { %v8970_v14 = vadd.f32 %v3451_v56, %v3450_v32  ;;  %v9655_v32 = vld [vmem:[#allocation34_spill] sm:$0xff]  ;;  %v9656_v56 = vld [vmem:[#allocation35_spill] sm:$0xff] }
 0x8bd   :  { %3518 = vmatmul.mubr.f32.vlgmr.msra.gmra.mrb[28].mxu0 %v8970_v14  ;;  %5563 = vmatmul.mubr.f32.vlgmr.msra.gmra.mrb[46].mxu1 %v8970_v14 }
 0x8be   :  { %6871 = vmatpush1.bf16.msra.mxu0 %v8025_v55  ;;  %6902 = vmatpush3.bf16.msra.mxu1 %v9434_v11 }
 0x8bf   :  { %6873 = vmatprep.subr.bf16.mxu0 %v9435_v48  ;;  %6903 = vmatprep.subr.bf16.mxu1 %v9407_v39 }
 0x8c0   :  { %3658 = vmatprep.mubr.f32.mxu0 %v9409_v36  ;;  %5597 = vmatprep.mubr.msk.f32.mxu1 %vm7373_vm1, %v9409_v36 }
 0x8c2   :  { %6875 = vmatpush1.bf16.msra.mxu0 %v9436_v52  ;;  %6905 = vmatpush3.bf16.msra.mxu1 %v9437_v58 }
 0x8c3   :  { %6877 = vmatprep.subr.bf16.mxu0 %v9438_v41  ;;  %6906 = vmatprep.subr.bf16.mxu1 %v9407_v39 }
 0x8c6   :  { %6879 = vmatpush1.bf16.msra.mxu0 %v9439_v47  ;;  %6908 = vmatpush3.bf16.msra.mxu1 %v9440_v35 }
 0x8c7   :  { %6881 = vmatprep.subr.bf16.mxu0 %v9441_v28  ;;  %6909 = vmatprep.subr.bf16.mxu1 %v9407_v39 }
 0x8ca   :  { %6883 = vmatpush1.bf16.msra.mxu0 %v9442_v25  ;;  %6911 = vmatpush3.bf16.msra.mxu1 %v9443_v6 }
 0x8cb   :  { %6885 = vmatprep.subr.bf16.mxu0 %v9444_v3  ;;  %6912 = vmatprep.subr.bf16.mxu1 %v9407_v39 }
 0x8ce   :  { %6887 = vmatpush1.bf16.msra.mxu0 %v9445_v17  ;;  %6914 = vmatpush3.bf16.msra.mxu1 %v9446_v0 }
 0x8cf   :  { %6889 = vmatprep.subr.bf16.mxu0 %v9447_v62  ;;  %6915 = vmatprep.subr.bf16.mxu1 %v9407_v39 }
 0x8d2   :  { %6891 = vmatpush1.bf16.msra.mxu0 %v9448_v9  ;;  %6917 = vmatpush3.bf16.msra.mxu1 %v8172_v20 }
 0x8d3   :  { %6893 = vmatprep.subr.bf16.mxu0 %v8179_v4  ;;  %6918 = vmatprep.subr.bf16.mxu1 %v9407_v39 }
 0x8d6   :  { %6895 = vmatpush1.bf16.msra.mxu0 %v8198_v49  ;;  %6920 = vmatpush3.bf16.msra.mxu1 %v8200_v30 }
 0x8d7   :  { %6897 = vmatprep.subr.bf16.mxu0 %v8207_v44  ;;  %6921 = vmatprep.subr.bf16.mxu1 %v9407_v39 }
 0x8da   :  { %6899 = vmatpush1.bf16.msra.mxu0 %v8220_v1  ;;  %6923 = vmatpush3.bf16.msra.mxu1 %v8222_v60 }
 0x8db   :  { %6925 = vmatprep.subr.bf16.mxu0 %v7464_v12  ;;  %6956 = vmatprep.subr.bf16.mxu1 %v9407_v39  ;;  %v9626_v12 = vld [vmem:[#allocation5_spill] sm:$0xff] }
 0x8dd   :  { %3659 = vmatmul.mubr.f32.vlgmr.msra.gmra.mrb[28].mxu0 %v8965_v43  ;;  %5598 = vmatmul.mubr.f32.vlgmr.msra.gmra.mrb[48].mxu1 %v8965_v43 }
 0x8de   :  { %6927 = vmatpush1.bf16.msra.mxu0 %v7472_v15  ;;  %6958 = vmatpush3.bf16.msra.mxu1 %v7548_v40  ;;  %v9627_v15 = vld [vmem:[#allocation11_spill] sm:$0xff]  ;;  %v9633_v40 = vld [vmem:[#allocation14_spill] sm:$0xff] }
 0x8df   :  { %6929 = vmatprep.subr.bf16.mxu0 %v7475_v16  ;;  %6959 = vmatprep.subr.bf16.mxu1 %v9407_v39  ;;  %v9628_v16 = vld [vmem:[#allocation6_spill] sm:$0xff] }
 0x8e0   :  { %3821 = vmatprep.mubr.f32.mxu0 %v9409_v36  ;;  %5632 = vmatprep.mubr.msk.f32.mxu1 %vm7373_vm1, %v9409_v36 }
 0x8e2   :  { %6931 = vmatpush1.bf16.msra.mxu0 %v7495_v22  ;;  %6961 = vmatpush3.bf16.msra.mxu1 %v7582_v51  ;;  %v9629_v22 = vld [vmem:[#allocation7_spill] sm:$0xff] }
 0x8e3   :  { %6933 = vmatprep.subr.bf16.mxu0 %v7498_v23  ;;  %6962 = vmatprep.subr.bf16.mxu1 %v9407_v39  ;;  %v9630_v23 = vld [vmem:[#allocation13_spill] sm:$0xff]  ;;  %v9636_v51 = vld [vmem:[#allocation15_spill] sm:$0xff] }
 0x8e6   :  { %6935 = vmatpush1.bf16.msra.mxu0 %v7524_v31  ;;  %6964 = vmatpush3.bf16.msra.mxu1 %v7616_v61  ;;  %v9631_v31 = vld [vmem:[#allocation8_spill] sm:$0xff] }
 0x8e7   :  { %6937 = vmatprep.subr.bf16.mxu0 %v7527_v33  ;;  %6965 = vmatprep.subr.bf16.mxu1 %v9407_v39  ;;  %v9632_v33 = vld [vmem:[#allocation9_spill] sm:$0xff]  ;;  %v9637_v61 = vld [vmem:[#allocation16_spill] sm:$0xff] }
 0x8ea   :  { %6939 = vmatpush1.bf16.msra.mxu0 %v7555_v42  ;;  %6967 = vmatpush3.bf16.msra.mxu1 %v7650_v8  ;;  %v9634_v42 = vld [vmem:[#allocation10_spill] sm:$0xff]  ;;  %v9638_v8 = vld [vmem:[#allocation17_spill] sm:$0xff] }
 0x8eb   :  { %6941 = vmatprep.subr.bf16.mxu0 %v7564_v45  ;;  %6968 = vmatprep.subr.bf16.mxu1 %v9407_v39  ;;  %v9635_v45 = vld [vmem:[#allocation12_spill] sm:$0xff] }
 0x8ee   :  { %6943 = vmatpush1.bf16.msra.mxu0 %v9626_v12  ;;  %6970 = vmatpush3.bf16.msra.mxu1 %v9627_v15  ;;  %v9657_v12 = vld [vmem:[#allocation36_spill] sm:$0xff]  ;;  %v9658_v15 = vld [vmem:[#allocation37_spill] sm:$0xff] }
 0x8ef   :  { %6945 = vmatprep.subr.bf16.mxu0 %v9628_v16  ;;  %6971 = vmatprep.subr.bf16.mxu1 %v9407_v39  ;;  %v9659_v16 = vld [vmem:[#allocation38_spill] sm:$0xff] }
 0x8f2   :  { %6947 = vmatpush1.bf16.msra.mxu0 %v9629_v22  ;;  %6973 = vmatpush3.bf16.msra.mxu1 %v9630_v23  ;;  %v9660_v22 = vld [vmem:[#allocation39_spill] sm:$0xff]  ;;  %v9661_v23 = vld [vmem:[#allocation40_spill] sm:$0xff] }
 0x8f3   :  { %6949 = vmatprep.subr.bf16.mxu0 %v9631_v31  ;;  %6974 = vmatprep.subr.bf16.mxu1 %v9407_v39 }
 0x8f6   :  { %6951 = vmatpush1.bf16.msra.mxu0 %v9632_v33  ;;  %6976 = vmatpush3.bf16.msra.mxu1 %v9633_v40 }
 0x8f7   :  { %6953 = vmatprep.subr.bf16.mxu0 %v9634_v42  ;;  %6977 = vmatprep.subr.bf16.mxu1 %v9407_v39 }
 0x8fa   :  { %6955 = vmatpush1.bf16.msra.mxu0 %v9635_v45  ;;  %6979 = vmatpush3.bf16.msra.mxu1 %v9636_v51 }
 0x8fb   :  { %6981 = vmatprep.subr.bf16.mxu0 %v9637_v61  ;;  %7012 = vmatprep.subr.bf16.mxu1 %v9407_v39 }
 0x8fd   :  { %3822 = vmatmul.mubr.f32.vlgmr.msra.gmra.mrb[14].mxu0 %v8970_v14  ;;  %5633 = vmatmul.mubr.f32.vlgmr.msra.gmra.mrb[50].mxu1 %v8970_v14 }
 0x8fe   :  { %6983 = vmatpush1.bf16.msra.mxu0 %v9638_v8  ;;  %7014 = vmatpush3.bf16.msra.mxu1 %v9639_v10 }
 0x8ff   :  { %6985 = vmatprep.subr.bf16.mxu0 %v9640_v13  ;;  %7015 = vmatprep.subr.bf16.mxu1 %v9407_v39 }
 0x900   :  { %3984 = vmatprep.mubr.f32.mxu0 %v9409_v36  ;;  %5667 = vmatprep.mubr.msk.f32.mxu1 %vm7373_vm1, %v9409_v36 }
 0x902   :  { %6987 = vmatpush1.bf16.msra.mxu0 %v9641_v38  ;;  %7017 = vmatpush3.bf16.msra.mxu1 %v9642_v34 }
 0x903   :  { %6989 = vmatprep.subr.bf16.mxu0 %v9643_v63  ;;  %7018 = vmatprep.subr.bf16.mxu1 %v9407_v39 }
 0x906   :  { %6991 = vmatpush1.bf16.msra.mxu0 %v9644_v21  ;;  %7020 = vmatpush3.bf16.msra.mxu1 %v9645_v50  ;;  %v9662_v50 = vld [vmem:[#allocation52_spill] sm:$0xff] }
 0x907   :  { %6993 = vmatprep.subr.bf16.mxu0 %v9646_v53  ;;  %7021 = vmatprep.subr.bf16.mxu1 %v9407_v39 }
 0x90a   :  { %6995 = vmatpush1.bf16.msra.mxu0 %v9647_v37  ;;  %7023 = vmatpush3.bf16.msra.mxu1 %v9648_v59 }
 0x90b   :  { %6997 = vmatprep.subr.bf16.mxu0 %v9649_v7  ;;  %7024 = vmatprep.subr.bf16.mxu1 %v9407_v39 }
 0x90e   :  { %6999 = vmatpush1.bf16.msra.mxu0 %v9650_v57  ;;  %7026 = vmatpush3.bf16.msra.mxu1 %v9651_v54 }
 0x90f   :  { %7001 = vmatprep.subr.bf16.mxu0 %v9652_v2  ;;  %7027 = vmatprep.subr.bf16.mxu1 %v9407_v39 }
 0x912   :  { %7003 = vmatpush1.bf16.msra.mxu0 %v9653_v27  ;;  %7029 = vmatpush3.bf16.msra.mxu1 %v9654_v46 }
 0x913   :  { %7005 = vmatprep.subr.bf16.mxu0 %v9655_v32  ;;  %7030 = vmatprep.subr.bf16.mxu1 %v9407_v39 }
 0x916   :  { %7007 = vmatpush1.bf16.msra.mxu0 %v9656_v56  ;;  %7032 = vmatpush3.bf16.msra.mxu1 %v9657_v12 }
 0x917   :  { %7009 = vmatprep.subr.bf16.mxu0 %v9658_v15  ;;  %7033 = vmatprep.subr.bf16.mxu1 %v9407_v39 }
 0x91a   :  { %7011 = vmatpush1.bf16.msra.mxu0 %v9659_v16  ;;  %7035 = vmatpush3.bf16.msra.mxu1 %v9660_v22 }
 0x91b   :  { %7037 = vmatprep.subr.bf16.mxu0 %v9661_v23  ;;  %7068 = vmatprep.subr.bf16.mxu1 %v9407_v39 }
 0x990   :  { %v3590_v31 = vpop.f32.mrb[46].mxu1 }
 0x991   :  { %v5564_v33 = vpop.f32.mrb[47].mxu1  ;;  %v3591_v59 = vadd.f32 %v3590_v31, %v8324_v5 }
 0x9b0   :  { %v3660_v40 = vpop.f32.mrb[28].mxu0  ;;  %v3731_v42 = vpop.f32.mrb[48].mxu1 }
 0x9b1   :  { %v7144_v45 = vadd.f32 %v3660_v40, %v9622_v26  ;;  %v3662_v51 = vpop.f32.mrb[29].mxu0  ;;  %v5599_v61 = vpop.f32.mrb[49].mxu1  ;;  %v3749_v53 = vadd.f32 %v9662_v50, %v3731_v42 }
 0x9b2   :  { %v7145_v10 = vadd.f32 %v3662_v51, %v9623_v29 }
 0x9b3   :  { %v4407_v8 = vmul.f32 -1.442695, %v7144_v45 }
 0x9b4   :  { %v4408_v13 = vmul.f32 -1.442695, %v7145_v10 }
 0x9b5   :  { %7314 = vpow2.f32 %v4407_v8 }
 0x9b6   :  { %7316 = vpow2.f32 %v4408_v13  ;;  %v9663_v13 = vld [vmem:[#allocation48_spill] sm:$0xff] }
 0x9bf   :  { %v7315_v38 = vpop.eup %7314 }
 0x9c0   :  { %v3743_v34 = vadd.f32 1.0, %v7315_v38  ;;  %v7317_v63 = vpop.eup %7316 }
 0x9c1   :  { %v3744_v21 = vadd.f32 1.0, %v7317_v63 }
 0x9c2   :  { %7318 = vrcp.f32 %v3743_v34 }
 0x9c3   :  { %7320 = vrcp.f32 %v3744_v21 }
 0x9cc   :  { %v7319_v37 = vpop.eup %7318 }
 0x9cd   :  { %v3750_v7 = vmul.f32 %v7319_v37, %v3749_v53  ;;  %v7321_v15 = vpop.eup %7320 }
 0x9ce   :  { %v3753_v22 = vsub.f32 1.0, %v7321_v15  ;;  %v3755_v33 = vmul.f32 %v7321_v15, %v8965_v43 }
 0x9cf   :  { %v3751_v57 = vadd.f32 %v3750_v7, %v3591_v59 }
 0x9d0   :  { %v3823_v54 = vpop.f32.mrb[14].mxu0  ;;  %v3894_v2 = vpop.f32.mrb[50].mxu1 }
 0x9d1   :  { %7322 = vtanh.f32 %v3751_v57  ;;  %v7130_v27 = vadd.f32 %v3823_v54, %v7987_v18  ;;  %v3825_v46 = vpop.f32.mrb[15].mxu0  ;;  %v5634_v32 = vpop.f32.mrb[51].mxu1 }
 0x9d2   :  { %v7131_v12 = vadd.f32 %v3825_v46, %v9470_v24  ;;  %v7346_v24 = vld [vmem:[%s9221_s4] ss:$0 sm:$0xff] }
 0x9d3   :  { %v4409_v56 = vmul.f32 -1.442695, %v7130_v27  ;;  %v3912_v61 = vadd.f32 %v7346_v24, %v3894_v2 }
 0x9d4   :  { %v4410_v16 = vmul.f32 -1.442695, %v7131_v12 }
 0x9d5   :  { %7324 = vpow2.f32 %v4409_v56 }
 0x9d6   :  { %7326 = vpow2.f32 %v4410_v16 }
 0x9db   :  { %v7323_v23 = vpop.eup %7322 }
 0x9dc   :  { %v3754_v31 = vmul.f32 %v7323_v23, %v3753_v22 }
 0x9de   :  { %v9090_v40 = vadd.f32 %v3755_v33, %v3754_v31 }
 0x9df   :  { %v7325_v42 = vpop.eup %7324 }
 0x9e0   :  { %v3906_v45 = vadd.f32 1.0, %v7325_v42  ;;  %v7327_v18 = vpop.eup %7326 }
 0x9e1   :  { %v3907_v51 = vadd.f32 1.0, %v7327_v18  ;;  %v9664_v18 = vld [vmem:[#allocation42_spill] sm:$0xff] }
 0x9e2   :  { %7328 = vrcp.f32 %v3906_v45 }
 0x9e3   :  { %7330 = vrcp.f32 %v3907_v51  ;;  %v9665_v51 = vld [vmem:[#allocation50_spill] sm:$0xff] }
 0x9e4   :  { %v4258_v24 = vrot.slane %v9665_v51, 6 }
 0x9ec   :  { %v7329_v8 = vpop.eup %7328 }
 0x9ed   :  { %v3913_v10 = vmul.f32 %v7329_v8, %v3912_v61  ;;  %v7331_v34 = vpop.eup %7330  ;;  %v9666_v61 = vld [vmem:[#allocation51_spill] sm:$0xff] }
 0x9ee   :  { %v3916_v63 = vsub.f32 1.0, %v7331_v34  ;;  %v3918_v37 = vmul.f32 %v7331_v34, %v8970_v14  ;;  %v4261_v8 = vrot.slane %v9666_v61, 5 }
 0x9ef   :  { %v3914_v38 = vadd.f32 %v3913_v10, %v9663_v13 }
 0x9f1   :  { %7332 = vtanh.f32 %v3914_v38  ;;  %v9667_v38 = vld [vmem:[#allocation67_spill] sm:$0xff] }
 0x9fb   :  { %v7333_v21 = vpop.eup %7332 }
 0x9fc   :  { %v3917_v53 = vmul.f32 %v7333_v21, %v3916_v63  ;;  %v4267_v21 = vrot.slane %v8965_v43, 3 }
 0x9fe   :  { %v3919_v59 = vadd.f32 %v3918_v37, %v3917_v53  ;;  %v4270_v37 = vrot.slane %v9090_v40, 2 }
 0xa00   :  { %3985 = vmatmul.mubr.f32.vlgmr.msra.gmra.mrb[30].mxu0 %v3919_v59  ;;  %5668 = vmatmul.mubr.f32.vlgmr.msra.gmra.mrb[52].mxu1 %v3919_v59 }
 0xa01   :  { %7039 = vmatpush1.bf16.msra.mxu0 %v8025_v55  ;;  %7070 = vmatpush3.bf16.msra.mxu1 %v9434_v11  ;;  %v4224_v55 = vld [vmem:[%s9226_s9] sm:$0xff]  ;;  %v4230_v11 = vld [vmem:[%s9226_s9 + $0x30] sm:$0xff] }
 0xa02   :  { %7041 = vmatprep.subr.bf16.mxu0 %v9435_v48  ;;  %7071 = vmatprep.subr.bf16.mxu1 %v9407_v39  ;;  %v4231_v48 = vld [vmem:[%s9226_s9 + $0x38] sm:$0xff] }
 0xa03   :  { %4125 = vmatprep.mubr.f32.mxu0 %v9409_v36  ;;  %5702 = vmatprep.mubr.msk.f32.mxu1 %vm7373_vm1, %v9409_v36 }
 0xa05   :  { %7043 = vmatpush1.bf16.msra.mxu0 %v9436_v52  ;;  %7073 = vmatpush3.bf16.msra.mxu1 %v9437_v58  ;;  %v7102_v52 = vpack.c.bf16 %v4231_v48, %v4230_v11  ;;  %v4232_v58 = vld [vmem:[%s9226_s9 + $0x40] sm:$0xff] }
 0xa06   :  { %7045 = vmatprep.subr.bf16.mxu0 %v9438_v41  ;;  %7074 = vmatprep.subr.bf16.mxu1 %v9407_v39  ;;  %v4233_v41 = vld [vmem:[%s9226_s9 + $0x48] sm:$0xff] }
 0xa09   :  { %7047 = vmatpush1.bf16.msra.mxu0 %v9439_v47  ;;  %7076 = vmatpush3.bf16.msra.mxu1 %v9440_v35  ;;  %v4234_v47 = vld [vmem:[%s9226_s9 + $0x50] sm:$0xff]  ;;  %v7105_v35 = vpack.c.bf16 %v4233_v41, %v4232_v58 }
 0xa0a   :  { %7049 = vmatprep.subr.bf16.mxu0 %v9441_v28  ;;  %7077 = vmatprep.subr.bf16.mxu1 %v9407_v39  ;;  %v4235_v28 = vld [vmem:[%s9226_s9 + $0x58] sm:$0xff] }
 0xa0d   :  { %7051 = vmatpush1.bf16.msra.mxu0 %v9442_v25  ;;  %7079 = vmatpush3.bf16.msra.mxu1 %v9443_v6  ;;  %v7108_v25 = vpack.c.bf16 %v4235_v28, %v4234_v47  ;;  %v4236_v6 = vld [vmem:[%s9226_s9 + $0x60] sm:$0xff] }
 0xa0e   :  { %7053 = vmatprep.subr.bf16.mxu0 %v9444_v3  ;;  %7080 = vmatprep.subr.bf16.mxu1 %v9407_v39  ;;  %v4237_v3 = vld [vmem:[%s9226_s9 + $0x68] sm:$0xff] }
 0xa11   :  { %7055 = vmatpush1.bf16.msra.mxu0 %v9445_v17  ;;  %7082 = vmatpush3.bf16.msra.mxu1 %v9446_v0  ;;  %v7111_v17 = vpack.c.bf16 %v4237_v3, %v4236_v6  ;;  %v4238_v0 = vld [vmem:[%s9226_s9 + $0x70] sm:$0xff] }
 0xa12   :  { %7057 = vmatprep.subr.bf16.mxu0 %v9447_v62  ;;  %7083 = vmatprep.subr.bf16.mxu1 %v9407_v39  ;;  %v4239_v62 = vld [vmem:[%s9226_s9 + $0x78] sm:$0xff] }
 0xa15   :  { %7059 = vmatpush1.bf16.msra.mxu0 %v9448_v9  ;;  %7085 = vmatpush3.bf16.msra.mxu1 %v8172_v20  ;;  %v4226_v20 = vld [vmem:[%s9226_s9 + $0x10] sm:$0xff]  ;;  %v7114_v9 = vpack.c.bf16 %v4239_v62, %v4238_v0 }
 0xa16   :  { %7061 = vmatprep.subr.bf16.mxu0 %v8179_v4  ;;  %7086 = vmatprep.subr.bf16.mxu1 %v9407_v39  ;;  %v4225_v4 = vld [vmem:[%s9226_s9 + $0x8] sm:$0xff] }
 0xa19   :  { %7063 = vmatpush1.bf16.msra.mxu0 %v8198_v49  ;;  %7088 = vmatpush3.bf16.msra.mxu1 %v8200_v30  ;;  %v4228_v30 = vld [vmem:[%s9226_s9 + $0x20] sm:$0xff] }
 0xa1a   :  { %7065 = vmatprep.subr.bf16.mxu0 %v8207_v44  ;;  %7089 = vmatprep.subr.bf16.mxu1 %v9407_v39  ;;  %v7093_v44 = vpack.c.bf16 %v4225_v4, %v4224_v55 }
 0xa1d   :  { %7067 = vmatpush1.bf16.msra.mxu0 %v8220_v1  ;;  %7091 = vmatpush3.bf16.msra.mxu1 %v8222_v60  ;;  %v4229_v1 = vld [vmem:[%s9226_s9 + $0x28] sm:$0xff] }
 0xa1e   :  { %7092 = vmatprep.subr.bf16.mxu0 %v9407_v39  ;;  %v7099_v60 = vpack.c.bf16 %v4229_v1, %v4228_v30 }
 0xa20   :  { %4126 = vmatmul.mubr.f32.vlgmr.msra.gmra.mrb[30].mxu0 %v9090_v40  ;;  %5703 = vmatmul.mubr.f32.vlgmr.msra.gmra.mrb[54].mxu1 %v9090_v40 }
 0xa21   :  { %5737 = vmatprep.mubr.msk.f32.mxu0 %vm7373_vm1, %v9409_v36  ;;  %7094 = vmatpush3.bf16.msra.mxu0 %v7093_v44  ;;  %v4227_v36 = vld [vmem:[%s9226_s9 + $0x18] sm:$0xff] }
 0xa22   :  { %7095 = vmatprep.subr.bf16.mxu0 %v9407_v39  ;;  %v7096_v49 = vpack.c.bf16 %v4227_v36, %v4226_v20 }
 0xa25   :  { %7097 = vmatpush3.bf16.msra.mxu0 %v7096_v49 }
 0xa26   :  { %7098 = vmatprep.subr.bf16.mxu0 %v9407_v39 }
 0xa29   :  { %7100 = vmatpush3.bf16.msra.mxu0 %v7099_v60 }
 0xa2a   :  { %7101 = vmatprep.subr.bf16.mxu0 %v9407_v39 }
 0xa2d   :  { %7103 = vmatpush3.bf16.msra.mxu0 %v7102_v52 }
 0xa2e   :  { %7104 = vmatprep.subr.bf16.mxu0 %v9407_v39 }
 0xa31   :  { %7106 = vmatpush3.bf16.msra.mxu0 %v7105_v35 }
 0xa32   :  { %7107 = vmatprep.subr.bf16.mxu0 %v9407_v39 }
 0xa35   :  { %7109 = vmatpush3.bf16.msra.mxu0 %v7108_v25 }
 0xa36   :  { %7110 = vmatprep.subr.bf16.mxu0 %v9407_v39 }
 0xa39   :  { %7112 = vmatpush3.bf16.msra.mxu0 %v7111_v17 }
 0xa3a   :  { %7113 = vmatprep.subr.bf16.mxu0 %v9407_v39 }
 0xa3d   :  { %7115 = vmatpush3.bf16.msra.mxu0 %v7114_v9 }
 0xad3   :  { %v4057_v14 = vpop.f32.mrb[52].mxu1 }
 0xad4   :  { %v5669_v7 = vpop.f32.mrb[53].mxu1  ;;  %v4058_v33 = vadd.f32 %v4057_v14, %v8324_v5  ;;  %v4264_v5 = vrot.slane %v8840_v19, 4  ;;  %v4413_v19 = vld [vmem:[%s9227_s10] ss:$0 sm:$0xff] }
 0xaf3   :  { %v4127_v57 = vpop.f32.mrb[30].mxu0  ;;  %v4198_v54 = vpop.f32.mrb[54].mxu1 }
 0xaf4   :  { %v7146_v2 = vadd.f32 %v4127_v57, %v9622_v26  ;;  %v4129_v27 = vpop.f32.mrb[31].mxu0  ;;  %v5704_v46 = vpop.f32.mrb[55].mxu1  ;;  %v4216_v23 = vadd.f32 %v9662_v50, %v4198_v54 }
 0xaf5   :  { %v7147_v56 = vadd.f32 %v4129_v27, %v9623_v29  ;;  %v4255_v29 = vrot.slane %v9664_v18, 7 }
 0xaf6   :  { %v4411_v32 = vmul.f32 -1.442695, %v7146_v2 }
 0xaf7   :  { %v4412_v12 = vmul.f32 -1.442695, %v7147_v56  ;;  %v4257_v50 = vsel %vm4256_vm2, %v4255_v29, %v9667_v38 }
 0xaf8   :  { %7334 = vpow2.f32 %v4411_v32  ;;  %v4260_v53 = vsel %vm4259_vm3, %v4258_v24, %v4257_v50 }
 0xaf9   :  { %7336 = vpow2.f32 %v4412_v12  ;;  %v4263_v55 = vsel %vm4262_vm4, %v4261_v8, %v4260_v53 }
 0xafa   :  { %v4266_v4 = vsel %vm4265_vm5, %v4264_v5, %v4263_v55 }
 0xafb   :  { %v4269_v44 = vsel %vm4268_vm6, %v4267_v21, %v4266_v4 }
 0xafc   :  { %v4272_v36 = vsel %vm4271_vm7, %v4270_v37, %v4269_v44 }
 0xb02   :  { %v7335_v15 = vpop.eup %7334 }
 0xb03   :  { %v4210_v16 = vadd.f32 1.0, %v7335_v15  ;;  %v7337_v22 = vpop.eup %7336 }
 0xb04   :  { %v4211_v39 = vadd.f32 1.0, %v7337_v22 }
 0xb05   :  { %7338 = vrcp.f32 %v4210_v16 }
 0xb06   :  { %7340 = vrcp.f32 %v4211_v39 }
 0xb0f   :  { %v7339_v31 = vpop.eup %7338 }
 0xb10   :  { %v4217_v42 = vmul.f32 %v7339_v31, %v4216_v23  ;;  %v7341_v45 = vpop.eup %7340 }
 0xb11   :  { %v4220_v10 = vsub.f32 1.0, %v7341_v45  ;;  %v4222_v63 = vmul.f32 %v7341_v45, %v9090_v40 }
 0xb12   :  { %v4218_v26 = vadd.f32 %v4217_v42, %v4058_v33 }
 0xb14   :  { %7342 = vtanh.f32 %v4218_v26 }
 0xb1e   :  { %v7343_v13 = vpop.eup %7342 }
 0xb1f   :  { %v4221_v34 = vmul.f32 %v7343_v13, %v4220_v10 }
 0xb21   :  { %v4223_v59 = vadd.f32 %v4222_v63, %v4221_v34 }
 0xb23   :  { %v4273_v20 = vrot.slane %v4223_v59, 1 }
 0xb25   :  { %v4275_v49 = vsel %vm4274_vm8, %v4273_v20, %v4272_v36 }
 0xb26   :  { %5738 = vmatmul.mubr.f32.vlgmr.msra.gmra.mrb[32].mxu0 %v4275_v49 }
 0xbf9   :  { %v4343_v43 = vpop.f32.mrb[32].mxu0 }
 0xbfa   :  { %v4344_v30 = vadd.f32 %v4413_v19, %v4343_v43  ;;  %v5739_v40 = vpop.f32.mrb[33].mxu0 }
 0xbfc   :  { %4348 = vst.msk [vmem:[#allocation2] sm:$0xff] %vm4347_vm9, %v4344_v30 }
 0xbfd   :  { %7358 = shalt.err (!%p7355_p4)
}
 0xbfe   :  { %s7359_s25 = scalar_lea.hbm %s9228_s11, 128 }
 0xbff   :  { %p7360_p5 = scmp.ne.s32.totalorder %s9228_s11, %s7359_s25  ;;  %p7363_p6 = scmp.lt.u32.totalorder %s7359_s25, %s9228_s11 }
 0xc01   :  { %p7365_p7 = pnand %p7363_p6, %p7360_p5 }
 0xc03   :  { %7368 = shalt.err (!%p7365_p7)
}
 0xc04   :  { %4358 = dma.vmem_to_hbm [thread:$0]  %s4356_s2, 128, %s9228_s11, [#allocation3]  }
 0xc05   :  { %7369 = dma.done.wait [#allocation3], 128  }
 0xc06   :  { %7370 = vsyncadd [#allocation3], 4294967168 }
 0xc07   :  { %4362 = vsyncpa [#allocation3], 1 }

</bundles_post_ra>
